<compile_context>
chip_gen: v7x
topology: tpu7x:2x2x1
jax: 0.10.0
libtpu: 0.0.40
codegen_flags: <defaults>
</compile_context>

<pallas_src>
import jax
import jax.numpy as jnp
from jax import lax
from jax.experimental import pallas as pl
from jax.experimental.pallas import tpu as pltpu

KW = 4            # conv kernel size
PAD = 1           # conv padding
LRELU_SLOPE = 0.2
BN_EPS = 1e-5

TM = 256                       # rows (N*Ho*Wo) per M tile
VMEM_LIMIT = 32 * 1024 * 1024  # scoped VMEM budget for each pallas_call


def _round_up(x, m):
    return (x + m - 1) // m * m


def _k_tiles(K):
    """Pick a K tile (multiple of 128, <=512) that exactly divides the padded K."""
    k128 = _round_up(K, 128)
    for tk in (512, 256, 128):
        if k128 % tk == 0:
            return tk, k128
    return 128, k128  # unreachable


# ---------------------------------------------------------------------------
# Pallas kernel 1: tiled (patches @ W) + bias [+ LeakyReLU] [+ per-tile BN stats]
# ---------------------------------------------------------------------------
def _make_matmul_kernel(use_lrelu: bool, emit_stats: bool):
    def kernel(p_ref, w_ref, b_ref, y_ref, *rest):
        if emit_stats:
            sum_ref, sq_ref, acc_ref = rest
        else:
            (acc_ref,) = rest

        k = pl.program_id(1)

        @pl.when(k == 0)
        def _():
            acc_ref[...] = jnp.zeros_like(acc_ref)

        # bf16 x bf16 -> f32 accumulate on the MXU
        acc_ref[...] += jnp.dot(p_ref[...], w_ref[...],
                                preferred_element_type=jnp.float32)

        @pl.when(k == pl.num_programs(1) - 1)
        def _():
            y = acc_ref[...] + b_ref[...]          # (tm, Coutp) + (1, Coutp)
            if emit_stats:
                # Per-tile channel statistics of the raw conv output (pre-activation).
                sum_ref[...] = jnp.sum(y, axis=0).reshape(1, 1, -1)
                sq_ref[...] = jnp.sum(y * y, axis=0).reshape(1, 1, -1)
            if use_lrelu:
                y = jnp.where(y > 0, y, LRELU_SLOPE * y)
            y_ref[...] = y

    return kernel


def _matmul_layer(patches, w2d, bias, *, tm, tk, use_lrelu, emit_stats):
    Mp, Kp = patches.shape
    Coutp = w2d.shape[1]
    nmt, nkt = Mp // tm, Kp // tk

    kernel = _make_matmul_kernel(use_lrelu, emit_stats)

    y_shape = jax.ShapeDtypeStruct((Mp, Coutp), jnp.float32)
    y_spec = pl.BlockSpec((tm, Coutp), lambda i, k: (i, 0))
    if emit_stats:
        stat_shape = jax.ShapeDtypeStruct((nmt, 1, Coutp), jnp.float32)
        stat_spec = pl.BlockSpec((1, 1, Coutp), lambda i, k: (i, 0, 0))
        out_shape = (y_shape, stat_shape, stat_shape)
        out_specs = (y_spec, stat_spec, stat_spec)
    else:
        out_shape = y_shape
        out_specs = y_spec

    flops = 2 * Mp * Kp * Coutp
    bytes_accessed = Mp * Kp * 2 + Kp * Coutp * 2 * nmt + Mp * Coutp * 4

    return pl.pallas_call(
        kernel,
        out_shape=out_shape,
        grid=(nmt, nkt),
        in_specs=[
            pl.BlockSpec((tm, tk), lambda i, k: (i, k)),       # patches (bf16)
            pl.BlockSpec((tk, Coutp), lambda i, k: (k, 0)),    # weights (bf16)
            pl.BlockSpec((1, Coutp), lambda i, k: (0, 0)),     # bias (f32)
        ],
        out_specs=out_specs,
        scratch_shapes=[pltpu.VMEM((tm, Coutp), jnp.float32)],
        compiler_params=pltpu.CompilerParams(
            dimension_semantics=("parallel", "arbitrary"),
            vmem_limit_bytes=VMEM_LIMIT),
        cost_estimate=pl.CostEstimate(flops=flops, transcendentals=0,
                                      bytes_accessed=bytes_accessed),
    )(patches, w2d, bias)


# ---------------------------------------------------------------------------
# Pallas kernel 2: BN apply (y*scale + shift) -> LeakyReLU, tiled over M
# ---------------------------------------------------------------------------
def _bn_lrelu_kernel(y_ref, s_ref, t_ref, o_ref):
    y = y_ref[...] * s_ref[...] + t_ref[...]
    o_ref[...] = jnp.where(y > 0, y, LRELU_SLOPE * y)


def _bn_lrelu_apply(y, scale, shift, *, tm):
    Mp, Coutp = y.shape
    return pl.pallas_call(
        _bn_lrelu_kernel,
        out_shape=jax.ShapeDtypeStruct((Mp, Coutp), jnp.float32),
        grid=(Mp // tm,),
        in_specs=[
            pl.BlockSpec((tm, Coutp), lambda i: (i, 0)),
            pl.BlockSpec((1, Coutp), lambda i: (0, 0)),
            pl.BlockSpec((1, Coutp), lambda i: (0, 0)),
        ],
        out_specs=pl.BlockSpec((tm, Coutp), lambda i: (i, 0)),
        compiler_params=pltpu.CompilerParams(
            dimension_semantics=("parallel",),
            vmem_limit_bytes=VMEM_LIMIT),
        cost_estimate=pl.CostEstimate(flops=3 * Mp * Coutp, transcendentals=0,
                                      bytes_accessed=2 * Mp * Coutp * 4),
    )(y, scale, shift)


# ---------------------------------------------------------------------------
# Plain-JAX glue: im2col patch extraction (NHWC)
# ---------------------------------------------------------------------------
def _im2col(x_nhwc, stride):
    N, H, W, C = x_nhwc.shape
    xp = jnp.pad(x_nhwc, ((0, 0), (PAD, PAD), (PAD, PAD), (0, 0)))
    Ho = (H + 2 * PAD - KW) // stride + 1
    Wo = (W + 2 * PAD - KW) // stride + 1
    cols = []
    for di in range(KW):
        for dj in range(KW):
            cols.append(
                xp[:, di:di + stride * (Ho - 1) + 1:stride,
                      dj:dj + stride * (Wo - 1) + 1:stride, :])
    # (N, Ho, Wo, C, KW*KW): last-axis order (di, dj); flattened K index = c*16 + di*4 + dj
    p = jnp.stack(cols, axis=-1)
    p = p.reshape(N * Ho * Wo, C * KW * KW)
    return p, Ho, Wo


# ---------------------------------------------------------------------------
# Module configuration / parameters (deterministic synthetic weights)
# ---------------------------------------------------------------------------
def _layer_configs(input_nc, ndf, n_layers):
    cfgs = []
    cfgs.append(dict(cin=input_nc, cout=ndf, stride=2,
                     use_bias=True, use_bn=False, use_lrelu=True))
    nf_mult = 1
    for n in range(1, n_layers):
        nf_prev, nf_mult = nf_mult, min(2 ** n, 8)
        cfgs.append(dict(cin=ndf * nf_prev, cout=ndf * nf_mult, stride=2,
                         use_bias=False, use_bn=True, use_lrelu=True))
    nf_prev, nf_mult = nf_mult, min(2 ** n_layers, 8)
    cfgs.append(dict(cin=ndf * nf_prev, cout=ndf * nf_mult, stride=1,
                     use_bias=False, use_bn=True, use_lrelu=True))
    cfgs.append(dict(cin=ndf * nf_mult, cout=1, stride=1,
                     use_bias=True, use_bn=False, use_lrelu=False))
    return cfgs


def init_params(key, cfgs, init_gain=0.02):
    params = []
    for cfg in cfgs:
        key, kw_, kg_ = jax.random.split(key, 3)
        cout, cin = cfg['cout'], cfg['cin']
        K = cin * KW * KW
        _, K_pad = _k_tiles(K)
        coutp = _round_up(cout, 128)

        w = jax.random.normal(kw_, (cout, cin, KW, KW), jnp.float32) * init_gain  # OIHW
        # Pre-reshape/transpose/pad/cast the matmul weight once (not per forward call).
        w2d = w.reshape(cout, K).T                                  # (K, Cout)
        w2d = jnp.pad(w2d, ((0, K_pad - K), (0, coutp - cout))).astype(jnp.bfloat16)

        b = jnp.zeros((1, coutp), jnp.float32)                      # torch init: bias=0
        if cfg['use_bn']:
            g_core = 1.0 + init_gain * jax.random.normal(kg_, (cout,), jnp.float32)
        else:
            g_core = jnp.ones((cout,), jnp.float32)
        gamma = jnp.zeros((1, coutp), jnp.float32).at[0, :cout].set(g_core)
        beta = jnp.zeros((1, coutp), jnp.float32)

        params.append(dict(w=w, w2d=w2d, b=b, gamma=gamma, beta=beta))
    return params


# ---------------------------------------------------------------------------
# Forward pass (NCHW in / NCHW out, matching PyTorch)
# ---------------------------------------------------------------------------
def nlayer_discriminator_forward(x_nchw, cfgs, params):
    x = jnp.transpose(x_nchw, (0, 2, 3, 1)).astype(jnp.float32)   # NCHW -> NHWC
    N = x.shape[0]
    for cfg, p in zip(cfgs, params):
        patches, Ho, Wo = _im2col(x, cfg['stride'])
        M, K = patches.shape
        cout = cfg['cout']
        coutp = p['w2d'].shape[1]
        tk, K_pad = _k_tiles(K)
        M_pad = _round_up(M, TM)

        # Zero-pad to tile boundaries and cast the matmul LHS to bf16.
        patches = jnp.pad(patches,
                          ((0, M_pad - M), (0, K_pad - K))).astype(jnp.bfloat16)

        if cfg['use_bn']:
            # Pass 1: conv (+bias) with per-M-tile channel sum / sumsq.
            y_pad, psum, psq = _matmul_layer(patches, p['w2d'], p['b'],
                                             tm=TM, tk=tk,
                                             use_lrelu=False, emit_stats=True)
            s = jnp.sum(psum[:, 0, :], axis=0, keepdims=True)       # (1, Coutp)
            sq = jnp.sum(psq[:, 0, :], axis=0, keepdims=True)
            # Padded rows are exactly `bias` (zero patches) -> remove their contribution.
            n_pad = M_pad - M
            s = s - n_pad * p['b']
            sq = sq - n_pad * p['b'] * p['b']
            mean = s / M
            var = jnp.maximum(sq / M - mean * mean, 0.0)             # biased (training BN)
            scale = p['gamma'] * lax.rsqrt(var + BN_EPS)
            shift = p['beta'] - mean * scale
            # Pass 2: cheap elementwise normalize + LeakyReLU.
            y_pad = _bn_lrelu_apply(y_pad, scale, shift, tm=TM)
        else:
            y_pad = _matmul_layer(patches, p['w2d'], p['b'],
                                  tm=TM, tk=tk,
                                  use_lrelu=cfg['use_lrelu'], emit_stats=False)

        x = y_pad[:M, :cout].reshape(N, Ho, Wo, cout)
    return jnp.transpose(x, (0, 3, 1, 2))                           # NHWC -> NCHW


# ---------------------------------------------------------------------------
# Reference (lax.conv) with the same bf16 operand precision as the kernels
# ---------------------------------------------------------------------------
def _ref_forward(x_nchw, cfgs, params):
    x = x_nchw.astype(jnp.float32)
    for cfg, p in zip(cfgs, params):
        cout = cfg['cout']
        y = lax.conv_general_dilated(
            x.astype(jnp.bfloat16), p['w'].astype(jnp.bfloat16),
            window_strides=(cfg['stride'], cfg['stride']),
            padding=((PAD, PAD), (PAD, PAD)),
            dimension_numbers=('NCHW', 'OIHW', 'NCHW'),
            preferred_element_type=jnp.float32)
        if cfg['use_bias']:
            y = y + p['b'][0, :cout].reshape(1, -1, 1, 1)
        if cfg['use_bn']:
            mean = jnp.mean(y, axis=(0, 2, 3), keepdims=True)
            var = jnp.mean(jnp.square(y - mean), axis=(0, 2, 3), keepdims=True)
            y = (y - mean) * lax.rsqrt(var + BN_EPS)
            y = (y * p['gamma'][0, :cout].reshape(1, -1, 1, 1)
                 + p['beta'][0, :cout].reshape(1, -1, 1, 1))
        if cfg['use_lrelu']:
            y = jnp.where(y > 0, y, LRELU_SLOPE * y)
        x = y
    return x


if __name__ == "__main__":
    # Small config: input_nc=3, ndf=8, n_layers=3, input 2x3x32x32 (NCHW)
    input_nc, ndf, n_layers = 3, 8, 3
    N, H, W = 2, 32, 32

    key = jax.random.PRNGKey(0)
    kx, kp = jax.random.split(key)
    x = jax.random.normal(kx, (N, input_nc, H, W), dtype=jnp.float32)

    cfgs = _layer_configs(input_nc, ndf, n_layers)
    params = init_params(kp, cfgs)

    fwd = jax.jit(lambda xx, pp: nlayer_discriminator_forward(xx, cfgs, pp))
    out = jax.block_until_ready(fwd(x, params))

    ref = jax.block_until_ready(_ref_forward(x, cfgs, params))
    assert out.shape == ref.shape, (out.shape, ref.shape)
    # Matmul operands are bf16 (MXU-native) with f32 accumulation; compare against a
    # reference using the same operand precision.
    assert jnp.allclose(out, ref, atol=2e-2, rtol=2e-2), \
        float(jnp.max(jnp.abs(out - ref)))

    print("KERNEL_OK")
</pallas_src>

<mosaic_0001>
module attributes {stable_mosaic.version = 11 : i64} {
  func.func @kernel(%arg0: i32, %arg1: i32, %arg2: memref<256x128xbf16, #tpu.memory_space<vmem>>, %arg3: memref<128x128xbf16, #tpu.memory_space<vmem>>, %arg4: memref<1x128xf32, #tpu.memory_space<vmem>>, %arg5: memref<256x128xf32, #tpu.memory_space<vmem>>, %arg6: memref<256x128xf32, #tpu.memory_space<vmem>>) attributes {dimension_semantics = [#tpu.dimension_semantics<parallel>, #tpu.dimension_semantics<arbitrary>], iteration_bounds = array<i64: 2, 1>, scalar_prefetch = 0 : i64, scratch_operands = 1 : i64, tpu.core_type = #tpu.core_type<tc>, window_params = [{transform_indices = @transform_0, window_bounds = array<i64: 256, 128>}, {transform_indices = @transform_1, window_bounds = array<i64: 128, 128>}, {pipeline_mode = #tpu.pipeline_mode<synchronous>, transform_indices = @transform_2, window_bounds = array<i64: 1, 128>}, {transform_indices = @transform_3, window_bounds = array<i64: 256, 128>}]} {
    %c0_i32 = arith.constant 0 : i32
    %0 = arith.cmpi eq, %arg1, %c0_i32 : i32
    %1 = arith.extui %0 : i1 to i32
    %c0_i32_0 = arith.constant 0 : i32
    %2 = arith.cmpi ne, %1, %c0_i32_0 : i32
    scf.if %2 {
      %cst_10 = arith.constant 0.000000e+00 : f32
      %12 = vector.broadcast %cst_10 : f32 to vector<256x128xf32>
      %c0_11 = arith.constant 0 : index
      %c0_12 = arith.constant 0 : index
      %13 = vector.load %arg6[%c0_11, %c0_12] : memref<256x128xf32, #tpu.memory_space<vmem>>, vector<256x128xf32>
      tpu.vector_store %arg6[%c0_11, %c0_12], %12 {strides = array<i32>} : memref<256x128xf32, #tpu.memory_space<vmem>>, vector<256x128xf32>,
    } else {
    }
    %c0 = arith.constant 0 : index
    %c0_1 = arith.constant 0 : index
    %3 = vector.load %arg6[%c0, %c0_1] : memref<256x128xf32, #tpu.memory_space<vmem>>, vector<256x128xf32>
    %c0_2 = arith.constant 0 : index
    %c0_3 = arith.constant 0 : index
    %4 = vector.load %arg2[%c0_2, %c0_3] : memref<256x128xbf16, #tpu.memory_space<vmem>>, vector<256x128xbf16>
    %c0_4 = arith.constant 0 : index
    %c0_5 = arith.constant 0 : index
    %5 = vector.load %arg3[%c0_4, %c0_5] : memref<128x128xbf16, #tpu.memory_space<vmem>>, vector<128x128xbf16>
    %cst = arith.constant dense<0.000000e+00> : vector<256x128xf32>
    %6 = tpu.matmul %4, %5, %cst {dimension_numbers = #tpu.dot_dimension_numbers<[1], [0], [0], [1], [0, 0, 1, 1], [], []>} : vector<256x128xbf16>, vector<128x128xbf16>, vector<256x128xf32> -> vector<256x128xf32>
    %7 = arith.addf %3, %6 : vector<256x128xf32>
    %c0_6 = arith.constant 0 : index
    %c0_7 = arith.constant 0 : index
    %8 = vector.load %arg6[%c0_6, %c0_7] : memref<256x128xf32, #tpu.memory_space<vmem>>, vector<256x128xf32>
    tpu.vector_store %arg6[%c0_6, %c0_7], %7 {strides = array<i32>} : memref<256x128xf32, #tpu.memory_space<vmem>>, vector<256x128xf32>,
    %c0_i32_8 = arith.constant 0 : i32
    %9 = arith.cmpi eq, %arg1, %c0_i32_8 : i32
    %10 = arith.extui %9 : i1 to i32
    %c0_i32_9 = arith.constant 0 : i32
    %11 = arith.cmpi ne, %10, %c0_i32_9 : i32
    scf.if %11 {
      %c0_10 = arith.constant 0 : index
      %c0_11 = arith.constant 0 : index
      %12 = vector.load %arg6[%c0_10, %c0_11] : memref<256x128xf32, #tpu.memory_space<vmem>>, vector<256x128xf32>
      %c0_12 = arith.constant 0 : index
      %c0_13 = arith.constant 0 : index
      %13 = vector.load %arg4[%c0_12, %c0_13] : memref<1x128xf32, #tpu.memory_space<vmem>>, vector<1x128xf32>
      %14 = vector.broadcast %13 : vector<1x128xf32> to vector<256x128xf32>
      %15 = arith.addf %12, %14 : vector<256x128xf32>
      %cst_14 = arith.constant 0.000000e+00 : f32
      %16 = vector.broadcast %cst_14 : f32 to vector<256x128xf32>
      %17 = arith.cmpf ogt, %15, %16 : vector<256x128xf32>
      %cst_15 = arith.constant 2.000000e-01 : f32
      %18 = vector.broadcast %cst_15 : f32 to vector<256x128xf32>
      %19 = arith.mulf %18, %15 : vector<256x128xf32>
      %20 = arith.select %17, %15, %19 : vector<256x128xi1>, vector<256x128xf32>
      %c0_16 = arith.constant 0 : index
      %c0_17 = arith.constant 0 : index
      %21 = vector.load %arg5[%c0_16, %c0_17] : memref<256x128xf32, #tpu.memory_space<vmem>>, vector<256x128xf32>
      tpu.vector_store %arg5[%c0_16, %c0_17], %20 {strides = array<i32>} : memref<256x128xf32, #tpu.memory_space<vmem>>, vector<256x128xf32>,
    } else {
    }
    return
  }
  func.func @transform_0(%arg0: i32, %arg1: i32) -> (i32, i32) {
    %c0_i32 = arith.constant 0 : i32
    return %arg0, %arg1 : i32, i32
  }
  func.func @transform_1(%arg0: i32, %arg1: i32) -> (i32, i32) {
    %c0_i32 = arith.constant 0 : i32
    %c0_i32_0 = arith.constant 0 : i32
    return %arg1, %c0_i32 : i32, i32
  }
  func.func @transform_2(%arg0: i32, %arg1: i32) -> (i32, i32) {
    %c0_i32 = arith.constant 0 : i32
    %c0_i32_0 = arith.constant 0 : i32
    %c0_i32_1 = arith.constant 0 : i32
    return %c0_i32, %c0_i32_0 : i32, i32
  }
  func.func @transform_3(%arg0: i32, %arg1: i32) -> (i32, i32) {
    %c0_i32 = arith.constant 0 : i32
    %c0_i32_0 = arith.constant 0 : i32
    return %arg0, %c0_i32 : i32, i32
  }
}

module attributes {stable_mosaic.version = 11 : i64} {
  func.func @kernel(%arg0: i32, %arg1: i32, %arg2: memref<256x128xbf16, #tpu.memory_space<vmem>>, %arg3: memref<128x128xbf16, #tpu.memory_space<vmem>>, %arg4: memref<1x128xf32, #tpu.memory_space<vmem>>, %arg5: memref<256x128xf32, #tpu.memory_space<vmem>>, %arg6: memref<1x1x128xf32, #tpu.memory_space<vmem>>, %arg7: memref<1x1x128xf32, #tpu.memory_space<vmem>>, %arg8: memref<256x128xf32, #tpu.memory_space<vmem>>) attributes {dimension_semantics = [#tpu.dimension_semantics<parallel>, #tpu.dimension_semantics<arbitrary>], iteration_bounds = array<i64: 1, 1>, scalar_prefetch = 0 : i64, scratch_operands = 1 : i64, tpu.core_type = #tpu.core_type<tc>, window_params = [{transform_indices = @transform_0, window_bounds = array<i64: 256, 128>}, {transform_indices = @transform_1, window_bounds = array<i64: 128, 128>}, {pipeline_mode = #tpu.pipeline_mode<synchronous>, transform_indices = @transform_2, window_bounds = array<i64: 1, 128>}, {transform_indices = @transform_3, window_bounds = array<i64: 256, 128>}, {transform_indices = @transform_4, window_bounds = array<i64: 1, 1, 128>}, {transform_indices = @transform_5, window_bounds = array<i64: 1, 1, 128>}]} {
    %c0_i32 = arith.constant 0 : i32
    %0 = arith.cmpi eq, %arg1, %c0_i32 : i32
    %1 = arith.extui %0 : i1 to i32
    %c0_i32_0 = arith.constant 0 : i32
    %2 = arith.cmpi ne, %1, %c0_i32_0 : i32
    scf.if %2 {
      %cst_10 = arith.constant 0.000000e+00 : f32
      %12 = vector.broadcast %cst_10 : f32 to vector<256x128xf32>
      %c0_11 = arith.constant 0 : index
      %c0_12 = arith.constant 0 : index
      %13 = vector.load %arg8[%c0_11, %c0_12] : memref<256x128xf32, #tpu.memory_space<vmem>>, vector<256x128xf32>
      tpu.vector_store %arg8[%c0_11, %c0_12], %12 {strides = array<i32>} : memref<256x128xf32, #tpu.memory_space<vmem>>, vector<256x128xf32>,
    } else {
    }
    %c0 = arith.constant 0 : index
    %c0_1 = arith.constant 0 : index
    %3 = vector.load %arg8[%c0, %c0_1] : memref<256x128xf32, #tpu.memory_space<vmem>>, vector<256x128xf32>
    %c0_2 = arith.constant 0 : index
    %c0_3 = arith.constant 0 : index
    %4 = vector.load %arg2[%c0_2, %c0_3] : memref<256x128xbf16, #tpu.memory_space<vmem>>, vector<256x128xbf16>
    %c0_4 = arith.constant 0 : index
    %c0_5 = arith.constant 0 : index
    %5 = vector.load %arg3[%c0_4, %c0_5] : memref<128x128xbf16, #tpu.memory_space<vmem>>, vector<128x128xbf16>
    %cst = arith.constant dense<0.000000e+00> : vector<256x128xf32>
    %6 = tpu.matmul %4, %5, %cst {dimension_numbers = #tpu.dot_dimension_numbers<[1], [0], [0], [1], [0, 0, 1, 1], [], []>} : vector<256x128xbf16>, vector<128x128xbf16>, vector<256x128xf32> -> vector<256x128xf32>
    %7 = arith.addf %3, %6 : vector<256x128xf32>
    %c0_6 = arith.constant 0 : index
    %c0_7 = arith.constant 0 : index
    %8 = vector.load %arg8[%c0_6, %c0_7] : memref<256x128xf32, #tpu.memory_space<vmem>>, vector<256x128xf32>
    tpu.vector_store %arg8[%c0_6, %c0_7], %7 {strides = array<i32>} : memref<256x128xf32, #tpu.memory_space<vmem>>, vector<256x128xf32>,
    %c0_i32_8 = arith.constant 0 : i32
    %9 = arith.cmpi eq, %arg1, %c0_i32_8 : i32
    %10 = arith.extui %9 : i1 to i32
    %c0_i32_9 = arith.constant 0 : i32
    %11 = arith.cmpi ne, %10, %c0_i32_9 : i32
    scf.if %11 {
      %c0_10 = arith.constant 0 : index
      %c0_11 = arith.constant 0 : index
      %12 = vector.load %arg8[%c0_10, %c0_11] : memref<256x128xf32, #tpu.memory_space<vmem>>, vector<256x128xf32>
      %c0_12 = arith.constant 0 : index
      %c0_13 = arith.constant 0 : index
      %13 = vector.load %arg4[%c0_12, %c0_13] : memref<1x128xf32, #tpu.memory_space<vmem>>, vector<1x128xf32>
      %14 = vector.broadcast %13 : vector<1x128xf32> to vector<256x128xf32>
      %15 = arith.addf %12, %14 : vector<256x128xf32>
      %cst_14 = arith.constant dense<0.000000e+00> : vector<128xf32>
      %16 = vector.multi_reduction <add>, %15, %cst_14 [0] : vector<256x128xf32> to vector<128xf32>
      %17 = vector.shape_cast %16 : vector<128xf32> to vector<1x1x128xf32>
      %c0_15 = arith.constant 0 : index
      %c0_16 = arith.constant 0 : index
      %c0_17 = arith.constant 0 : index
      %18 = vector.load %arg6[%c0_15, %c0_16, %c0_17] : memref<1x1x128xf32, #tpu.memory_space<vmem>>, vector<1x1x128xf32>
      tpu.vector_store %arg6[%c0_15, %c0_16, %c0_17], %17 {strides = array<i32>} : memref<1x1x128xf32, #tpu.memory_space<vmem>>, vector<1x1x128xf32>,
      %19 = arith.mulf %15, %15 : vector<256x128xf32>
      %cst_18 = arith.constant dense<0.000000e+00> : vector<128xf32>
      %20 = vector.multi_reduction <add>, %19, %cst_18 [0] : vector<256x128xf32> to vector<128xf32>
      %21 = vector.shape_cast %20 : vector<128xf32> to vector<1x1x128xf32>
      %c0_19 = arith.constant 0 : index
      %c0_20 = arith.constant 0 : index
      %c0_21 = arith.constant 0 : index
      %22 = vector.load %arg7[%c0_19, %c0_20, %c0_21] : memref<1x1x128xf32, #tpu.memory_space<vmem>>, vector<1x1x128xf32>
      tpu.vector_store %arg7[%c0_19, %c0_20, %c0_21], %21 {strides = array<i32>} : memref<1x1x128xf32, #tpu.memory_space<vmem>>, vector<1x1x128xf32>,
      %c0_22 = arith.constant 0 : index
      %c0_23 = arith.constant 0 : index
      %23 = vector.load %arg5[%c0_22, %c0_23] : memref<256x128xf32, #tpu.memory_space<vmem>>, vector<256x128xf32>
      tpu.vector_store %arg5[%c0_22, %c0_23], %15 {strides = array<i32>} : memref<256x128xf32, #tpu.memory_space<vmem>>, vector<256x128xf32>,
    } else {
    }
    return
  }
  func.func @transform_0(%arg0: i32, %arg1: i32) -> (i32, i32) {
    %c0_i32 = arith.constant 0 : i32
    return %arg0, %arg1 : i32, i32
  }
  func.func @transform_1(%arg0: i32, %arg1: i32) -> (i32, i32) {
    %c0_i32 = arith.constant 0 : i32
    %c0_i32_0 = arith.constant 0 : i32
    return %arg1, %c0_i32 : i32, i32
  }
  func.func @transform_2(%arg0: i32, %arg1: i32) -> (i32, i32) {
    %c0_i32 = arith.constant 0 : i32
    %c0_i32_0 = arith.constant 0 : i32
    %c0_i32_1 = arith.constant 0 : i32
    return %c0_i32, %c0_i32_0 : i32, i32
  }
  func.func @transform_3(%arg0: i32, %arg1: i32) -> (i32, i32) {
    %c0_i32 = arith.constant 0 : i32
    %c0_i32_0 = arith.constant 0 : i32
    return %arg0, %c0_i32 : i32, i32
  }
  func.func @transform_4(%arg0: i32, %arg1: i32) -> (i32, i32, i32) {
    %c0_i32 = arith.constant 0 : i32
    %c0_i32_0 = arith.constant 0 : i32
    %c0_i32_1 = arith.constant 0 : i32
    return %arg0, %c0_i32, %c0_i32_0 : i32, i32, i32
  }
  func.func @transform_5(%arg0: i32, %arg1: i32) -> (i32, i32, i32) {
    %c0_i32 = arith.constant 0 : i32
    %c0_i32_0 = arith.constant 0 : i32
    %c0_i32_1 = arith.constant 0 : i32
    return %arg0, %c0_i32, %c0_i32_0 : i32, i32, i32
  }
}

module attributes {stable_mosaic.version = 11 : i64} {
  func.func @_bn_lrelu_kernel(%arg0: i32, %arg1: memref<256x128xf32, #tpu.memory_space<vmem>>, %arg2: memref<1x128xf32, #tpu.memory_space<vmem>>, %arg3: memref<1x128xf32, #tpu.memory_space<vmem>>, %arg4: memref<256x128xf32, #tpu.memory_space<vmem>>) attributes {dimension_semantics = [#tpu.dimension_semantics<parallel>], iteration_bounds = array<i64: 1>, scalar_prefetch = 0 : i64, scratch_operands = 0 : i64, tpu.core_type = #tpu.core_type<tc>, window_params = [{transform_indices = @transform_0, window_bounds = array<i64: 256, 128>}, {pipeline_mode = #tpu.pipeline_mode<synchronous>, transform_indices = @transform_1, window_bounds = array<i64: 1, 128>}, {pipeline_mode = #tpu.pipeline_mode<synchronous>, transform_indices = @transform_2, window_bounds = array<i64: 1, 128>}, {transform_indices = @transform_3, window_bounds = array<i64: 256, 128>}]} {
    %c0 = arith.constant 0 : index
    %c0_0 = arith.constant 0 : index
    %0 = vector.load %arg1[%c0, %c0_0] : memref<256x128xf32, #tpu.memory_space<vmem>>, vector<256x128xf32>
    %c0_1 = arith.constant 0 : index
    %c0_2 = arith.constant 0 : index
    %1 = vector.load %arg2[%c0_1, %c0_2] : memref<1x128xf32, #tpu.memory_space<vmem>>, vector<1x128xf32>
    %2 = vector.broadcast %1 : vector<1x128xf32> to vector<256x128xf32>
    %3 = arith.mulf %0, %2 : vector<256x128xf32>
    %c0_3 = arith.constant 0 : index
    %c0_4 = arith.constant 0 : index
    %4 = vector.load %arg3[%c0_3, %c0_4] : memref<1x128xf32, #tpu.memory_space<vmem>>, vector<1x128xf32>
    %5 = vector.broadcast %4 : vector<1x128xf32> to vector<256x128xf32>
    %6 = arith.addf %3, %5 : vector<256x128xf32>
    %cst = arith.constant 0.000000e+00 : f32
    %7 = vector.broadcast %cst : f32 to vector<256x128xf32>
    %8 = arith.cmpf ogt, %6, %7 : vector<256x128xf32>
    %cst_5 = arith.constant 2.000000e-01 : f32
    %9 = vector.broadcast %cst_5 : f32 to vector<256x128xf32>
    %10 = arith.mulf %9, %6 : vector<256x128xf32>
    %11 = arith.select %8, %6, %10 : vector<256x128xi1>, vector<256x128xf32>
    %c0_6 = arith.constant 0 : index
    %c0_7 = arith.constant 0 : index
    %12 = vector.load %arg4[%c0_6, %c0_7] : memref<256x128xf32, #tpu.memory_space<vmem>>, vector<256x128xf32>
    tpu.vector_store %arg4[%c0_6, %c0_7], %11 {strides = array<i32>} : memref<256x128xf32, #tpu.memory_space<vmem>>, vector<256x128xf32>,
    return
  }
  func.func @transform_0(%arg0: i32) -> (i32, i32) {
    %c0_i32 = arith.constant 0 : i32
    %c0_i32_0 = arith.constant 0 : i32
    return %arg0, %c0_i32 : i32, i32
  }
  func.func @transform_1(%arg0: i32) -> (i32, i32) {
    %c0_i32 = arith.constant 0 : i32
    %c0_i32_0 = arith.constant 0 : i32
    %c0_i32_1 = arith.constant 0 : i32
    return %c0_i32, %c0_i32_0 : i32, i32
  }
  func.func @transform_2(%arg0: i32) -> (i32, i32) {
    %c0_i32 = arith.constant 0 : i32
    %c0_i32_0 = arith.constant 0 : i32
    %c0_i32_1 = arith.constant 0 : i32
    return %c0_i32, %c0_i32_0 : i32, i32
  }
  func.func @transform_3(%arg0: i32) -> (i32, i32) {
    %c0_i32 = arith.constant 0 : i32
    %c0_i32_0 = arith.constant 0 : i32
    return %arg0, %c0_i32 : i32, i32
  }
}

module attributes {stable_mosaic.version = 11 : i64} {
  func.func @kernel(%arg0: i32, %arg1: i32, %arg2: memref<256x256xbf16, #tpu.memory_space<vmem>>, %arg3: memref<256x128xbf16, #tpu.memory_space<vmem>>, %arg4: memref<1x128xf32, #tpu.memory_space<vmem>>, %arg5: memref<256x128xf32, #tpu.memory_space<vmem>>, %arg6: memref<1x1x128xf32, #tpu.memory_space<vmem>>, %arg7: memref<1x1x128xf32, #tpu.memory_space<vmem>>, %arg8: memref<256x128xf32, #tpu.memory_space<vmem>>) attributes {dimension_semantics = [#tpu.dimension_semantics<parallel>, #tpu.dimension_semantics<arbitrary>], iteration_bounds = array<i64: 1, 1>, scalar_prefetch = 0 : i64, scratch_operands = 1 : i64, tpu.core_type = #tpu.core_type<tc>, window_params = [{transform_indices = @transform_0, window_bounds = array<i64: 256, 256>}, {transform_indices = @transform_1, window_bounds = array<i64: 256, 128>}, {pipeline_mode = #tpu.pipeline_mode<synchronous>, transform_indices = @transform_2, window_bounds = array<i64: 1, 128>}, {transform_indices = @transform_3, window_bounds = array<i64: 256, 128>}, {transform_indices = @transform_4, window_bounds = array<i64: 1, 1, 128>}, {transform_indices = @transform_5, window_bounds = array<i64: 1, 1, 128>}]} {
    %c0_i32 = arith.constant 0 : i32
    %0 = arith.cmpi eq, %arg1, %c0_i32 : i32
    %1 = arith.extui %0 : i1 to i32
    %c0_i32_0 = arith.constant 0 : i32
    %2 = arith.cmpi ne, %1, %c0_i32_0 : i32
    scf.if %2 {
      %cst_10 = arith.constant 0.000000e+00 : f32
      %12 = vector.broadcast %cst_10 : f32 to vector<256x128xf32>
      %c0_11 = arith.constant 0 : index
      %c0_12 = arith.constant 0 : index
      %13 = vector.load %arg8[%c0_11, %c0_12] : memref<256x128xf32, #tpu.memory_space<vmem>>, vector<256x128xf32>
      tpu.vector_store %arg8[%c0_11, %c0_12], %12 {strides = array<i32>} : memref<256x128xf32, #tpu.memory_space<vmem>>, vector<256x128xf32>,
    } else {
    }
    %c0 = arith.constant 0 : index
    %c0_1 = arith.constant 0 : index
    %3 = vector.load %arg8[%c0, %c0_1] : memref<256x128xf32, #tpu.memory_space<vmem>>, vector<256x128xf32>
    %c0_2 = arith.constant 0 : index
    %c0_3 = arith.constant 0 : index
    %4 = vector.load %arg2[%c0_2, %c0_3] : memref<256x256xbf16, #tpu.memory_space<vmem>>, vector<256x256xbf16>
    %c0_4 = arith.constant 0 : index
    %c0_5 = arith.constant 0 : index
    %5 = vector.load %arg3[%c0_4, %c0_5] : memref<256x128xbf16, #tpu.memory_space<vmem>>, vector<256x128xbf16>
    %cst = arith.constant dense<0.000000e+00> : vector<256x128xf32>
    %6 = tpu.matmul %4, %5, %cst {dimension_numbers = #tpu.dot_dimension_numbers<[1], [0], [0], [1], [0, 0, 1, 1], [], []>} : vector<256x256xbf16>, vector<256x128xbf16>, vector<256x128xf32> -> vector<256x128xf32>
    %7 = arith.addf %3, %6 : vector<256x128xf32>
    %c0_6 = arith.constant 0 : index
    %c0_7 = arith.constant 0 : index
    %8 = vector.load %arg8[%c0_6, %c0_7] : memref<256x128xf32, #tpu.memory_space<vmem>>, vector<256x128xf32>
    tpu.vector_store %arg8[%c0_6, %c0_7], %7 {strides = array<i32>} : memref<256x128xf32, #tpu.memory_space<vmem>>, vector<256x128xf32>,
    %c0_i32_8 = arith.constant 0 : i32
    %9 = arith.cmpi eq, %arg1, %c0_i32_8 : i32
    %10 = arith.extui %9 : i1 to i32
    %c0_i32_9 = arith.constant 0 : i32
    %11 = arith.cmpi ne, %10, %c0_i32_9 : i32
    scf.if %11 {
      %c0_10 = arith.constant 0 : index
      %c0_11 = arith.constant 0 : index
      %12 = vector.load %arg8[%c0_10, %c0_11] : memref<256x128xf32, #tpu.memory_space<vmem>>, vector<256x128xf32>
      %c0_12 = arith.constant 0 : index
      %c0_13 = arith.constant 0 : index
      %13 = vector.load %arg4[%c0_12, %c0_13] : memref<1x128xf32, #tpu.memory_space<vmem>>, vector<1x128xf32>
      %14 = vector.broadcast %13 : vector<1x128xf32> to vector<256x128xf32>
      %15 = arith.addf %12, %14 : vector<256x128xf32>
      %cst_14 = arith.constant dense<0.000000e+00> : vector<128xf32>
      %16 = vector.multi_reduction <add>, %15, %cst_14 [0] : vector<256x128xf32> to vector<128xf32>
      %17 = vector.shape_cast %16 : vector<128xf32> to vector<1x1x128xf32>
      %c0_15 = arith.constant 0 : index
      %c0_16 = arith.constant 0 : index
      %c0_17 = arith.constant 0 : index
      %18 = vector.load %arg6[%c0_15, %c0_16, %c0_17] : memref<1x1x128xf32, #tpu.memory_space<vmem>>, vector<1x1x128xf32>
      tpu.vector_store %arg6[%c0_15, %c0_16, %c0_17], %17 {strides = array<i32>} : memref<1x1x128xf32, #tpu.memory_space<vmem>>, vector<1x1x128xf32>,
      %19 = arith.mulf %15, %15 : vector<256x128xf32>
      %cst_18 = arith.constant dense<0.000000e+00> : vector<128xf32>
      %20 = vector.multi_reduction <add>, %19, %cst_18 [0] : vector<256x128xf32> to vector<128xf32>
      %21 = vector.shape_cast %20 : vector<128xf32> to vector<1x1x128xf32>
      %c0_19 = arith.constant 0 : index
      %c0_20 = arith.constant 0 : index
      %c0_21 = arith.constant 0 : index
      %22 = vector.load %arg7[%c0_19, %c0_20, %c0_21] : memref<1x1x128xf32, #tpu.memory_space<vmem>>, vector<1x1x128xf32>
      tpu.vector_store %arg7[%c0_19, %c0_20, %c0_21], %21 {strides = array<i32>} : memref<1x1x128xf32, #tpu.memory_space<vmem>>, vector<1x1x128xf32>,
      %c0_22 = arith.constant 0 : index
      %c0_23 = arith.constant 0 : index
      %23 = vector.load %arg5[%c0_22, %c0_23] : memref<256x128xf32, #tpu.memory_space<vmem>>, vector<256x128xf32>
      tpu.vector_store %arg5[%c0_22, %c0_23], %15 {strides = array<i32>} : memref<256x128xf32, #tpu.memory_space<vmem>>, vector<256x128xf32>,
    } else {
    }
    return
  }
  func.func @transform_0(%arg0: i32, %arg1: i32) -> (i32, i32) {
    %c0_i32 = arith.constant 0 : i32
    return %arg0, %arg1 : i32, i32
  }
  func.func @transform_1(%arg0: i32, %arg1: i32) -> (i32, i32) {
    %c0_i32 = arith.constant 0 : i32
    %c0_i32_0 = arith.constant 0 : i32
    return %arg1, %c0_i32 : i32, i32
  }
  func.func @transform_2(%arg0: i32, %arg1: i32) -> (i32, i32) {
    %c0_i32 = arith.constant 0 : i32
    %c0_i32_0 = arith.constant 0 : i32
    %c0_i32_1 = arith.constant 0 : i32
    return %c0_i32, %c0_i32_0 : i32, i32
  }
  func.func @transform_3(%arg0: i32, %arg1: i32) -> (i32, i32) {
    %c0_i32 = arith.constant 0 : i32
    %c0_i32_0 = arith.constant 0 : i32
    return %arg0, %c0_i32 : i32, i32
  }
  func.func @transform_4(%arg0: i32, %arg1: i32) -> (i32, i32, i32) {
    %c0_i32 = arith.constant 0 : i32
    %c0_i32_0 = arith.constant 0 : i32
    %c0_i32_1 = arith.constant 0 : i32
    return %arg0, %c0_i32, %c0_i32_0 : i32, i32, i32
  }
  func.func @transform_5(%arg0: i32, %arg1: i32) -> (i32, i32, i32) {
    %c0_i32 = arith.constant 0 : i32
    %c0_i32_0 = arith.constant 0 : i32
    %c0_i32_1 = arith.constant 0 : i32
    return %arg0, %c0_i32, %c0_i32_0 : i32, i32, i32
  }
}

module attributes {stable_mosaic.version = 11 : i64} {
  func.func @kernel(%arg0: i32, %arg1: i32, %arg2: memref<256x512xbf16, #tpu.memory_space<vmem>>, %arg3: memref<512x128xbf16, #tpu.memory_space<vmem>>, %arg4: memref<1x128xf32, #tpu.memory_space<vmem>>, %arg5: memref<256x128xf32, #tpu.memory_space<vmem>>, %arg6: memref<1x1x128xf32, #tpu.memory_space<vmem>>, %arg7: memref<1x1x128xf32, #tpu.memory_space<vmem>>, %arg8: memref<256x128xf32, #tpu.memory_space<vmem>>) attributes {dimension_semantics = [#tpu.dimension_semantics<parallel>, #tpu.dimension_semantics<arbitrary>], iteration_bounds = array<i64: 1, 1>, scalar_prefetch = 0 : i64, scratch_operands = 1 : i64, tpu.core_type = #tpu.core_type<tc>, window_params = [{transform_indices = @transform_0, window_bounds = array<i64: 256, 512>}, {transform_indices = @transform_1, window_bounds = array<i64: 512, 128>}, {pipeline_mode = #tpu.pipeline_mode<synchronous>, transform_indices = @transform_2, window_bounds = array<i64: 1, 128>}, {transform_indices = @transform_3, window_bounds = array<i64: 256, 128>}, {transform_indices = @transform_4, window_bounds = array<i64: 1, 1, 128>}, {transform_indices = @transform_5, window_bounds = array<i64: 1, 1, 128>}]} {
    %c0_i32 = arith.constant 0 : i32
    %0 = arith.cmpi eq, %arg1, %c0_i32 : i32
    %1 = arith.extui %0 : i1 to i32
    %c0_i32_0 = arith.constant 0 : i32
    %2 = arith.cmpi ne, %1, %c0_i32_0 : i32
    scf.if %2 {
      %cst_10 = arith.constant 0.000000e+00 : f32
      %12 = vector.broadcast %cst_10 : f32 to vector<256x128xf32>
      %c0_11 = arith.constant 0 : index
      %c0_12 = arith.constant 0 : index
      %13 = vector.load %arg8[%c0_11, %c0_12] : memref<256x128xf32, #tpu.memory_space<vmem>>, vector<256x128xf32>
      tpu.vector_store %arg8[%c0_11, %c0_12], %12 {strides = array<i32>} : memref<256x128xf32, #tpu.memory_space<vmem>>, vector<256x128xf32>,
    } else {
    }
    %c0 = arith.constant 0 : index
    %c0_1 = arith.constant 0 : index
    %3 = vector.load %arg8[%c0, %c0_1] : memref<256x128xf32, #tpu.memory_space<vmem>>, vector<256x128xf32>
    %c0_2 = arith.constant 0 : index
    %c0_3 = arith.constant 0 : index
    %4 = vector.load %arg2[%c0_2, %c0_3] : memref<256x512xbf16, #tpu.memory_space<vmem>>, vector<256x512xbf16>
    %c0_4 = arith.constant 0 : index
    %c0_5 = arith.constant 0 : index
    %5 = vector.load %arg3[%c0_4, %c0_5] : memref<512x128xbf16, #tpu.memory_space<vmem>>, vector<512x128xbf16>
    %cst = arith.constant dense<0.000000e+00> : vector<256x128xf32>
    %6 = tpu.matmul %4, %5, %cst {dimension_numbers = #tpu.dot_dimension_numbers<[1], [0], [0], [1], [0, 0, 1, 1], [], []>} : vector<256x512xbf16>, vector<512x128xbf16>, vector<256x128xf32> -> vector<256x128xf32>
    %7 = arith.addf %3, %6 : vector<256x128xf32>
    %c0_6 = arith.constant 0 : index
    %c0_7 = arith.constant 0 : index
    %8 = vector.load %arg8[%c0_6, %c0_7] : memref<256x128xf32, #tpu.memory_space<vmem>>, vector<256x128xf32>
    tpu.vector_store %arg8[%c0_6, %c0_7], %7 {strides = array<i32>} : memref<256x128xf32, #tpu.memory_space<vmem>>, vector<256x128xf32>,
    %c0_i32_8 = arith.constant 0 : i32
    %9 = arith.cmpi eq, %arg1, %c0_i32_8 : i32
    %10 = arith.extui %9 : i1 to i32
    %c0_i32_9 = arith.constant 0 : i32
    %11 = arith.cmpi ne, %10, %c0_i32_9 : i32
    scf.if %11 {
      %c0_10 = arith.constant 0 : index
      %c0_11 = arith.constant 0 : index
      %12 = vector.load %arg8[%c0_10, %c0_11] : memref<256x128xf32, #tpu.memory_space<vmem>>, vector<256x128xf32>
      %c0_12 = arith.constant 0 : index
      %c0_13 = arith.constant 0 : index
      %13 = vector.load %arg4[%c0_12, %c0_13] : memref<1x128xf32, #tpu.memory_space<vmem>>, vector<1x128xf32>
      %14 = vector.broadcast %13 : vector<1x128xf32> to vector<256x128xf32>
      %15 = arith.addf %12, %14 : vector<256x128xf32>
      %cst_14 = arith.constant dense<0.000000e+00> : vector<128xf32>
      %16 = vector.multi_reduction <add>, %15, %cst_14 [0] : vector<256x128xf32> to vector<128xf32>
      %17 = vector.shape_cast %16 : vector<128xf32> to vector<1x1x128xf32>
      %c0_15 = arith.constant 0 : index
      %c0_16 = arith.constant 0 : index
      %c0_17 = arith.constant 0 : index
      %18 = vector.load %arg6[%c0_15, %c0_16, %c0_17] : memref<1x1x128xf32, #tpu.memory_space<vmem>>, vector<1x1x128xf32>
      tpu.vector_store %arg6[%c0_15, %c0_16, %c0_17], %17 {strides = array<i32>} : memref<1x1x128xf32, #tpu.memory_space<vmem>>, vector<1x1x128xf32>,
      %19 = arith.mulf %15, %15 : vector<256x128xf32>
      %cst_18 = arith.constant dense<0.000000e+00> : vector<128xf32>
      %20 = vector.multi_reduction <add>, %19, %cst_18 [0] : vector<256x128xf32> to vector<128xf32>
      %21 = vector.shape_cast %20 : vector<128xf32> to vector<1x1x128xf32>
      %c0_19 = arith.constant 0 : index
      %c0_20 = arith.constant 0 : index
      %c0_21 = arith.constant 0 : index
      %22 = vector.load %arg7[%c0_19, %c0_20, %c0_21] : memref<1x1x128xf32, #tpu.memory_space<vmem>>, vector<1x1x128xf32>
      tpu.vector_store %arg7[%c0_19, %c0_20, %c0_21], %21 {strides = array<i32>} : memref<1x1x128xf32, #tpu.memory_space<vmem>>, vector<1x1x128xf32>,
      %c0_22 = arith.constant 0 : index
      %c0_23 = arith.constant 0 : index
      %23 = vector.load %arg5[%c0_22, %c0_23] : memref<256x128xf32, #tpu.memory_space<vmem>>, vector<256x128xf32>
      tpu.vector_store %arg5[%c0_22, %c0_23], %15 {strides = array<i32>} : memref<256x128xf32, #tpu.memory_space<vmem>>, vector<256x128xf32>,
    } else {
    }
    return
  }
  func.func @transform_0(%arg0: i32, %arg1: i32) -> (i32, i32) {
    %c0_i32 = arith.constant 0 : i32
    return %arg0, %arg1 : i32, i32
  }
  func.func @transform_1(%arg0: i32, %arg1: i32) -> (i32, i32) {
    %c0_i32 = arith.constant 0 : i32
    %c0_i32_0 = arith.constant 0 : i32
    return %arg1, %c0_i32 : i32, i32
  }
  func.func @transform_2(%arg0: i32, %arg1: i32) -> (i32, i32) {
    %c0_i32 = arith.constant 0 : i32
    %c0_i32_0 = arith.constant 0 : i32
    %c0_i32_1 = arith.constant 0 : i32
    return %c0_i32, %c0_i32_0 : i32, i32
  }
  func.func @transform_3(%arg0: i32, %arg1: i32) -> (i32, i32) {
    %c0_i32 = arith.constant 0 : i32
    %c0_i32_0 = arith.constant 0 : i32
    return %arg0, %c0_i32 : i32, i32
  }
  func.func @transform_4(%arg0: i32, %arg1: i32) -> (i32, i32, i32) {
    %c0_i32 = arith.constant 0 : i32
    %c0_i32_0 = arith.constant 0 : i32
    %c0_i32_1 = arith.constant 0 : i32
    return %arg0, %c0_i32, %c0_i32_0 : i32, i32, i32
  }
  func.func @transform_5(%arg0: i32, %arg1: i32) -> (i32, i32, i32) {
    %c0_i32 = arith.constant 0 : i32
    %c0_i32_0 = arith.constant 0 : i32
    %c0_i32_1 = arith.constant 0 : i32
    return %arg0, %c0_i32, %c0_i32_0 : i32, i32, i32
  }
}

module attributes {stable_mosaic.version = 11 : i64} {
  func.func @kernel(%arg0: i32, %arg1: i32, %arg2: memref<256x512xbf16, #tpu.memory_space<vmem>>, %arg3: memref<512x128xbf16, #tpu.memory_space<vmem>>, %arg4: memref<1x128xf32, #tpu.memory_space<vmem>>, %arg5: memref<256x128xf32, #tpu.memory_space<vmem>>, %arg6: memref<256x128xf32, #tpu.memory_space<vmem>>) attributes {dimension_semantics = [#tpu.dimension_semantics<parallel>, #tpu.dimension_semantics<arbitrary>], iteration_bounds = array<i64: 1, 2>, scalar_prefetch = 0 : i64, scratch_operands = 1 : i64, tpu.core_type = #tpu.core_type<tc>, window_params = [{transform_indices = @transform_0, window_bounds = array<i64: 256, 512>}, {transform_indices = @transform_1, window_bounds = array<i64: 512, 128>}, {pipeline_mode = #tpu.pipeline_mode<synchronous>, transform_indices = @transform_2, window_bounds = array<i64: 1, 128>}, {transform_indices = @transform_3, window_bounds = array<i64: 256, 128>}]} {
    %c0_i32 = arith.constant 0 : i32
    %0 = arith.cmpi eq, %arg1, %c0_i32 : i32
    %1 = arith.extui %0 : i1 to i32
    %c0_i32_0 = arith.constant 0 : i32
    %2 = arith.cmpi ne, %1, %c0_i32_0 : i32
    scf.if %2 {
      %cst_9 = arith.constant 0.000000e+00 : f32
      %12 = vector.broadcast %cst_9 : f32 to vector<256x128xf32>
      %c0_10 = arith.constant 0 : index
      %c0_11 = arith.constant 0 : index
      %13 = vector.load %arg6[%c0_10, %c0_11] : memref<256x128xf32, #tpu.memory_space<vmem>>, vector<256x128xf32>
      tpu.vector_store %arg6[%c0_10, %c0_11], %12 {strides = array<i32>} : memref<256x128xf32, #tpu.memory_space<vmem>>, vector<256x128xf32>,
    } else {
    }
    %c0 = arith.constant 0 : index
    %c0_1 = arith.constant 0 : index
    %3 = vector.load %arg6[%c0, %c0_1] : memref<256x128xf32, #tpu.memory_space<vmem>>, vector<256x128xf32>
    %c0_2 = arith.constant 0 : index
    %c0_3 = arith.constant 0 : index
    %4 = vector.load %arg2[%c0_2, %c0_3] : memref<256x512xbf16, #tpu.memory_space<vmem>>, vector<256x512xbf16>
    %c0_4 = arith.constant 0 : index
    %c0_5 = arith.constant 0 : index
    %5 = vector.load %arg3[%c0_4, %c0_5] : memref<512x128xbf16, #tpu.memory_space<vmem>>, vector<512x128xbf16>
    %cst = arith.constant dense<0.000000e+00> : vector<256x128xf32>
    %6 = tpu.matmul %4, %5, %cst {dimension_numbers = #tpu.dot_dimension_numbers<[1], [0], [0], [1], [0, 0, 1, 1], [], []>} : vector<256x512xbf16>, vector<512x128xbf16>, vector<256x128xf32> -> vector<256x128xf32>
    %7 = arith.addf %3, %6 : vector<256x128xf32>
    %c0_6 = arith.constant 0 : index
    %c0_7 = arith.constant 0 : index
    %8 = vector.load %arg6[%c0_6, %c0_7] : memref<256x128xf32, #tpu.memory_space<vmem>>, vector<256x128xf32>
    tpu.vector_store %arg6[%c0_6, %c0_7], %7 {strides = array<i32>} : memref<256x128xf32, #tpu.memory_space<vmem>>, vector<256x128xf32>,
    %c1_i32 = arith.constant 1 : i32
    %9 = arith.cmpi eq, %arg1, %c1_i32 : i32
    %10 = arith.extui %9 : i1 to i32
    %c0_i32_8 = arith.constant 0 : i32
    %11 = arith.cmpi ne, %10, %c0_i32_8 : i32
    scf.if %11 {
      %c0_9 = arith.constant 0 : index
      %c0_10 = arith.constant 0 : index
      %12 = vector.load %arg6[%c0_9, %c0_10] : memref<256x128xf32, #tpu.memory_space<vmem>>, vector<256x128xf32>
      %c0_11 = arith.constant 0 : index
      %c0_12 = arith.constant 0 : index
      %13 = vector.load %arg4[%c0_11, %c0_12] : memref<1x128xf32, #tpu.memory_space<vmem>>, vector<1x128xf32>
      %14 = vector.broadcast %13 : vector<1x128xf32> to vector<256x128xf32>
      %15 = arith.addf %12, %14 : vector<256x128xf32>
      %c0_13 = arith.constant 0 : index
      %c0_14 = arith.constant 0 : index
      %16 = vector.load %arg5[%c0_13, %c0_14] : memref<256x128xf32, #tpu.memory_space<vmem>>, vector<256x128xf32>
      tpu.vector_store %arg5[%c0_13, %c0_14], %15 {strides = array<i32>} : memref<256x128xf32, #tpu.memory_space<vmem>>, vector<256x128xf32>,
    } else {
    }
    return
  }
  func.func @transform_0(%arg0: i32, %arg1: i32) -> (i32, i32) {
    %c0_i32 = arith.constant 0 : i32
    return %arg0, %arg1 : i32, i32
  }
  func.func @transform_1(%arg0: i32, %arg1: i32) -> (i32, i32) {
    %c0_i32 = arith.constant 0 : i32
    %c0_i32_0 = arith.constant 0 : i32
    return %arg1, %c0_i32 : i32, i32
  }
  func.func @transform_2(%arg0: i32, %arg1: i32) -> (i32, i32) {
    %c0_i32 = arith.constant 0 : i32
    %c0_i32_0 = arith.constant 0 : i32
    %c0_i32_1 = arith.constant 0 : i32
    return %c0_i32, %c0_i32_0 : i32, i32
  }
  func.func @transform_3(%arg0: i32, %arg1: i32) -> (i32, i32) {
    %c0_i32 = arith.constant 0 : i32
    %c0_i32_0 = arith.constant 0 : i32
    return %arg0, %c0_i32 : i32, i32
  }
}

</mosaic_0001>

<bundles_post_ra>
// kernel: _lambda_.8
= control target key start
LH: loop header
LB: loop body
LE: loop exit
PB: predicated region body
PF: predicated region fallthrough
CT: control target
= control target key end

     0   :  { %s1207_s12 = smov 0   ;;  %s1209_s13 = smov 0   ;;  %s1357_s0 = inlined_call_operand.vmem [shape: bf16[512,128], index: 0, kind: input, shape index: {}]   ;;  %s1358_s1 = inlined_call_operand.vmem [shape: bf16[128,128], index: 1, kind: input, shape index: {}]   ;;  %s1359_s2 = inlined_call_operand.vmem [shape: f32[1,128], index: 2, kind: input, shape index: {}]   ;;  %s1360_s3 = inlined_call_operand.vmem [shape: f32[512,128], index: 3, kind: output, shape index: {}]  }
   0x1   :  { %s1211_s14 = smov 0  }
   0x2 LB: > { %s25_s15 = sadd.s32 1, %s1181_s13  ;;  %p995_p0 = scmp.ge.s32.totalorder %s1185_s14, 1  ;;  %s1185_s14 = sphi %s1211_s14, %s13_s14   ;;  %s1181_s13 = sphi %s1209_s13, %s1362_s13   ;;  %s1177_s12 = sphi %s1207_s12, %s1361_s12  }
   0x3   : > { %p27_p1 = scmp.ge.s32.totalorder %s25_s15, 2  ;;  %p166_p2 = scmp.lt.s32.totalorder %s1185_s14, 3 }
   0x5   : > { %s1364_s15 = smov (%p27_p1, %s25_s15), 0  ;;  %p167_p3 = pnand %p995_p0, %p166_p2 }
   0x6   : > { %v1139_v0 = vld [vmem:[%s1358_s1] sm:$0xff] (!%p167_p3)   ;;  %s996_s18 = sshll.u32 (!%p167_p3), %s1177_s12, 5  ;;  %v1140_v1 = vld [vmem:[%s1358_s1 + $0x8] sm:$0xff] (!%p167_p3)   ;;  %v1141_v2 = vld [vmem:[%s1358_s1 + $0x10] sm:$0xff] (!%p167_p3)  }
   0x7   : > { %170 = sbr.rel (%p167_p3) target bundleno = 288 (0x120), region = 32  ;;  %p199_p4 = scmp.lt.s32.totalorder (!%p167_p3), %s996_s18, 63  ;;  %1051 = vmatprep.subr.bf16.mxu0 (!%p167_p3), %v1139_v0  ;;  %1099 = vmatprep.subr.bf16.mxu1 (!%p167_p3), %v1139_v0  ;;  %v1142_v3 = vld [vmem:[%s1358_s1 + $0x18] sm:$0xff] (!%p167_p3)   ;;  %v1143_v6 = vld [vmem:[%s1358_s1 + $0x20] sm:$0xff] (!%p167_p3)   ;;  %v1144_v7 = vld [vmem:[%s1358_s1 + $0x28] sm:$0xff] (!%p167_p3)  }
   0x8   : > { %1052 = vmatpush3.bf16.msra.mxu0 (!%p167_p3), %v1139_v0  ;;  %1107 = vmatpush3.bf16.msra.mxu1 (!%p167_p3), %v1139_v0  ;;  %v1145_v8 = vld [vmem:[%s1358_s1 + $0x30] sm:$0xff] (!%p167_p3)   ;;  %v1146_v9 = vld [vmem:[%s1358_s1 + $0x38] sm:$0xff] (!%p167_p3)   ;;  %v1276_v24 = vld [vmem:[%s1359_s2] ss:$0 sm:$0xff] (!%p167_p3) }
   0x9   : > { %1053 = vmatprep.subr.bf16.mxu0 (!%p167_p3), %v1140_v1  ;;  %1100 = vmatprep.subr.bf16.mxu1 (!%p167_p3), %v1140_v1 }
   0xc   : > { %1054 = vmatpush3.bf16.msra.mxu0 (!%p167_p3), %v1140_v1  ;;  %1108 = vmatpush3.bf16.msra.mxu1 (!%p167_p3), %v1140_v1 }
   0xd   : > { %1055 = vmatprep.subr.bf16.mxu0 (!%p167_p3), %v1141_v2  ;;  %1101 = vmatprep.subr.bf16.mxu1 (!%p167_p3), %v1141_v2 }
   0xe   : > { %s1366_s18 = smov (!%p199_p4, %s996_s18), 63 }
   0xf   : > { %s997_s23 = sshll.u32 %s1366_s18, 2  ;;  %s999_s12 = sshll.u32 %s1366_s18, 3 }
  0x10   : > { %s1240_s26 = scalar_lea.vmem %s1357_s0, %s997_s23  ;;  %1056 = vmatpush3.bf16.msra.mxu0 %v1141_v2  ;;  %1109 = vmatpush3.bf16.msra.mxu1 %v1141_v2  ;;  %s1286_s19 = scalar_lea.vmem %s1360_s3, %s999_s12 }
  0x11   : > { %v1147_v4 = vld [vmem:[%s1240_s26] sm:$0xff]   ;;  %1057 = vmatprep.subr.bf16.mxu0 %v1142_v3  ;;  %1102 = vmatprep.subr.bf16.mxu1 %v1142_v3  ;;  %v1149_v10 = vld [vmem:[%s1240_s26 + $0x8] sm:$0xff]   ;;  %v1151_v12 = vld [vmem:[%s1240_s26 + $0x10] sm:$0xff]  }
  0x12   : > { %v1148_v5 = vld [vmem:[%s1240_s26 + $0x40] sm:$0xff]   ;;  %1067 = vmatprep.mubr.bf16.mxu0 %v1147_v4  ;;  %v1150_v11 = vld [vmem:[%s1240_s26 + $0x48] sm:$0xff]   ;;  %v1152_v13 = vld [vmem:[%s1240_s26 + $0x50] sm:$0xff]  }
  0x13   : > { %1083 = vmatprep.mubr.bf16.mxu1 %v1148_v5  ;;  %v1153_v14 = vld [vmem:[%s1240_s26 + $0x18] sm:$0xff]   ;;  %v1155_v16 = vld [vmem:[%s1240_s26 + $0x20] sm:$0xff]   ;;  %v1157_v18 = vld [vmem:[%s1240_s26 + $0x28] sm:$0xff]  }
  0x14   : > { %1058 = vmatpush3.bf16.msra.mxu0 %v1142_v3  ;;  %1110 = vmatpush3.bf16.msra.mxu1 %v1142_v3  ;;  %v1154_v15 = vld [vmem:[%s1240_s26 + $0x58] sm:$0xff]   ;;  %v1156_v17 = vld [vmem:[%s1240_s26 + $0x60] sm:$0xff]   ;;  %v1158_v19 = vld [vmem:[%s1240_s26 + $0x68] sm:$0xff]  }
  0x15   : > { %1059 = vmatprep.subr.bf16.mxu0 %v1143_v6  ;;  %1103 = vmatprep.subr.bf16.mxu1 %v1143_v6  ;;  %v1159_v20 = vld [vmem:[%s1240_s26 + $0x30] sm:$0xff]   ;;  %v1161_v22 = vld [vmem:[%s1240_s26 + $0x38] sm:$0xff]  }
  0x16   : > { %v1160_v21 = vld [vmem:[%s1240_s26 + $0x70] sm:$0xff]   ;;  %v1162_v23 = vld [vmem:[%s1240_s26 + $0x78] sm:$0xff]  }
  0x18   : > { %1060 = vmatpush3.bf16.msra.mxu0 %v1143_v6  ;;  %1111 = vmatpush3.bf16.msra.mxu1 %v1143_v6 }
  0x19   : > { %1061 = vmatprep.subr.bf16.mxu0 %v1144_v7  ;;  %1104 = vmatprep.subr.bf16.mxu1 %v1144_v7 }
  0x1c   : > { %1062 = vmatpush3.bf16.msra.mxu0 %v1144_v7  ;;  %1112 = vmatpush3.bf16.msra.mxu1 %v1144_v7 }
  0x1d   : > { %1063 = vmatprep.subr.bf16.mxu0 %v1145_v8  ;;  %1105 = vmatprep.subr.bf16.mxu1 %v1145_v8 }
  0x20   : > { %1064 = vmatpush3.bf16.msra.mxu0 %v1145_v8  ;;  %1113 = vmatpush3.bf16.msra.mxu1 %v1145_v8 }
  0x21   : > { %1065 = vmatprep.subr.bf16.mxu0 %v1146_v9  ;;  %1106 = vmatprep.subr.bf16.mxu1 %v1146_v9 }
  0x24   : > { %1066 = vmatpush3.bf16.msra.mxu0 %v1146_v9  ;;  %1114 = vmatpush3.bf16.msra.mxu1 %v1146_v9 }
  0x27   : > { %1068 = vmatmul.mubr.bf16.vlgmr.msra.gmra.mrb[0].mxu0 %v1149_v10  ;;  %1084 = vmatmul.mubr.bf16.vlgmr.msra.gmra.mrb[0].mxu1 %v1150_v11 }
  0x28   : > { %1071 = vmatprep.mubr.bf16.mxu0 %v1151_v12  ;;  %1087 = vmatprep.mubr.bf16.mxu1 %v1152_v13 }
  0x2f   : > { %1072 = vmatmul.mubr.bf16.gmra.mrb[4].mxu0 %v1153_v14  ;;  %1088 = vmatmul.mubr.bf16.gmra.mrb[4].mxu1 %v1154_v15 }
  0x30   : > { %1075 = vmatprep.mubr.bf16.mxu0 %v1155_v16  ;;  %1091 = vmatprep.mubr.bf16.mxu1 %v1156_v17 }
  0x37   : > { %1076 = vmatmul.mubr.bf16.gmra.mrb[8].mxu0 %v1157_v18  ;;  %1092 = vmatmul.mubr.bf16.gmra.mrb[8].mxu1 %v1158_v19 }
  0x38   : > { %1079 = vmatprep.mubr.bf16.mxu0 %v1159_v20  ;;  %1095 = vmatprep.mubr.bf16.mxu1 %v1160_v21 }
  0x3f   : > { %1080 = vmatmul.mubr.bf16.gmra.mrb[12].mxu0 %v1161_v22  ;;  %1096 = vmatmul.mubr.bf16.gmra.mrb[12].mxu1 %v1162_v23 }
  0xfa   : > { %v1069_v25 = vpop.f32.mrb[0].mxu0  ;;  %v1085_v26 = vpop.f32.mrb[0].mxu1 }
  0xfb   : > { %v749_v27 = vadd.f32 %v1069_v25, %v1276_v24  ;;  %v765_v28 = vadd.f32 %v1085_v26, %v1276_v24  ;;  %v514_v29 = vpop.f32.mrb[1].mxu0  ;;  %v578_v30 = vpop.f32.mrb[1].mxu1 }
  0xfc   : > { %v747_v31 = vadd.f32 %v1276_v24, %v514_v29  ;;  %v763_v32 = vadd.f32 %v1276_v24, %v578_v30  ;;  %v1070_v33 = vpop.f32.mrb[2].mxu0  ;;  %v1086_v34 = vpop.f32.mrb[2].mxu1 }
  0xfd   : > { %vm781_vm0 = vcmp.gt.f32.partialorder %v749_v27, 0.0  ;;  %v813_v35 = vmul.f32 0.2, %v749_v27  ;;  %vm797_vm1 = vcmp.gt.f32.partialorder %v765_v28, 0.0  ;;  %v829_v36 = vmul.f32 0.2, %v765_v28 }
  0xfe   : > { %vm779_vm2 = vcmp.gt.f32.partialorder %v747_v31, 0.0  ;;  %v811_v37 = vmul.f32 0.2, %v747_v31  ;;  %vm795_vm3 = vcmp.gt.f32.partialorder %v763_v32, 0.0  ;;  %v827_v38 = vmul.f32 0.2, %v763_v32 }
  0xff   : > { %v845_v39 = vsel %vm781_vm0, %v749_v27, %v813_v35  ;;  %v861_v40 = vsel %vm797_vm1, %v765_v28, %v829_v36  ;;  %v750_v41 = vadd.f32 %v1070_v33, %v1276_v24  ;;  %v766_v42 = vadd.f32 %v1086_v34, %v1276_v24  ;;  %v517_v43 = vpop.f32.mrb[3].mxu0  ;;  %v581_v44 = vpop.f32.mrb[3].mxu1 }
 0x100   : > { %877 = vst [vmem:[%s1286_s19 + $0x10] sm:$0xff] %v845_v39  ;;  %893 = vst [vmem:[%s1286_s19 + $0x90] sm:$0xff] %v861_v40  ;;  %v843_v45 = vsel %vm779_vm2, %v747_v31, %v811_v37  ;;  %v859_v46 = vsel %vm795_vm3, %v763_v32, %v827_v38  ;;  %v748_v47 = vadd.f32 %v1276_v24, %v517_v43 }
 0x101   : > { %v764_v48 = vadd.f32 %v1276_v24, %v581_v44  ;;  %875 = vst [vmem:[%s1286_s19] sm:$0xff] %v843_v45  ;;  %891 = vst [vmem:[%s1286_s19 + $0x80] sm:$0xff] %v859_v46  ;;  %vm782_vm4 = vcmp.gt.f32.partialorder %v750_v41, 0.0  ;;  %v814_v49 = vmul.f32 0.2, %v750_v41  ;;  %vm798_vm5 = vcmp.gt.f32.partialorder %v766_v42, 0.0 }
 0x102   : > { %v830_v50 = vmul.f32 0.2, %v766_v42  ;;  %vm780_vm6 = vcmp.gt.f32.partialorder %v748_v47, 0.0  ;;  %v812_v51 = vmul.f32 0.2, %v748_v47  ;;  %v1073_v55 = vpop.f32.mrb[4].mxu0 }
 0x103   : > { %vm796_vm7 = vcmp.gt.f32.partialorder %v764_v48, 0.0  ;;  %v828_v52 = vmul.f32 0.2, %v764_v48  ;;  %v846_v53 = vsel %vm782_vm4, %v750_v41, %v814_v49  ;;  %v1089_v56 = vpop.f32.mrb[4].mxu1  ;;  %v753_v59 = vadd.f32 %v1073_v55, %v1276_v24  ;;  %v530_v61 = vpop.f32.mrb[5].mxu0 }
 0x104   : > { %v862_v54 = vsel %vm798_vm5, %v766_v42, %v830_v50  ;;  %878 = vst [vmem:[%s1286_s19 + $0x18] sm:$0xff] %v846_v53  ;;  %v844_v57 = vsel %vm780_vm6, %v748_v47, %v812_v51  ;;  %v769_v60 = vadd.f32 %v1089_v56, %v1276_v24  ;;  %v594_v62 = vpop.f32.mrb[5].mxu1  ;;  %v751_v63 = vadd.f32 %v1276_v24, %v530_v61  ;;  %v1074_v1 = vpop.f32.mrb[6].mxu0 }
 0x105   : > { %894 = vst [vmem:[%s1286_s19 + $0x98] sm:$0xff] %v862_v54  ;;  %v860_v58 = vsel %vm796_vm7, %v764_v48, %v828_v52  ;;  %876 = vst [vmem:[%s1286_s19 + $0x8] sm:$0xff] %v844_v57  ;;  %v767_v0 = vadd.f32 %v1276_v24, %v594_v62  ;;  %v1090_v2 = vpop.f32.mrb[6].mxu1  ;;  %vm785_vm8 = vcmp.gt.f32.partialorder %v753_v59, 0.0  ;;  %v817_v3 = vmul.f32 0.2, %v753_v59 }
 0x106   : > { %892 = vst [vmem:[%s1286_s19 + $0x88] sm:$0xff] %v860_v58  ;;  %vm801_vm9 = vcmp.gt.f32.partialorder %v769_v60, 0.0  ;;  %v833_v4 = vmul.f32 0.2, %v769_v60  ;;  %vm783_vm10 = vcmp.gt.f32.partialorder %v751_v63, 0.0  ;;  %v754_v9 = vadd.f32 %v1074_v1, %v1276_v24  ;;  %v533_v11 = vpop.f32.mrb[7].mxu0 }
 0x107   : > { %v815_v5 = vmul.f32 0.2, %v751_v63  ;;  %vm799_vm11 = vcmp.gt.f32.partialorder %v767_v0, 0.0  ;;  %v831_v6 = vmul.f32 0.2, %v767_v0  ;;  %v849_v7 = vsel %vm785_vm8, %v753_v59, %v817_v3  ;;  %v597_v12 = vpop.f32.mrb[7].mxu1 }
 0x108   : > { %v865_v8 = vsel %vm801_vm9, %v769_v60, %v833_v4  ;;  %v770_v10 = vadd.f32 %v1090_v2, %v1276_v24  ;;  %881 = vst [vmem:[%s1286_s19 + $0x30] sm:$0xff] %v849_v7  ;;  %v752_v15 = vadd.f32 %v1276_v24, %v533_v11  ;;  %v768_v16 = vadd.f32 %v1276_v24, %v597_v12 }
 0x109   : > { %897 = vst [vmem:[%s1286_s19 + $0xb0] sm:$0xff] %v865_v8  ;;  %v847_v13 = vsel %vm783_vm10, %v751_v63, %v815_v5  ;;  %v863_v14 = vsel %vm799_vm11, %v767_v0, %v831_v6  ;;  %vm786_vm12 = vcmp.gt.f32.partialorder %v754_v9, 0.0  ;;  %v818_v17 = vmul.f32 0.2, %v754_v9 }
 0x10a   : > { %879 = vst [vmem:[%s1286_s19 + $0x20] sm:$0xff] %v847_v13  ;;  %895 = vst [vmem:[%s1286_s19 + $0xa0] sm:$0xff] %v863_v14  ;;  %vm802_vm13 = vcmp.gt.f32.partialorder %v770_v10, 0.0  ;;  %v834_v18 = vmul.f32 0.2, %v770_v10  ;;  %vm784_vm14 = vcmp.gt.f32.partialorder %v752_v15, 0.0 }
 0x10b   : > { %v816_v19 = vmul.f32 0.2, %v752_v15  ;;  %vm800_vm15 = vcmp.gt.f32.partialorder %v768_v16, 0.0  ;;  %v832_v20 = vmul.f32 0.2, %v768_v16  ;;  %v850_v21 = vsel %vm786_vm12, %v754_v9, %v818_v17  ;;  %v1077_v23 = vpop.f32.mrb[8].mxu0 }
 0x10c   : > { %v866_v22 = vsel %vm802_vm13, %v770_v10, %v834_v18  ;;  %v1093_v25 = vpop.f32.mrb[8].mxu1  ;;  %882 = vst [vmem:[%s1286_s19 + $0x38] sm:$0xff] %v850_v21  ;;  %v757_v28 = vadd.f32 %v1077_v23, %v1276_v24  ;;  %v546_v30 = vpop.f32.mrb[9].mxu0 }
 0x10d   : > { %898 = vst [vmem:[%s1286_s19 + $0xb8] sm:$0xff] %v866_v22  ;;  %v848_v26 = vsel %vm784_vm14, %v752_v15, %v816_v19  ;;  %v864_v27 = vsel %vm800_vm15, %v768_v16, %v832_v20  ;;  %v773_v29 = vadd.f32 %v1093_v25, %v1276_v24  ;;  %v610_v31 = vpop.f32.mrb[9].mxu1  ;;  %v755_v32 = vadd.f32 %v1276_v24, %v546_v30  ;;  %v1078_v34 = vpop.f32.mrb[10].mxu0 }
 0x10e   : > { %880 = vst [vmem:[%s1286_s19 + $0x28] sm:$0xff] %v848_v26  ;;  %896 = vst [vmem:[%s1286_s19 + $0xa8] sm:$0xff] %v864_v27  ;;  %v771_v33 = vadd.f32 %v1276_v24, %v610_v31  ;;  %v1094_v35 = vpop.f32.mrb[10].mxu1  ;;  %vm789_vm0 = vcmp.gt.f32.partialorder %v757_v28, 0.0  ;;  %v821_v36 = vmul.f32 0.2, %v757_v28  ;;  %v758_v42 = vadd.f32 %v1078_v34, %v1276_v24 }
 0x10f   : > { %vm805_vm1 = vcmp.gt.f32.partialorder %v773_v29, 0.0  ;;  %v837_v37 = vmul.f32 0.2, %v773_v29  ;;  %vm787_vm2 = vcmp.gt.f32.partialorder %v755_v32, 0.0  ;;  %v819_v38 = vmul.f32 0.2, %v755_v32 }
 0x110   : > { %vm803_vm3 = vcmp.gt.f32.partialorder %v771_v33, 0.0  ;;  %v835_v39 = vmul.f32 0.2, %v771_v33  ;;  %v853_v40 = vsel %vm789_vm0, %v757_v28, %v821_v36  ;;  %v774_v43 = vadd.f32 %v1094_v35, %v1276_v24  ;;  %v549_v44 = vpop.f32.mrb[11].mxu0  ;;  %v613_v45 = vpop.f32.mrb[11].mxu1 }
 0x111   : > { %v869_v41 = vsel %vm805_vm1, %v773_v29, %v837_v37  ;;  %885 = vst [vmem:[%s1286_s19 + $0x50] sm:$0xff] %v853_v40  ;;  %v851_v46 = vsel %vm787_vm2, %v755_v32, %v819_v38  ;;  %v756_v48 = vadd.f32 %v1276_v24, %v549_v44  ;;  %v772_v49 = vadd.f32 %v1276_v24, %v613_v45 }
 0x112   : > { %901 = vst [vmem:[%s1286_s19 + $0xd0] sm:$0xff] %v869_v41  ;;  %v867_v47 = vsel %vm803_vm3, %v771_v33, %v835_v39  ;;  %v1081_v50 = vpop.f32.mrb[12].mxu0  ;;  %v1097_v51 = vpop.f32.mrb[12].mxu1  ;;  %883 = vst [vmem:[%s1286_s19 + $0x40] sm:$0xff] %v851_v46  ;;  %vm790_vm4 = vcmp.gt.f32.partialorder %v758_v42, 0.0  ;;  %vm806_vm5 = vcmp.gt.f32.partialorder %v774_v43, 0.0 }
 0x113   : > { %899 = vst [vmem:[%s1286_s19 + $0xc0] sm:$0xff] %v867_v47  ;;  %v822_v52 = vmul.f32 0.2, %v758_v42  ;;  %v838_v53 = vmul.f32 0.2, %v774_v43  ;;  %vm788_vm6 = vcmp.gt.f32.partialorder %v756_v48, 0.0  ;;  %v761_v58 = vadd.f32 %v1081_v50, %v1276_v24 }
 0x114   : > { %v820_v54 = vmul.f32 0.2, %v756_v48  ;;  %vm804_vm7 = vcmp.gt.f32.partialorder %v772_v49, 0.0  ;;  %v836_v55 = vmul.f32 0.2, %v772_v49  ;;  %v777_v59 = vadd.f32 %v1097_v51, %v1276_v24  ;;  %v562_v60 = vpop.f32.mrb[13].mxu0 }
 0x115   : > { %v854_v56 = vsel %vm790_vm4, %v758_v42, %v822_v52  ;;  %v870_v57 = vsel %vm806_vm5, %v774_v43, %v838_v53  ;;  %v626_v61 = vpop.f32.mrb[13].mxu1  ;;  %v759_v0 = vadd.f32 %v1276_v24, %v562_v60  ;;  %v1082_v2 = vpop.f32.mrb[14].mxu0  ;;  %vm793_vm8 = vcmp.gt.f32.partialorder %v761_v58, 0.0 }
 0x116   : > { %886 = vst [vmem:[%s1286_s19 + $0x58] sm:$0xff] %v854_v56  ;;  %902 = vst [vmem:[%s1286_s19 + $0xd8] sm:$0xff] %v870_v57  ;;  %v852_v62 = vsel %vm788_vm6, %v756_v48, %v820_v54  ;;  %v868_v63 = vsel %vm804_vm7, %v772_v49, %v836_v55  ;;  %v775_v1 = vadd.f32 %v1276_v24, %v626_v61  ;;  %v1098_v3 = vpop.f32.mrb[14].mxu1  ;;  %v825_v4 = vmul.f32 0.2, %v761_v58  ;;  %v565_v12 = vpop.f32.mrb[15].mxu0 }
 0x117   : > { %884 = vst [vmem:[%s1286_s19 + $0x48] sm:$0xff] %v852_v62  ;;  %900 = vst [vmem:[%s1286_s19 + $0xc8] sm:$0xff] %v868_v63  ;;  %vm809_vm9 = vcmp.gt.f32.partialorder %v777_v59, 0.0  ;;  %v841_v5 = vmul.f32 0.2, %v777_v59  ;;  %vm791_vm10 = vcmp.gt.f32.partialorder %v759_v0, 0.0  ;;  %v762_v10 = vadd.f32 %v1082_v2, %v1276_v24 }
 0x118   : > { %v823_v6 = vmul.f32 0.2, %v759_v0  ;;  %vm807_vm11 = vcmp.gt.f32.partialorder %v775_v1, 0.0  ;;  %v839_v7 = vmul.f32 0.2, %v775_v1  ;;  %v857_v8 = vsel %vm793_vm8, %v761_v58, %v825_v4  ;;  %v629_v13 = vpop.f32.mrb[15].mxu1 }
 0x119   : > { %v873_v9 = vsel %vm809_vm9, %v777_v59, %v841_v5  ;;  %v778_v11 = vadd.f32 %v1098_v3, %v1276_v24  ;;  %889 = vst [vmem:[%s1286_s19 + $0x70] sm:$0xff] %v857_v8  ;;  %v760_v16 = vadd.f32 %v1276_v24, %v565_v12  ;;  %v776_v17 = vadd.f32 %v1276_v24, %v629_v13 }
 0x11a   : > { %905 = vst [vmem:[%s1286_s19 + $0xf0] sm:$0xff] %v873_v9  ;;  %v855_v14 = vsel %vm791_vm10, %v759_v0, %v823_v6  ;;  %v871_v15 = vsel %vm807_vm11, %v775_v1, %v839_v7  ;;  %vm794_vm12 = vcmp.gt.f32.partialorder %v762_v10, 0.0  ;;  %v826_v18 = vmul.f32 0.2, %v762_v10 }
 0x11b   : > { %887 = vst [vmem:[%s1286_s19 + $0x60] sm:$0xff] %v855_v14  ;;  %903 = vst [vmem:[%s1286_s19 + $0xe0] sm:$0xff] %v871_v15  ;;  %vm810_vm13 = vcmp.gt.f32.partialorder %v778_v11, 0.0  ;;  %v842_v19 = vmul.f32 0.2, %v778_v11  ;;  %vm792_vm14 = vcmp.gt.f32.partialorder %v760_v16, 0.0 }
 0x11c   : > { %v824_v20 = vmul.f32 0.2, %v760_v16  ;;  %vm808_vm15 = vcmp.gt.f32.partialorder %v776_v17, 0.0  ;;  %v840_v21 = vmul.f32 0.2, %v776_v17  ;;  %v858_v22 = vsel %vm794_vm12, %v762_v10, %v826_v18 }
 0x11d   : > { %v874_v23 = vsel %vm810_vm13, %v778_v11, %v842_v19  ;;  %890 = vst [vmem:[%s1286_s19 + $0x78] sm:$0xff] %v858_v22 }
 0x11e   : > { %906 = vst [vmem:[%s1286_s19 + $0xf8] sm:$0xff] %v874_v23  ;;  %v856_v25 = vsel %vm792_vm14, %v760_v16, %v824_v20  ;;  %v872_v26 = vsel %vm808_vm15, %v776_v17, %v840_v21 }
 0x11f   : > { %888 = vst [vmem:[%s1286_s19 + $0x68] sm:$0xff] %v856_v25  ;;  %904 = vst [vmem:[%s1286_s19 + $0xe8] sm:$0xff] %v872_v26 }
 0x120 PF: > { %s13_s14 = sadd.s32 1, %s1185_s14   ;;  %s1361_s12 = smov %s1181_s13 }
 0x121   : > { %p10_p5 = scmp.ge.s32.totalorder %s13_s14, 4   ;;  %s1362_s13 = smov %s1364_s15 }
 0x123   :  { %12 = sbr.rel (!%p10_p5) target bundleno = 2 (0x2), region = 73 }

// kernel: _lambda_.9
= control target key start
LH: loop header
LB: loop body
LE: loop exit
PB: predicated region body
PF: predicated region fallthrough
CT: control target
= control target key end

     0   :  { %s1197_s1 = inlined_call_operand.vmem [shape: bf16[128,128], index: 1, kind: input, shape index: {}]   ;;  %s1198_s0 = inlined_call_operand.vmem [shape: bf16[256,128], index: 0, kind: input, shape index: {}]   ;;  %s1199_s2 = inlined_call_operand.vmem [shape: f32[1,128], index: 2, kind: input, shape index: {}]   ;;  %s1200_s3 = inlined_call_operand.vmem [shape: f32[256,128], index: 3, kind: output, shape index: {0}]   ;;  %s1201_s4 = inlined_call_operand.vmem [shape: f32[1,1,128], index: 4, kind: output, shape index: {1}]   ;;  %s1202_s5 = inlined_call_operand.vmem [shape: f32[1,1,128], index: 5, kind: output, shape index: {2}]  }
   0x1   :  { %v842_v0 = vld [vmem:[%s1197_s1] sm:$0xff]   ;;  %v843_v1 = vld [vmem:[%s1197_s1 + $0x8] sm:$0xff]   ;;  %v844_v2 = vld [vmem:[%s1197_s1 + $0x10] sm:$0xff]  }
   0x2   :  { %778 = vmatprep.subr.bf16.mxu0 %v842_v0  ;;  %826 = vmatprep.subr.bf16.mxu1 %v842_v0  ;;  %v845_v3 = vld [vmem:[%s1197_s1 + $0x18] sm:$0xff]   ;;  %v850_v4 = vld [vmem:[%s1198_s0] sm:$0xff]   ;;  %v847_v6 = vld [vmem:[%s1197_s1 + $0x28] sm:$0xff]  }
   0x3   :  { %779 = vmatpush3.bf16.msra.mxu0 %v842_v0  ;;  %834 = vmatpush3.bf16.msra.mxu1 %v842_v0  ;;  %v846_v5 = vld [vmem:[%s1197_s1 + $0x20] sm:$0xff]   ;;  %v848_v8 = vld [vmem:[%s1197_s1 + $0x30] sm:$0xff]   ;;  %v849_v9 = vld [vmem:[%s1197_s1 + $0x38] sm:$0xff]  }
   0x4   :  { %780 = vmatprep.subr.bf16.mxu0 %v843_v1  ;;  %827 = vmatprep.subr.bf16.mxu1 %v843_v1  ;;  %v858_v7 = vld [vmem:[%s1198_s0 + $0x40] sm:$0xff]   ;;  %v851_v10 = vld [vmem:[%s1198_s0 + $0x8] sm:$0xff]   ;;  %v852_v12 = vld [vmem:[%s1198_s0 + $0x10] sm:$0xff]  }
   0x5   :  { %794 = vmatprep.mubr.bf16.mxu0 %v850_v4  ;;  %810 = vmatprep.mubr.bf16.mxu1 %v858_v7  ;;  %v859_v11 = vld [vmem:[%s1198_s0 + $0x48] sm:$0xff]   ;;  %v860_v13 = vld [vmem:[%s1198_s0 + $0x50] sm:$0xff]   ;;  %v853_v14 = vld [vmem:[%s1198_s0 + $0x18] sm:$0xff]  }
   0x6   :  { %v861_v15 = vld [vmem:[%s1198_s0 + $0x58] sm:$0xff]   ;;  %v854_v16 = vld [vmem:[%s1198_s0 + $0x20] sm:$0xff]   ;;  %v855_v18 = vld [vmem:[%s1198_s0 + $0x28] sm:$0xff]  }
   0x7   :  { %781 = vmatpush3.bf16.msra.mxu0 %v843_v1  ;;  %835 = vmatpush3.bf16.msra.mxu1 %v843_v1  ;;  %v862_v17 = vld [vmem:[%s1198_s0 + $0x60] sm:$0xff]   ;;  %v863_v19 = vld [vmem:[%s1198_s0 + $0x68] sm:$0xff]   ;;  %v856_v20 = vld [vmem:[%s1198_s0 + $0x30] sm:$0xff]  }
   0x8   :  { %782 = vmatprep.subr.bf16.mxu0 %v844_v2  ;;  %828 = vmatprep.subr.bf16.mxu1 %v844_v2  ;;  %v864_v21 = vld [vmem:[%s1198_s0 + $0x70] sm:$0xff]   ;;  %v857_v22 = vld [vmem:[%s1198_s0 + $0x38] sm:$0xff]   ;;  %v971_v24 = vld [vmem:[%s1199_s2] ss:$0 sm:$0xff] }
   0x9   :  { %v865_v23 = vld [vmem:[%s1198_s0 + $0x78] sm:$0xff]  }
   0xb   :  { %783 = vmatpush3.bf16.msra.mxu0 %v844_v2  ;;  %836 = vmatpush3.bf16.msra.mxu1 %v844_v2 }
   0xc   :  { %784 = vmatprep.subr.bf16.mxu0 %v845_v3  ;;  %829 = vmatprep.subr.bf16.mxu1 %v845_v3 }
   0xf   :  { %785 = vmatpush3.bf16.msra.mxu0 %v845_v3  ;;  %837 = vmatpush3.bf16.msra.mxu1 %v845_v3 }
  0x10   :  { %786 = vmatprep.subr.bf16.mxu0 %v846_v5  ;;  %830 = vmatprep.subr.bf16.mxu1 %v846_v5 }
  0x13   :  { %787 = vmatpush3.bf16.msra.mxu0 %v846_v5  ;;  %838 = vmatpush3.bf16.msra.mxu1 %v846_v5 }
  0x14   :  { %788 = vmatprep.subr.bf16.mxu0 %v847_v6  ;;  %831 = vmatprep.subr.bf16.mxu1 %v847_v6 }
  0x17   :  { %789 = vmatpush3.bf16.msra.mxu0 %v847_v6  ;;  %839 = vmatpush3.bf16.msra.mxu1 %v847_v6 }
  0x18   :  { %790 = vmatprep.subr.bf16.mxu0 %v848_v8  ;;  %832 = vmatprep.subr.bf16.mxu1 %v848_v8 }
  0x1b   :  { %791 = vmatpush3.bf16.msra.mxu0 %v848_v8  ;;  %840 = vmatpush3.bf16.msra.mxu1 %v848_v8 }
  0x1c   :  { %792 = vmatprep.subr.bf16.mxu0 %v849_v9  ;;  %833 = vmatprep.subr.bf16.mxu1 %v849_v9 }
  0x1f   :  { %793 = vmatpush3.bf16.msra.mxu0 %v849_v9  ;;  %841 = vmatpush3.bf16.msra.mxu1 %v849_v9 }
  0x22   :  { %795 = vmatmul.mubr.bf16.vlgmr.msra.gmra.mrb[0].mxu0 %v851_v10  ;;  %811 = vmatmul.mubr.bf16.vlgmr.msra.gmra.mrb[0].mxu1 %v859_v11 }
  0x23   :  { %798 = vmatprep.mubr.bf16.mxu0 %v852_v12  ;;  %814 = vmatprep.mubr.bf16.mxu1 %v860_v13 }
  0x2a   :  { %799 = vmatmul.mubr.bf16.gmra.mrb[4].mxu0 %v853_v14  ;;  %815 = vmatmul.mubr.bf16.gmra.mrb[4].mxu1 %v861_v15 }
  0x2b   :  { %802 = vmatprep.mubr.bf16.mxu0 %v854_v16  ;;  %818 = vmatprep.mubr.bf16.mxu1 %v862_v17 }
  0x32   :  { %803 = vmatmul.mubr.bf16.gmra.mrb[8].mxu0 %v855_v18  ;;  %819 = vmatmul.mubr.bf16.gmra.mrb[8].mxu1 %v863_v19 }
  0x33   :  { %806 = vmatprep.mubr.bf16.mxu0 %v856_v20  ;;  %822 = vmatprep.mubr.bf16.mxu1 %v864_v21 }
  0x3a   :  { %807 = vmatmul.mubr.bf16.gmra.mrb[12].mxu0 %v857_v22  ;;  %823 = vmatmul.mubr.bf16.gmra.mrb[12].mxu1 %v865_v23 }
  0xf5   :  { %v796_v25 = vpop.f32.mrb[0].mxu0  ;;  %v812_v26 = vpop.f32.mrb[0].mxu1 }
  0xf6   :  { %v547_v27 = vadd.f32 %v796_v25, %v971_v24  ;;  %v312_v28 = vpop.f32.mrb[1].mxu0  ;;  %v975_v29 = vadd.f32 %v812_v26, %v971_v24  ;;  %v376_v30 = vpop.f32.mrb[1].mxu1 }
  0xf7   :  { %v545_v31 = vadd.f32 %v971_v24, %v312_v28  ;;  %v797_v32 = vpop.f32.mrb[2].mxu0  ;;  %v979_v33 = vadd.f32 %v971_v24, %v376_v30  ;;  %v813_v34 = vpop.f32.mrb[2].mxu1 }
  0xf8   :  { %687 = vst [vmem:[%s1200_s3 + $0x10] sm:$0xff] %v547_v27  ;;  %v548_v35 = vadd.f32 %v797_v32, %v971_v24  ;;  %v315_v36 = vpop.f32.mrb[3].mxu0  ;;  %703 = vst [vmem:[%s1200_s3 + $0x90] sm:$0xff] %v975_v29  ;;  %v990_v37 = vadd.f32 %v813_v34, %v971_v24  ;;  %v379_v38 = vpop.f32.mrb[3].mxu1  ;;  %v617_v44 = vmul.f32 %v547_v27, %v547_v27 }
  0xf9   :  { %685 = vst [vmem:[%s1200_s3] sm:$0xff] %v545_v31  ;;  %v546_v39 = vadd.f32 %v971_v24, %v315_v36  ;;  %701 = vst [vmem:[%s1200_s3 + $0x80] sm:$0xff] %v979_v33  ;;  %v1001_v40 = vadd.f32 %v971_v24, %v379_v38  ;;  %v615_v41 = vmul.f32 %v545_v31, %v545_v31 }
  0xfa   :  { %688 = vst [vmem:[%s1200_s3 + $0x18] sm:$0xff] %v548_v35  ;;  %704 = vst [vmem:[%s1200_s3 + $0x98] sm:$0xff] %v990_v37  ;;  %v618_v49 = vmul.f32 %v548_v35, %v548_v35 }
  0xfb   :  { %v577_v42 = vadd.f32 %v546_v39, %v545_v31  ;;  %v616_v43 = vmul.f32 %v546_v39, %v546_v39  ;;  %686 = vst [vmem:[%s1200_s3 + $0x8] sm:$0xff] %v546_v39  ;;  %702 = vst [vmem:[%s1200_s3 + $0x88] sm:$0xff] %v1001_v40 }
  0xfd   :  { %v578_v45 = vadd.f32 %v577_v42, %v547_v27  ;;  %v647_v46 = vadd.f32 %v616_v43, %v615_v41  ;;  %v800_v47 = vpop.f32.mrb[4].mxu0  ;;  %v816_v48 = vpop.f32.mrb[4].mxu1 }
  0xfe   :  { %v551_v50 = vadd.f32 %v800_v47, %v971_v24  ;;  %v328_v51 = vpop.f32.mrb[5].mxu0  ;;  %v1019_v52 = vadd.f32 %v816_v48, %v971_v24  ;;  %v392_v53 = vpop.f32.mrb[5].mxu1 }
  0xff   :  { %v648_v54 = vadd.f32 %v647_v46, %v617_v44  ;;  %v549_v55 = vadd.f32 %v971_v24, %v328_v51  ;;  %v579_v56 = vadd.f32 %v578_v45, %v548_v35  ;;  %v801_v57 = vpop.f32.mrb[6].mxu0  ;;  %v1023_v58 = vadd.f32 %v971_v24, %v392_v53  ;;  %v817_v59 = vpop.f32.mrb[6].mxu1 }
 0x100   :  { %691 = vst [vmem:[%s1200_s3 + $0x30] sm:$0xff] %v551_v50  ;;  %v552_v60 = vadd.f32 %v801_v57, %v971_v24  ;;  %v331_v61 = vpop.f32.mrb[7].mxu0  ;;  %707 = vst [vmem:[%s1200_s3 + $0xb0] sm:$0xff] %v1019_v52  ;;  %v1034_v62 = vadd.f32 %v817_v59, %v971_v24  ;;  %v395_v63 = vpop.f32.mrb[7].mxu1  ;;  %v621_v8 = vmul.f32 %v551_v50, %v551_v50 }
 0x101   :  { %v580_v0 = vadd.f32 %v579_v56, %v549_v55  ;;  %v619_v1 = vmul.f32 %v549_v55, %v549_v55  ;;  %v649_v2 = vadd.f32 %v648_v54, %v618_v49  ;;  %689 = vst [vmem:[%s1200_s3 + $0x20] sm:$0xff] %v549_v55  ;;  %v550_v3 = vadd.f32 %v971_v24, %v331_v61 }
 0x102   :  { %705 = vst [vmem:[%s1200_s3 + $0xa0] sm:$0xff] %v1023_v58  ;;  %692 = vst [vmem:[%s1200_s3 + $0x38] sm:$0xff] %v552_v60  ;;  %v1052_v4 = vadd.f32 %v971_v24, %v395_v63  ;;  %v622_v13 = vmul.f32 %v552_v60, %v552_v60 }
 0x103   :  { %708 = vst [vmem:[%s1200_s3 + $0xb8] sm:$0xff] %v1034_v62  ;;  %v650_v5 = vadd.f32 %v649_v2, %v619_v1  ;;  %v581_v6 = vadd.f32 %v580_v0, %v550_v3  ;;  %v620_v7 = vmul.f32 %v550_v3, %v550_v3  ;;  %690 = vst [vmem:[%s1200_s3 + $0x28] sm:$0xff] %v550_v3 }
 0x104   :  { %706 = vst [vmem:[%s1200_s3 + $0xa8] sm:$0xff] %v1052_v4 }
 0x105   :  { %v582_v9 = vadd.f32 %v581_v6, %v551_v50  ;;  %v651_v10 = vadd.f32 %v650_v5, %v620_v7  ;;  %v804_v11 = vpop.f32.mrb[8].mxu0  ;;  %v820_v12 = vpop.f32.mrb[8].mxu1 }
 0x106   :  { %v555_v14 = vadd.f32 %v804_v11, %v971_v24  ;;  %v344_v15 = vpop.f32.mrb[9].mxu0  ;;  %v1063_v16 = vadd.f32 %v820_v12, %v971_v24  ;;  %v408_v17 = vpop.f32.mrb[9].mxu1 }
 0x107   :  { %v652_v18 = vadd.f32 %v651_v10, %v621_v8  ;;  %v553_v19 = vadd.f32 %v971_v24, %v344_v15  ;;  %v583_v20 = vadd.f32 %v582_v9, %v552_v60  ;;  %v805_v21 = vpop.f32.mrb[10].mxu0  ;;  %v1067_v22 = vadd.f32 %v971_v24, %v408_v17  ;;  %v821_v23 = vpop.f32.mrb[10].mxu1 }
 0x108   :  { %695 = vst [vmem:[%s1200_s3 + $0x50] sm:$0xff] %v555_v14  ;;  %v556_v25 = vadd.f32 %v805_v21, %v971_v24  ;;  %v347_v26 = vpop.f32.mrb[11].mxu0  ;;  %711 = vst [vmem:[%s1200_s3 + $0xd0] sm:$0xff] %v1063_v16  ;;  %v1078_v27 = vadd.f32 %v821_v23, %v971_v24  ;;  %v411_v28 = vpop.f32.mrb[11].mxu1  ;;  %v625_v41 = vmul.f32 %v555_v14, %v555_v14 }
 0x109   :  { %v584_v30 = vadd.f32 %v583_v20, %v553_v19  ;;  %v623_v31 = vmul.f32 %v553_v19, %v553_v19  ;;  %v653_v32 = vadd.f32 %v652_v18, %v622_v13  ;;  %693 = vst [vmem:[%s1200_s3 + $0x40] sm:$0xff] %v553_v19  ;;  %v554_v34 = vadd.f32 %v971_v24, %v347_v26 }
 0x10a   :  { %709 = vst [vmem:[%s1200_s3 + $0xc0] sm:$0xff] %v1067_v22  ;;  %696 = vst [vmem:[%s1200_s3 + $0x58] sm:$0xff] %v556_v25  ;;  %v1096_v35 = vadd.f32 %v971_v24, %v411_v28  ;;  %v626_v46 = vmul.f32 %v556_v25, %v556_v25  ;;  %v632_v20 = vmul.f32 %v1001_v40, %v1001_v40 }
 0x10b   :  { %712 = vst [vmem:[%s1200_s3 + $0xd8] sm:$0xff] %v1078_v27  ;;  %v654_v36 = vadd.f32 %v653_v32, %v623_v31  ;;  %v585_v38 = vadd.f32 %v584_v30, %v554_v34  ;;  %v624_v39 = vmul.f32 %v554_v34, %v554_v34  ;;  %694 = vst [vmem:[%s1200_s3 + $0x48] sm:$0xff] %v554_v34 }
 0x10c   :  { %710 = vst [vmem:[%s1200_s3 + $0xc8] sm:$0xff] %v1096_v35  ;;  %v633_v21 = vmul.f32 %v975_v29, %v975_v29  ;;  %v634_v26 = vmul.f32 %v990_v37, %v990_v37 }
 0x10d   :  { %v586_v42 = vadd.f32 %v585_v38, %v555_v14  ;;  %v655_v43 = vadd.f32 %v654_v36, %v624_v39  ;;  %v808_v44 = vpop.f32.mrb[12].mxu0  ;;  %v824_v45 = vpop.f32.mrb[12].mxu1  ;;  %v636_v36 = vmul.f32 %v1052_v4, %v1052_v4 }
 0x10e   :  { %v559_v47 = vadd.f32 %v808_v44, %v971_v24  ;;  %v360_v48 = vpop.f32.mrb[13].mxu0  ;;  %v1107_v49 = vadd.f32 %v824_v45, %v971_v24  ;;  %v424_v50 = vpop.f32.mrb[13].mxu1 }
 0x10f   :  { %v656_v51 = vadd.f32 %v655_v43, %v625_v41  ;;  %v557_v53 = vadd.f32 %v971_v24, %v360_v48  ;;  %v587_v54 = vadd.f32 %v586_v42, %v556_v25  ;;  %v809_v55 = vpop.f32.mrb[14].mxu0  ;;  %v1111_v56 = vadd.f32 %v971_v24, %v424_v50  ;;  %v825_v57 = vpop.f32.mrb[14].mxu1 }
 0x110   :  { %699 = vst [vmem:[%s1200_s3 + $0x70] sm:$0xff] %v559_v47  ;;  %v560_v59 = vadd.f32 %v809_v55, %v971_v24  ;;  %v363_v60 = vpop.f32.mrb[15].mxu0  ;;  %715 = vst [vmem:[%s1200_s3 + $0xf0] sm:$0xff] %v1107_v49  ;;  %v1122_v61 = vadd.f32 %v825_v57, %v971_v24  ;;  %v427_v63 = vpop.f32.mrb[15].mxu1  ;;  %v629_v9 = vmul.f32 %v559_v47, %v559_v47 }
 0x111   :  { %v588_v0 = vadd.f32 %v587_v54, %v557_v53  ;;  %v627_v1 = vmul.f32 %v557_v53, %v557_v53  ;;  %v657_v2 = vadd.f32 %v656_v51, %v626_v46  ;;  %697 = vst [vmem:[%s1200_s3 + $0x60] sm:$0xff] %v557_v53  ;;  %v558_v3 = vadd.f32 %v971_v24, %v363_v60 }
 0x112   :  { %713 = vst [vmem:[%s1200_s3 + $0xe0] sm:$0xff] %v1111_v56  ;;  %700 = vst [vmem:[%s1200_s3 + $0x78] sm:$0xff] %v560_v59  ;;  %v574_v5 = vadd.f32 %v971_v24, %v427_v63  ;;  %v630_v12 = vmul.f32 %v560_v59, %v560_v59  ;;  %v631_v24 = vmul.f32 %v979_v33, %v979_v33 }
 0x113   :  { %716 = vst [vmem:[%s1200_s3 + $0xf8] sm:$0xff] %v1122_v61  ;;  %v658_v6 = vadd.f32 %v657_v2, %v627_v1  ;;  %v589_v7 = vadd.f32 %v588_v0, %v558_v3  ;;  %v628_v8 = vmul.f32 %v558_v3, %v558_v3  ;;  %698 = vst [vmem:[%s1200_s3 + $0x68] sm:$0xff] %v558_v3 }
 0x114   :  { %714 = vst [vmem:[%s1200_s3 + $0xe8] sm:$0xff] %v574_v5  ;;  %v640_v46 = vmul.f32 %v1096_v35, %v1096_v35  ;;  %v644_v57 = vmul.f32 %v574_v5, %v574_v5  ;;  %v646_v63 = vmul.f32 %v1122_v61, %v1122_v61 }
 0x115   :  { %v590_v10 = vadd.f32 %v589_v7, %v559_v47  ;;  %v659_v11 = vadd.f32 %v658_v6, %v628_v8 }
 0x117   :  { %v660_v13 = vadd.f32 %v659_v11, %v629_v9  ;;  %v591_v14 = vadd.f32 %v590_v10, %v560_v59  ;;  %v645_v59 = vmul.f32 %v1107_v49, %v1107_v49 }
 0x119   :  { %v592_v15 = vadd.f32 %v591_v14, %v979_v33  ;;  %v661_v17 = vadd.f32 %v660_v13, %v630_v12  ;;  %v635_v33 = vmul.f32 %v1023_v58, %v1023_v58 }
 0x11b   :  { %v662_v18 = vadd.f32 %v661_v17, %v631_v24  ;;  %v593_v19 = vadd.f32 %v592_v15, %v1001_v40 }
 0x11d   :  { %v594_v23 = vadd.f32 %v593_v19, %v975_v29  ;;  %v663_v25 = vadd.f32 %v662_v18, %v632_v20  ;;  %v637_v29 = vmul.f32 %v1019_v52, %v1019_v52 }
 0x11f   :  { %v664_v28 = vadd.f32 %v663_v25, %v633_v21  ;;  %v595_v30 = vadd.f32 %v594_v23, %v990_v37  ;;  %v638_v37 = vmul.f32 %v1034_v62, %v1034_v62 }
 0x121   :  { %v596_v31 = vadd.f32 %v595_v30, %v1023_v58  ;;  %v665_v32 = vadd.f32 %v664_v28, %v634_v26  ;;  %v639_v58 = vmul.f32 %v1067_v22, %v1067_v22 }
 0x123   :  { %v666_v34 = vadd.f32 %v665_v32, %v635_v33  ;;  %v597_v40 = vadd.f32 %v596_v31, %v1052_v4 }
 0x125   :  { %v598_v38 = vadd.f32 %v597_v40, %v1019_v52  ;;  %v667_v39 = vadd.f32 %v666_v34, %v636_v36  ;;  %v641_v52 = vmul.f32 %v1063_v16, %v1063_v16 }
 0x127   :  { %v668_v41 = vadd.f32 %v667_v39, %v637_v29  ;;  %v599_v42 = vadd.f32 %v598_v38, %v1034_v62  ;;  %v642_v62 = vmul.f32 %v1078_v27, %v1078_v27 }
 0x129   :  { %v600_v43 = vadd.f32 %v599_v42, %v1067_v22  ;;  %v669_v44 = vadd.f32 %v668_v41, %v638_v37  ;;  %v643_v22 = vmul.f32 %v1111_v56, %v1111_v56 }
 0x12b   :  { %v670_v45 = vadd.f32 %v669_v44, %v639_v58  ;;  %v601_v4 = vadd.f32 %v600_v43, %v1096_v35 }
 0x12d   :  { %v602_v47 = vadd.f32 %v601_v4, %v1063_v16  ;;  %v671_v48 = vadd.f32 %v670_v45, %v640_v46 }
 0x12f   :  { %v672_v50 = vadd.f32 %v671_v48, %v641_v52  ;;  %v603_v51 = vadd.f32 %v602_v47, %v1078_v27 }
 0x131   :  { %v604_v53 = vadd.f32 %v603_v51, %v1111_v56  ;;  %v673_v54 = vadd.f32 %v672_v50, %v642_v62 }
 0x133   :  { %v674_v55 = vadd.f32 %v673_v54, %v643_v22  ;;  %v605_v35 = vadd.f32 %v604_v53, %v574_v5 }
 0x135   :  { %v606_v16 = vadd.f32 %v605_v35, %v1107_v49  ;;  %v675_v60 = vadd.f32 %v674_v55, %v644_v57 }
 0x137   :  { %v607_v27 = vadd.f32 %v606_v16, %v1122_v61  ;;  %v676_v0 = vadd.f32 %v675_v60, %v645_v59 }
 0x139   :  { %v608_v1 = vrot.slane %v607_v27, 4  ;;  %v677_v2 = vadd.f32 %v676_v0, %v646_v63 }
 0x13b   :  { %v609_v3 = vadd.f32 %v608_v1, %v607_v27  ;;  %v678_v56 = vrot.slane %v677_v2, 4 }
 0x13d   :  { %v610_v6 = vrot.slane %v609_v3, 2  ;;  %v679_v7 = vadd.f32 %v678_v56, %v677_v2 }
 0x13f   :  { %v611_v8 = vadd.f32 %v610_v6, %v609_v3  ;;  %v680_v5 = vrot.slane %v679_v7, 2 }
 0x141   :  { %v612_v9 = vrot.slane %v611_v8, 1  ;;  %v681_v10 = vadd.f32 %v680_v5, %v679_v7 }
 0x143   :  { %v613_v11 = vadd.f32 %v612_v9, %v611_v8  ;;  %v682_v12 = vrot.slane %v681_v10, 1 }
 0x145   :  { %614 = vst [vmem:[%s1201_s4] sm:$0x1] %v613_v11  ;;  %v683_v49 = vadd.f32 %v682_v12, %v681_v10 }
 0x147   :  { %684 = vst [vmem:[%s1202_s5] sm:$0x1] %v683_v49 }

// kernel: _lambda_.10
= control target key start
LH: loop header
LB: loop body
LE: loop exit
PB: predicated region body
PF: predicated region fallthrough
CT: control target
= control target key end

     0   :  { %s546_s0 = inlined_call_operand.vmem [shape: f32[256,128], index: 0, kind: input, shape index: {}]   ;;  %s547_s1 = inlined_call_operand.vmem [shape: f32[1,128], index: 1, kind: input, shape index: {}]   ;;  %s548_s2 = inlined_call_operand.vmem [shape: f32[1,128], index: 2, kind: input, shape index: {}]   ;;  %s549_s3 = inlined_call_operand.vmem [shape: f32[256,128], index: 3, kind: output, shape index: {}]  }
   0x1   :  { %v14_v0 = vld [vmem:[%s546_s0] sm:$0xff]  ;;  %v15_v4 = vld [vmem:[%s546_s0 + $0x8] sm:$0xff]  ;;  %v16_v5 = vld [vmem:[%s546_s0 + $0x10] sm:$0xff] }
   0x2   :  { %v284_v1 = vld [vmem:[%s547_s1] ss:$0 sm:$0xff]  ;;  %v17_v6 = vld [vmem:[%s546_s0 + $0x18] sm:$0xff]  ;;  %v19_v11 = vld [vmem:[%s546_s0 + $0x28] sm:$0xff] }
   0x3   :  { %v289_v2 = vld [vmem:[%s548_s2] ss:$0 sm:$0xff]  ;;  %v53_v3 = vmul.f32 %v284_v1, %v14_v0  ;;  %v54_v7 = vmul.f32 %v284_v1, %v15_v4  ;;  %v55_v8 = vmul.f32 %v284_v1, %v16_v5  ;;  %v56_v9 = vmul.f32 %v284_v1, %v17_v6  ;;  %v20_v12 = vld [vmem:[%s546_s0 + $0x30] sm:$0xff]  ;;  %v21_v17 = vld [vmem:[%s546_s0 + $0x38] sm:$0xff] }
   0x4   :  { %v18_v10 = vld [vmem:[%s546_s0 + $0x20] sm:$0xff]  ;;  %v58_v15 = vmul.f32 %v284_v1, %v19_v11  ;;  %v59_v16 = vmul.f32 %v284_v1, %v20_v12  ;;  %v60_v21 = vmul.f32 %v284_v1, %v21_v17  ;;  %v23_v30 = vld [vmem:[%s546_s0 + $0x48] sm:$0xff]  ;;  %v24_v31 = vld [vmem:[%s546_s0 + $0x50] sm:$0xff] }
   0x5   :  { %v92_v13 = vadd.f32 %v289_v2, %v53_v3  ;;  %v57_v14 = vmul.f32 %v284_v1, %v18_v10  ;;  %v93_v18 = vadd.f32 %v289_v2, %v54_v7  ;;  %v94_v19 = vadd.f32 %v289_v2, %v55_v8  ;;  %v22_v25 = vld [vmem:[%s546_s0 + $0x40] sm:$0xff]  ;;  %v25_v43 = vld [vmem:[%s546_s0 + $0x58] sm:$0xff]  ;;  %v27_v45 = vld [vmem:[%s546_s0 + $0x68] sm:$0xff] }
   0x6   :  { %v95_v20 = vadd.f32 %v289_v2, %v56_v9  ;;  %v97_v24 = vadd.f32 %v289_v2, %v58_v15  ;;  %v98_v37 = vadd.f32 %v289_v2, %v59_v16  ;;  %v99_v38 = vadd.f32 %v289_v2, %v60_v21  ;;  %v26_v44 = vld [vmem:[%s546_s0 + $0x60] sm:$0xff]  ;;  %v28_v56 = vld [vmem:[%s546_s0 + $0x70] sm:$0xff]  ;;  %v29_v4 = vld [vmem:[%s546_s0 + $0x78] sm:$0xff] }
   0x7   :  { %vm124_vm0 = vcmp.gt.f32.partialorder %v92_v13, 0.0  ;;  %v156_v22 = vmul.f32 0.2, %v92_v13  ;;  %v96_v23 = vadd.f32 %v289_v2, %v57_v14  ;;  %vm125_vm1 = vcmp.gt.f32.partialorder %v93_v18, 0.0  ;;  %v30_v5 = vld [vmem:[%s546_s0 + $0x80] sm:$0xff]  ;;  %v31_v9 = vld [vmem:[%s546_s0 + $0x88] sm:$0xff] }
   0x8   :  { %v157_v26 = vmul.f32 0.2, %v93_v18  ;;  %vm126_vm2 = vcmp.gt.f32.partialorder %v94_v19, 0.0  ;;  %v158_v27 = vmul.f32 0.2, %v94_v19  ;;  %vm127_vm3 = vcmp.gt.f32.partialorder %v95_v20, 0.0 }
   0x9   :  { %v188_v28 = vsel %vm124_vm0, %v92_v13, %v156_v22  ;;  %v159_v29 = vmul.f32 0.2, %v95_v20  ;;  %vm128_vm4 = vcmp.gt.f32.partialorder %v96_v23, 0.0  ;;  %v160_v34 = vmul.f32 0.2, %v96_v23  ;;  %v32_v10 = vld [vmem:[%s546_s0 + $0x90] sm:$0xff] }
   0xa   :  { %220 = vst [vmem:[%s549_s3] sm:$0xff] %v188_v28  ;;  %v189_v32 = vsel %vm125_vm1, %v93_v18, %v157_v26  ;;  %v190_v33 = vsel %vm126_vm2, %v94_v19, %v158_v27  ;;  %vm129_vm5 = vcmp.gt.f32.partialorder %v97_v24, 0.0  ;;  %v161_v36 = vmul.f32 0.2, %v97_v24  ;;  %v33_v17 = vld [vmem:[%s546_s0 + $0x98] sm:$0xff]  ;;  %v34_v18 = vld [vmem:[%s546_s0 + $0xa0] sm:$0xff] }
   0xb   :  { %221 = vst [vmem:[%s549_s3 + $0x8] sm:$0xff] %v189_v32  ;;  %222 = vst [vmem:[%s549_s3 + $0x10] sm:$0xff] %v190_v33  ;;  %v191_v35 = vsel %vm127_vm3, %v95_v20, %v159_v29  ;;  %v192_v39 = vsel %vm128_vm4, %v96_v23, %v160_v34  ;;  %v61_v40 = vmul.f32 %v284_v1, %v22_v25  ;;  %vm130_vm6 = vcmp.gt.f32.partialorder %v98_v37, 0.0  ;;  %v35_v32 = vld [vmem:[%s546_s0 + $0xa8] sm:$0xff]  ;;  %v36_v33 = vld [vmem:[%s546_s0 + $0xb0] sm:$0xff] }
   0xc   :  { %223 = vst [vmem:[%s549_s3 + $0x18] sm:$0xff] %v191_v35  ;;  %v62_v41 = vmul.f32 %v284_v1, %v23_v30  ;;  %v63_v42 = vmul.f32 %v284_v1, %v24_v31  ;;  %224 = vst [vmem:[%s549_s3 + $0x20] sm:$0xff] %v192_v39  ;;  %v193_v46 = vsel %vm129_vm5, %v97_v24, %v161_v36  ;;  %v162_v47 = vmul.f32 0.2, %v98_v37 }
   0xd   :  { %vm131_vm7 = vcmp.gt.f32.partialorder %v99_v38, 0.0  ;;  %225 = vst [vmem:[%s549_s3 + $0x28] sm:$0xff] %v193_v46  ;;  %v163_v48 = vmul.f32 0.2, %v99_v38  ;;  %v100_v49 = vadd.f32 %v289_v2, %v61_v40  ;;  %v64_v53 = vmul.f32 %v284_v1, %v25_v43  ;;  %v37_v40 = vld [vmem:[%s546_s0 + $0xb8] sm:$0xff]  ;;  %v39_v46 = vld [vmem:[%s546_s0 + $0xc8] sm:$0xff] }
   0xe   :  { %v101_v50 = vadd.f32 %v289_v2, %v62_v41  ;;  %v102_v51 = vadd.f32 %v289_v2, %v63_v42  ;;  %v194_v52 = vsel %vm130_vm6, %v98_v37, %v162_v47  ;;  %v65_v54 = vmul.f32 %v284_v1, %v26_v44  ;;  %v40_v47 = vld [vmem:[%s546_s0 + $0xd0] sm:$0xff] }
   0xf   :  { %v66_v55 = vmul.f32 %v284_v1, %v27_v45  ;;  %226 = vst [vmem:[%s549_s3 + $0x30] sm:$0xff] %v194_v52  ;;  %v195_v57 = vsel %vm131_vm7, %v99_v38, %v163_v48  ;;  %vm132_vm8 = vcmp.gt.f32.partialorder %v100_v49, 0.0  ;;  %v164_v58 = vmul.f32 0.2, %v100_v49  ;;  %v38_v45 = vld [vmem:[%s546_s0 + $0xc0] sm:$0xff] }
  0x10   :  { %vm133_vm9 = vcmp.gt.f32.partialorder %v101_v50, 0.0  ;;  %227 = vst [vmem:[%s549_s3 + $0x38] sm:$0xff] %v195_v57  ;;  %v165_v59 = vmul.f32 0.2, %v101_v50  ;;  %vm134_vm10 = vcmp.gt.f32.partialorder %v102_v51, 0.0  ;;  %v103_v61 = vadd.f32 %v289_v2, %v64_v53 }
  0x11   :  { %v166_v60 = vmul.f32 0.2, %v102_v51  ;;  %v196_v62 = vsel %vm132_vm8, %v100_v49, %v164_v58  ;;  %v104_v63 = vadd.f32 %v289_v2, %v65_v54  ;;  %v105_v0 = vadd.f32 %v289_v2, %v66_v55  ;;  %v41_v58 = vld [vmem:[%s546_s0 + $0xd8] sm:$0xff] }
  0x12   :  { %v67_v3 = vmul.f32 %v284_v1, %v28_v56  ;;  %228 = vst [vmem:[%s549_s3 + $0x40] sm:$0xff] %v196_v62  ;;  %v197_v6 = vsel %vm133_vm9, %v101_v50, %v165_v59  ;;  %vm135_vm11 = vcmp.gt.f32.partialorder %v103_v61, 0.0  ;;  %v167_v8 = vmul.f32 0.2, %v103_v61  ;;  %v42_v59 = vld [vmem:[%s546_s0 + $0xe0] sm:$0xff] }
  0x13   :  { %v198_v7 = vsel %vm134_vm10, %v102_v51, %v166_v60  ;;  %229 = vst [vmem:[%s549_s3 + $0x48] sm:$0xff] %v197_v6  ;;  %vm136_vm12 = vcmp.gt.f32.partialorder %v104_v63, 0.0  ;;  %v168_v11 = vmul.f32 0.2, %v104_v63  ;;  %vm137_vm13 = vcmp.gt.f32.partialorder %v105_v0, 0.0 }
  0x14   :  { %230 = vst [vmem:[%s549_s3 + $0x50] sm:$0xff] %v198_v7  ;;  %v169_v12 = vmul.f32 0.2, %v105_v0  ;;  %v199_v13 = vsel %vm135_vm11, %v103_v61, %v167_v8  ;;  %v106_v14 = vadd.f32 %v289_v2, %v67_v3  ;;  %v68_v15 = vmul.f32 %v284_v1, %v29_v4 }
  0x15   :  { %v69_v16 = vmul.f32 %v284_v1, %v30_v5  ;;  %231 = vst [vmem:[%s549_s3 + $0x58] sm:$0xff] %v199_v13  ;;  %v200_v19 = vsel %vm136_vm12, %v104_v63, %v168_v11  ;;  %v70_v21 = vmul.f32 %v284_v1, %v31_v9  ;;  %v71_v22 = vmul.f32 %v284_v1, %v32_v10  ;;  %v43_v10 = vld [vmem:[%s546_s0 + $0xe8] sm:$0xff]  ;;  %v44_v11 = vld [vmem:[%s546_s0 + $0xf0] sm:$0xff] }
  0x16   :  { %v201_v20 = vsel %vm137_vm13, %v105_v0, %v169_v12  ;;  %232 = vst [vmem:[%s549_s3 + $0x60] sm:$0xff] %v200_v19  ;;  %vm138_vm14 = vcmp.gt.f32.partialorder %v106_v14, 0.0  ;;  %v170_v23 = vmul.f32 0.2, %v106_v14  ;;  %v107_v24 = vadd.f32 %v289_v2, %v68_v15 }
  0x17   :  { %233 = vst [vmem:[%s549_s3 + $0x68] sm:$0xff] %v201_v20  ;;  %v108_v25 = vadd.f32 %v289_v2, %v69_v16  ;;  %v109_v26 = vadd.f32 %v289_v2, %v70_v21  ;;  %v110_v27 = vadd.f32 %v289_v2, %v71_v22  ;;  %v72_v28 = vmul.f32 %v284_v1, %v33_v17 }
  0x18   :  { %v73_v29 = vmul.f32 %v284_v1, %v34_v18  ;;  %v202_v30 = vsel %vm138_vm14, %v106_v14, %v170_v23  ;;  %vm139_vm15 = vcmp.gt.f32.partialorder %v107_v24, 0.0  ;;  %v171_v31 = vmul.f32 0.2, %v107_v24  ;;  %v45_v18 = vld [vmem:[%s546_s0 + $0xf8] sm:$0xff] }
  0x19   :  { %vm140_vm0 = vcmp.gt.f32.partialorder %v108_v25, 0.0  ;;  %234 = vst [vmem:[%s549_s3 + $0x70] sm:$0xff] %v202_v30  ;;  %v172_v34 = vmul.f32 0.2, %v108_v25  ;;  %vm141_vm1 = vcmp.gt.f32.partialorder %v109_v26, 0.0  ;;  %vm142_vm2 = vcmp.gt.f32.partialorder %v110_v27, 0.0 }
  0x1a   :  { %v173_v35 = vmul.f32 0.2, %v109_v26  ;;  %v203_v36 = vsel %vm139_vm15, %v107_v24, %v171_v31  ;;  %v174_v37 = vmul.f32 0.2, %v110_v27  ;;  %v111_v38 = vadd.f32 %v289_v2, %v72_v28 }
  0x1b   :  { %v112_v39 = vadd.f32 %v289_v2, %v73_v29  ;;  %235 = vst [vmem:[%s549_s3 + $0x78] sm:$0xff] %v203_v36  ;;  %v204_v41 = vsel %vm140_vm0, %v108_v25, %v172_v34  ;;  %v74_v43 = vmul.f32 %v284_v1, %v35_v32  ;;  %v75_v44 = vmul.f32 %v284_v1, %v36_v33 }
  0x1c   :  { %v205_v42 = vsel %vm141_vm1, %v109_v26, %v173_v35  ;;  %236 = vst [vmem:[%s549_s3 + $0x80] sm:$0xff] %v204_v41  ;;  %v206_v48 = vsel %vm142_vm2, %v110_v27, %v174_v37  ;;  %vm143_vm3 = vcmp.gt.f32.partialorder %v111_v38, 0.0  ;;  %v175_v49 = vmul.f32 0.2, %v111_v38 }
  0x1d   :  { %237 = vst [vmem:[%s549_s3 + $0x88] sm:$0xff] %v205_v42  ;;  %vm144_vm4 = vcmp.gt.f32.partialorder %v112_v39, 0.0  ;;  %238 = vst [vmem:[%s549_s3 + $0x90] sm:$0xff] %v206_v48  ;;  %v176_v50 = vmul.f32 0.2, %v112_v39  ;;  %v113_v51 = vadd.f32 %v289_v2, %v74_v43  ;;  %v114_v52 = vadd.f32 %v289_v2, %v75_v44 }
  0x1e   :  { %v76_v53 = vmul.f32 %v284_v1, %v37_v40  ;;  %v207_v54 = vsel %vm143_vm3, %v111_v38, %v175_v49  ;;  %v77_v55 = vmul.f32 %v284_v1, %v38_v45  ;;  %v78_v56 = vmul.f32 %v284_v1, %v39_v46 }
  0x1f   :  { %v79_v57 = vmul.f32 %v284_v1, %v40_v47  ;;  %239 = vst [vmem:[%s549_s3 + $0x98] sm:$0xff] %v207_v54  ;;  %v208_v60 = vsel %vm144_vm4, %v112_v39, %v176_v50  ;;  %vm145_vm5 = vcmp.gt.f32.partialorder %v113_v51, 0.0  ;;  %v177_v61 = vmul.f32 0.2, %v113_v51 }
  0x20   :  { %vm146_vm6 = vcmp.gt.f32.partialorder %v114_v52, 0.0  ;;  %240 = vst [vmem:[%s549_s3 + $0xa0] sm:$0xff] %v208_v60  ;;  %v178_v62 = vmul.f32 0.2, %v114_v52  ;;  %v115_v63 = vadd.f32 %v289_v2, %v76_v53  ;;  %v116_v0 = vadd.f32 %v289_v2, %v77_v55 }
  0x21   :  { %v117_v3 = vadd.f32 %v289_v2, %v78_v56  ;;  %v209_v4 = vsel %vm145_vm5, %v113_v51, %v177_v61  ;;  %v118_v5 = vadd.f32 %v289_v2, %v79_v57  ;;  %v80_v6 = vmul.f32 %v284_v1, %v41_v58 }
  0x22   :  { %v81_v7 = vmul.f32 %v284_v1, %v42_v59  ;;  %241 = vst [vmem:[%s549_s3 + $0xa8] sm:$0xff] %v209_v4  ;;  %v210_v8 = vsel %vm146_vm6, %v114_v52, %v178_v62  ;;  %vm147_vm7 = vcmp.gt.f32.partialorder %v115_v63, 0.0  ;;  %v179_v9 = vmul.f32 0.2, %v115_v63 }
  0x23   :  { %vm148_vm8 = vcmp.gt.f32.partialorder %v116_v0, 0.0  ;;  %242 = vst [vmem:[%s549_s3 + $0xb0] sm:$0xff] %v210_v8  ;;  %v180_v12 = vmul.f32 0.2, %v116_v0  ;;  %vm149_vm9 = vcmp.gt.f32.partialorder %v117_v3, 0.0  ;;  %vm150_vm10 = vcmp.gt.f32.partialorder %v118_v5, 0.0 }
  0x24   :  { %v181_v13 = vmul.f32 0.2, %v117_v3  ;;  %v211_v14 = vsel %vm147_vm7, %v115_v63, %v179_v9  ;;  %v182_v15 = vmul.f32 0.2, %v118_v5  ;;  %v119_v16 = vadd.f32 %v289_v2, %v80_v6 }
  0x25   :  { %v120_v17 = vadd.f32 %v289_v2, %v81_v7  ;;  %243 = vst [vmem:[%s549_s3 + $0xb8] sm:$0xff] %v211_v14  ;;  %v212_v19 = vsel %vm148_vm8, %v116_v0, %v180_v12  ;;  %v82_v21 = vmul.f32 %v284_v1, %v43_v10  ;;  %v83_v22 = vmul.f32 %v284_v1, %v44_v11 }
  0x26   :  { %v213_v20 = vsel %vm149_vm9, %v117_v3, %v181_v13  ;;  %244 = vst [vmem:[%s549_s3 + $0xc0] sm:$0xff] %v212_v19  ;;  %v214_v23 = vsel %vm150_vm10, %v118_v5, %v182_v15  ;;  %vm151_vm11 = vcmp.gt.f32.partialorder %v119_v16, 0.0  ;;  %v183_v24 = vmul.f32 0.2, %v119_v16 }
  0x27   :  { %245 = vst [vmem:[%s549_s3 + $0xc8] sm:$0xff] %v213_v20  ;;  %vm152_vm12 = vcmp.gt.f32.partialorder %v120_v17, 0.0  ;;  %246 = vst [vmem:[%s549_s3 + $0xd0] sm:$0xff] %v214_v23  ;;  %v184_v25 = vmul.f32 0.2, %v120_v17  ;;  %v121_v26 = vadd.f32 %v289_v2, %v82_v21  ;;  %v122_v27 = vadd.f32 %v289_v2, %v83_v22 }
  0x28   :  { %v84_v28 = vmul.f32 %v284_v1, %v45_v18  ;;  %v215_v29 = vsel %vm151_vm11, %v119_v16, %v183_v24 }
  0x29   :  { %247 = vst [vmem:[%s549_s3 + $0xd8] sm:$0xff] %v215_v29  ;;  %v216_v30 = vsel %vm152_vm12, %v120_v17, %v184_v25  ;;  %vm153_vm13 = vcmp.gt.f32.partialorder %v121_v26, 0.0  ;;  %v185_v31 = vmul.f32 0.2, %v121_v26  ;;  %vm154_vm14 = vcmp.gt.f32.partialorder %v122_v27, 0.0 }
  0x2a   :  { %248 = vst [vmem:[%s549_s3 + $0xe0] sm:$0xff] %v216_v30  ;;  %v186_v32 = vmul.f32 0.2, %v122_v27  ;;  %v123_v33 = vadd.f32 %v289_v2, %v84_v28 }
  0x2b   :  { %v217_v34 = vsel %vm153_vm13, %v121_v26, %v185_v31 }
  0x2c   :  { %249 = vst [vmem:[%s549_s3 + $0xe8] sm:$0xff] %v217_v34  ;;  %v218_v1 = vsel %vm154_vm14, %v122_v27, %v186_v32  ;;  %vm155_vm15 = vcmp.gt.f32.partialorder %v123_v33, 0.0  ;;  %v187_v35 = vmul.f32 0.2, %v123_v33 }
  0x2d   :  { %250 = vst [vmem:[%s549_s3 + $0xf0] sm:$0xff] %v218_v1 }
  0x2e   :  { %v219_v36 = vsel %vm155_vm15, %v123_v33, %v187_v35 }
  0x2f   :  { %251 = vst [vmem:[%s549_s3 + $0xf8] sm:$0xff] %v219_v36 }

// kernel: _lambda_.11
= control target key start
LH: loop header
LB: loop body
LE: loop exit
PB: predicated region body
PF: predicated region fallthrough
CT: control target
= control target key end

     0   :  { %s1495_s1 = inlined_call_operand.vmem [shape: bf16[256,128], index: 1, kind: input, shape index: {}]   ;;  %s1496_s0 = inlined_call_operand.vmem [shape: bf16[256,256], index: 0, kind: input, shape index: {}]   ;;  %s1497_s2 = inlined_call_operand.vmem [shape: f32[1,128], index: 2, kind: input, shape index: {}]   ;;  %s1498_s3 = inlined_call_operand.vmem [shape: f32[256,128], index: 3, kind: output, shape index: {0}]   ;;  %s1499_s4 = inlined_call_operand.vmem [shape: f32[1,1,128], index: 4, kind: output, shape index: {1}]   ;;  %s1500_s5 = inlined_call_operand.vmem [shape: f32[1,1,128], index: 5, kind: output, shape index: {2}]  }
   0x1   :  { %v1034_v0 = vld [vmem:[%s1495_s1 + $0x40] sm:$0xff]   ;;  %v1036_v2 = vld [vmem:[%s1495_s1 + $0x48] sm:$0xff]   ;;  %v1038_v4 = vld [vmem:[%s1495_s1 + $0x50] sm:$0xff]  }
   0x2   :  { %v1035_v1 = vld [vmem:[%s1495_s1] sm:$0xff]   ;;  %906 = vmatprep.subr.bf16.mxu0 %v1034_v0  ;;  %1018 = vmatprep.subr.bf16.mxu1 %v1034_v0  ;;  %v1037_v3 = vld [vmem:[%s1495_s1 + $0x8] sm:$0xff]   ;;  %v1039_v5 = vld [vmem:[%s1495_s1 + $0x10] sm:$0xff]  }
   0x3   :  { %907 = vmatpush3.bf16.msra.mxu0 %v1035_v1  ;;  %1026 = vmatpush3.bf16.msra.mxu1 %v1035_v1  ;;  %v1040_v6 = vld [vmem:[%s1495_s1 + $0x58] sm:$0xff]   ;;  %v1042_v8 = vld [vmem:[%s1495_s1 + $0x60] sm:$0xff]   ;;  %v1044_v10 = vld [vmem:[%s1495_s1 + $0x68] sm:$0xff]  }
   0x4   :  { %908 = vmatprep.subr.bf16.mxu0 %v1036_v2  ;;  %1019 = vmatprep.subr.bf16.mxu1 %v1036_v2  ;;  %v1041_v7 = vld [vmem:[%s1495_s1 + $0x18] sm:$0xff]   ;;  %v1043_v9 = vld [vmem:[%s1495_s1 + $0x20] sm:$0xff]   ;;  %v1045_v12 = vld [vmem:[%s1495_s1 + $0x28] sm:$0xff]  }
   0x5   :  { %v1052_v11 = vld [vmem:[%s1496_s0 + $0x4] ss:$8 sps:$4 sm:$0xff]   ;;  %v1046_v13 = vld [vmem:[%s1495_s1 + $0x70] sm:$0xff]   ;;  %v1048_v16 = vld [vmem:[%s1495_s1 + $0x78] sm:$0xff]  }
   0x6   :  { %438 = vmatprep.mubr.bf16.mxu0 %v1052_v11  ;;  %v1064_v14 = vld [vmem:[%s1496_s0 + $0x84] ss:$8 sps:$4 sm:$0xff]   ;;  %v1047_v15 = vld [vmem:[%s1495_s1 + $0x30] sm:$0xff]   ;;  %v1049_v17 = vld [vmem:[%s1495_s1 + $0x38] sm:$0xff]  }
   0x7   :  { %909 = vmatpush3.bf16.msra.mxu0 %v1037_v3  ;;  %1027 = vmatpush3.bf16.msra.mxu1 %v1037_v3  ;;  %v1050_v18 = vld [vmem:[%s1496_s0] ss:$8 sps:$4 sm:$0xff]   ;;  %v1053_v19 = vld [vmem:[%s1496_s0 + $0x14] ss:$8 sps:$4 sm:$0xff]   ;;  %v1055_v22 = vld [vmem:[%s1496_s0 + $0x10] ss:$8 sps:$4 sm:$0xff]  }
   0x8   :  { %910 = vmatprep.subr.bf16.mxu0 %v1038_v4  ;;  %1020 = vmatprep.subr.bf16.mxu1 %v1038_v4  ;;  %v1062_v20 = vld [vmem:[%s1496_s0 + $0x80] ss:$8 sps:$4 sm:$0xff]   ;;  %v1068_v21 = vld [vmem:[%s1496_s0 + $0x94] ss:$8 sps:$4 sm:$0xff]   ;;  %v1056_v23 = vld [vmem:[%s1496_s0 + $0x24] ss:$8 sps:$4 sm:$0xff]  }
   0x9   :  { %502 = vmatprep.mubr.bf16.mxu1 %v1064_v14  ;;  %v1070_v24 = vld [vmem:[%s1496_s0 + $0x90] ss:$8 sps:$4 sm:$0xff]   ;;  %v1074_v25 = vld [vmem:[%s1496_s0 + $0xa4] ss:$8 sps:$4 sm:$0xff]   ;;  %v1058_v26 = vld [vmem:[%s1496_s0 + $0x20] ss:$8 sps:$4 sm:$0xff]  }
   0xa   :  { %v1059_v27 = vld [vmem:[%s1496_s0 + $0x34] ss:$8 sps:$4 sm:$0xff]   ;;  %v1076_v28 = vld [vmem:[%s1496_s0 + $0xa0] ss:$8 sps:$4 sm:$0xff]   ;;  %v1061_v30 = vld [vmem:[%s1496_s0 + $0x30] ss:$8 sps:$4 sm:$0xff]  }
   0xb   :  { %911 = vmatpush3.bf16.msra.mxu0 %v1039_v5  ;;  %1028 = vmatpush3.bf16.msra.mxu1 %v1039_v5  ;;  %v1080_v29 = vld [vmem:[%s1496_s0 + $0xb4] ss:$8 sps:$4 sm:$0xff]   ;;  %v1065_v31 = vld [vmem:[%s1496_s0 + $0x44] ss:$8 sps:$4 sm:$0xff]   ;;  %v1082_v32 = vld [vmem:[%s1496_s0 + $0xb0] ss:$8 sps:$4 sm:$0xff]  }
   0xc   :  { %912 = vmatprep.subr.bf16.mxu0 %v1040_v6  ;;  %1021 = vmatprep.subr.bf16.mxu1 %v1040_v6  ;;  %v1086_v33 = vld [vmem:[%s1496_s0 + $0xc4] ss:$8 sps:$4 sm:$0xff]   ;;  %v1067_v34 = vld [vmem:[%s1496_s0 + $0x40] ss:$8 sps:$4 sm:$0xff]   ;;  %v1071_v35 = vld [vmem:[%s1496_s0 + $0x54] ss:$8 sps:$4 sm:$0xff]  }
   0xd   :  { %v1088_v36 = vld [vmem:[%s1496_s0 + $0xc0] ss:$8 sps:$4 sm:$0xff]   ;;  %v1089_v37 = vld [vmem:[%s1496_s0 + $0xd4] ss:$8 sps:$4 sm:$0xff]   ;;  %v1073_v38 = vld [vmem:[%s1496_s0 + $0x50] ss:$8 sps:$4 sm:$0xff]  }
   0xe   :  { %v1077_v39 = vld [vmem:[%s1496_s0 + $0x64] ss:$8 sps:$4 sm:$0xff]   ;;  %v1091_v40 = vld [vmem:[%s1496_s0 + $0xd0] ss:$8 sps:$4 sm:$0xff]   ;;  %v1079_v42 = vld [vmem:[%s1496_s0 + $0x60] ss:$8 sps:$4 sm:$0xff]  }
   0xf   :  { %913 = vmatpush3.bf16.msra.mxu0 %v1041_v7  ;;  %1029 = vmatpush3.bf16.msra.mxu1 %v1041_v7  ;;  %v1092_v41 = vld [vmem:[%s1496_s0 + $0xe4] ss:$8 sps:$4 sm:$0xff]   ;;  %v1083_v43 = vld [vmem:[%s1496_s0 + $0x74] ss:$8 sps:$4 sm:$0xff]   ;;  %v1094_v44 = vld [vmem:[%s1496_s0 + $0xe0] ss:$8 sps:$4 sm:$0xff]  }
  0x10   :  { %914 = vmatprep.subr.bf16.mxu0 %v1042_v8  ;;  %1022 = vmatprep.subr.bf16.mxu1 %v1042_v8  ;;  %v1095_v45 = vld [vmem:[%s1496_s0 + $0xf4] ss:$8 sps:$4 sm:$0xff]   ;;  %v1085_v46 = vld [vmem:[%s1496_s0 + $0x70] ss:$8 sps:$4 sm:$0xff]   ;;  %v1275_v50 = vld [vmem:[%s1497_s2] ss:$0 sm:$0xff] }
  0x11   :  { %v1097_v47 = vld [vmem:[%s1496_s0 + $0xf0] ss:$8 sps:$4 sm:$0xff]  }
  0x13   :  { %915 = vmatpush3.bf16.msra.mxu0 %v1043_v9  ;;  %1030 = vmatpush3.bf16.msra.mxu1 %v1043_v9 }
  0x14   :  { %916 = vmatprep.subr.bf16.mxu0 %v1044_v10  ;;  %1023 = vmatprep.subr.bf16.mxu1 %v1044_v10 }
  0x17   :  { %917 = vmatpush3.bf16.msra.mxu0 %v1045_v12  ;;  %1031 = vmatpush3.bf16.msra.mxu1 %v1045_v12 }
  0x18   :  { %918 = vmatprep.subr.bf16.mxu0 %v1046_v13  ;;  %1024 = vmatprep.subr.bf16.mxu1 %v1046_v13 }
  0x1b   :  { %919 = vmatpush3.bf16.msra.mxu0 %v1047_v15  ;;  %1032 = vmatpush3.bf16.msra.mxu1 %v1047_v15 }
  0x1c   :  { %920 = vmatprep.subr.bf16.mxu0 %v1048_v16  ;;  %1025 = vmatprep.subr.bf16.mxu1 %v1048_v16 }
  0x1f   :  { %921 = vmatpush3.bf16.msra.mxu0 %v1049_v17  ;;  %1033 = vmatpush3.bf16.msra.mxu1 %v1049_v17 }
  0x22   :  { %439 = vmatmul.mubr.bf16.vlgmr.msra.gmra.mrb[0].mxu0 %v1050_v18  ;;  %503 = vmatmul.mubr.bf16.vlgmr.msra.gmra.mrb[0].mxu1 %v1062_v20 }
  0x23   :  { %446 = vmatprep.mubr.bf16.mxu0 %v1053_v19  ;;  %510 = vmatprep.mubr.bf16.mxu1 %v1068_v21 }
  0x2a   :  { %447 = vmatmul.mubr.bf16.gmra.mrb[4].mxu0 %v1055_v22  ;;  %511 = vmatmul.mubr.bf16.gmra.mrb[4].mxu1 %v1070_v24 }
  0x2b   :  { %454 = vmatprep.mubr.bf16.mxu0 %v1056_v23  ;;  %518 = vmatprep.mubr.bf16.mxu1 %v1074_v25 }
  0x32   :  { %455 = vmatmul.mubr.bf16.gmra.mrb[8].mxu0 %v1058_v26  ;;  %519 = vmatmul.mubr.bf16.gmra.mrb[8].mxu1 %v1076_v28 }
  0x33   :  { %462 = vmatprep.mubr.bf16.mxu0 %v1059_v27  ;;  %526 = vmatprep.mubr.bf16.mxu1 %v1080_v29 }
  0x3a   :  { %463 = vmatmul.mubr.bf16.gmra.mrb[12].mxu0 %v1061_v30  ;;  %527 = vmatmul.mubr.bf16.gmra.mrb[12].mxu1 %v1082_v32 }
  0x3b   :  { %470 = vmatprep.mubr.bf16.mxu0 %v1065_v31  ;;  %534 = vmatprep.mubr.bf16.mxu1 %v1086_v33 }
  0x42   :  { %471 = vmatmul.mubr.bf16.gmra.mrb[16].mxu0 %v1067_v34  ;;  %535 = vmatmul.mubr.bf16.gmra.mrb[16].mxu1 %v1088_v36 }
  0x43   :  { %478 = vmatprep.mubr.bf16.mxu0 %v1071_v35  ;;  %542 = vmatprep.mubr.bf16.mxu1 %v1089_v37 }
  0x4a   :  { %479 = vmatmul.mubr.bf16.gmra.mrb[20].mxu0 %v1073_v38  ;;  %543 = vmatmul.mubr.bf16.gmra.mrb[20].mxu1 %v1091_v40 }
  0x4b   :  { %486 = vmatprep.mubr.bf16.mxu0 %v1077_v39  ;;  %550 = vmatprep.mubr.bf16.mxu1 %v1092_v41 }
  0x52   :  { %487 = vmatmul.mubr.bf16.gmra.mrb[24].mxu0 %v1079_v42  ;;  %551 = vmatmul.mubr.bf16.gmra.mrb[24].mxu1 %v1094_v44 }
  0x53   :  { %494 = vmatprep.mubr.bf16.mxu0 %v1083_v43  ;;  %558 = vmatprep.mubr.bf16.mxu1 %v1095_v45 }
  0x5a   :  { %495 = vmatmul.mubr.bf16.gmra.mrb[28].mxu0 %v1085_v46  ;;  %559 = vmatmul.mubr.bf16.gmra.mrb[28].mxu1 %v1097_v47 }
  0xf5   :  { %v922_v48 = vpop.f32.mrb[0].mxu0  ;;  %v970_v51 = vpop.f32.mrb[0].mxu1 }
  0xf6   :  { %v923_v49 = vpop.f32.mrb[1].mxu0  ;;  %v971_v54 = vpop.f32.mrb[1].mxu1 }
  0xf7   :  { %v924_v52 = vadd.f32 %v923_v49, %v922_v48  ;;  %v925_v53 = vpop.f32.mrb[2].mxu0  ;;  %v972_v56 = vadd.f32 %v971_v54, %v970_v51  ;;  %v973_v57 = vpop.f32.mrb[2].mxu1 }
  0xf8   :  { %v926_v55 = vpop.f32.mrb[3].mxu0  ;;  %v974_v60 = vpop.f32.mrb[3].mxu1 }
  0xf9   :  { %v673_v58 = vadd.f32 %v924_v52, %v1275_v50  ;;  %v927_v59 = vadd.f32 %v926_v55, %v925_v53  ;;  %v1279_v61 = vadd.f32 %v972_v56, %v1275_v50  ;;  %v975_v62 = vadd.f32 %v974_v60, %v973_v57 }
  0xfb   :  { %813 = vst [vmem:[%s1498_s3] sm:$0xff] %v673_v58  ;;  %v674_v63 = vadd.f32 %v927_v59, %v1275_v50  ;;  %829 = vst [vmem:[%s1498_s3 + $0x80] sm:$0xff] %v1279_v61  ;;  %v1290_v0 = vadd.f32 %v975_v62, %v1275_v50  ;;  %v743_v1 = vmul.f32 %v673_v58, %v673_v58 }
  0xfd   :  { %v705_v2 = vadd.f32 %v674_v63, %v673_v58  ;;  %v744_v3 = vmul.f32 %v674_v63, %v674_v63  ;;  %814 = vst [vmem:[%s1498_s3 + $0x8] sm:$0xff] %v674_v63  ;;  %v928_v4 = vpop.f32.mrb[4].mxu0  ;;  %830 = vst [vmem:[%s1498_s3 + $0x88] sm:$0xff] %v1290_v0  ;;  %v976_v6 = vpop.f32.mrb[4].mxu1 }
  0xfe   :  { %v929_v5 = vpop.f32.mrb[5].mxu0  ;;  %v977_v10 = vpop.f32.mrb[5].mxu1 }
  0xff   :  { %v775_v7 = vadd.f32 %v744_v3, %v743_v1  ;;  %v930_v8 = vadd.f32 %v929_v5, %v928_v4  ;;  %v931_v9 = vpop.f32.mrb[6].mxu0  ;;  %v978_v12 = vadd.f32 %v977_v10, %v976_v6  ;;  %v979_v13 = vpop.f32.mrb[6].mxu1 }
 0x100   :  { %v932_v11 = vpop.f32.mrb[7].mxu0  ;;  %v980_v16 = vpop.f32.mrb[7].mxu1 }
 0x101   :  { %v675_v14 = vadd.f32 %v930_v8, %v1275_v50  ;;  %v933_v15 = vadd.f32 %v932_v11, %v931_v9  ;;  %v1301_v17 = vadd.f32 %v978_v12, %v1275_v50  ;;  %v981_v18 = vadd.f32 %v980_v16, %v979_v13 }
 0x103   :  { %v706_v19 = vadd.f32 %v705_v2, %v675_v14  ;;  %v745_v20 = vmul.f32 %v675_v14, %v675_v14  ;;  %815 = vst [vmem:[%s1498_s3 + $0x10] sm:$0xff] %v675_v14  ;;  %v676_v21 = vadd.f32 %v933_v15, %v1275_v50  ;;  %831 = vst [vmem:[%s1498_s3 + $0x90] sm:$0xff] %v1301_v17 }
 0x104   :  { %v1312_v22 = vadd.f32 %v981_v18, %v1275_v50 }
 0x105   :  { %v776_v23 = vadd.f32 %v775_v7, %v745_v20  ;;  %v707_v24 = vadd.f32 %v706_v19, %v676_v21  ;;  %v746_v25 = vmul.f32 %v676_v21, %v676_v21  ;;  %816 = vst [vmem:[%s1498_s3 + $0x18] sm:$0xff] %v676_v21  ;;  %v934_v26 = vpop.f32.mrb[8].mxu0  ;;  %v982_v28 = vpop.f32.mrb[8].mxu1 }
 0x106   :  { %v935_v27 = vpop.f32.mrb[9].mxu0  ;;  %832 = vst [vmem:[%s1498_s3 + $0x98] sm:$0xff] %v1312_v22  ;;  %v983_v32 = vpop.f32.mrb[9].mxu1 }
 0x107   :  { %v777_v29 = vadd.f32 %v776_v23, %v746_v25  ;;  %v936_v30 = vadd.f32 %v935_v27, %v934_v26  ;;  %v937_v31 = vpop.f32.mrb[10].mxu0  ;;  %v984_v34 = vadd.f32 %v983_v32, %v982_v28  ;;  %v985_v35 = vpop.f32.mrb[10].mxu1 }
 0x108   :  { %v938_v33 = vpop.f32.mrb[11].mxu0  ;;  %v986_v38 = vpop.f32.mrb[11].mxu1 }
 0x109   :  { %v677_v36 = vadd.f32 %v936_v30, %v1275_v50  ;;  %v939_v37 = vadd.f32 %v938_v33, %v937_v31  ;;  %v1323_v39 = vadd.f32 %v984_v34, %v1275_v50  ;;  %v987_v40 = vadd.f32 %v986_v38, %v985_v35 }
 0x10b   :  { %v708_v41 = vadd.f32 %v707_v24, %v677_v36  ;;  %v747_v42 = vmul.f32 %v677_v36, %v677_v36  ;;  %817 = vst [vmem:[%s1498_s3 + $0x20] sm:$0xff] %v677_v36  ;;  %v678_v43 = vadd.f32 %v939_v37, %v1275_v50  ;;  %833 = vst [vmem:[%s1498_s3 + $0xa0] sm:$0xff] %v1323_v39 }
 0x10c   :  { %v1334_v44 = vadd.f32 %v987_v40, %v1275_v50 }
 0x10d   :  { %v778_v45 = vadd.f32 %v777_v29, %v747_v42  ;;  %v709_v46 = vadd.f32 %v708_v41, %v678_v43  ;;  %v748_v47 = vmul.f32 %v678_v43, %v678_v43  ;;  %818 = vst [vmem:[%s1498_s3 + $0x28] sm:$0xff] %v678_v43  ;;  %v940_v48 = vpop.f32.mrb[12].mxu0  ;;  %v988_v51 = vpop.f32.mrb[12].mxu1 }
 0x10e   :  { %v941_v49 = vpop.f32.mrb[13].mxu0  ;;  %834 = vst [vmem:[%s1498_s3 + $0xa8] sm:$0xff] %v1334_v44  ;;  %v989_v55 = vpop.f32.mrb[13].mxu1 }
 0x10f   :  { %v779_v52 = vadd.f32 %v778_v45, %v748_v47  ;;  %v942_v53 = vadd.f32 %v941_v49, %v940_v48  ;;  %v943_v54 = vpop.f32.mrb[14].mxu0  ;;  %v990_v57 = vadd.f32 %v989_v55, %v988_v51  ;;  %v991_v58 = vpop.f32.mrb[14].mxu1 }
 0x110   :  { %v944_v56 = vpop.f32.mrb[15].mxu0  ;;  %v992_v62 = vpop.f32.mrb[15].mxu1 }
 0x111   :  { %v679_v59 = vadd.f32 %v942_v53, %v1275_v50  ;;  %v945_v60 = vadd.f32 %v944_v56, %v943_v54  ;;  %v1345_v63 = vadd.f32 %v990_v57, %v1275_v50  ;;  %v993_v1 = vadd.f32 %v992_v62, %v991_v58 }
 0x113   :  { %v710_v2 = vadd.f32 %v709_v46, %v679_v59  ;;  %v749_v3 = vmul.f32 %v679_v59, %v679_v59  ;;  %819 = vst [vmem:[%s1498_s3 + $0x30] sm:$0xff] %v679_v59  ;;  %v680_v4 = vadd.f32 %v945_v60, %v1275_v50  ;;  %835 = vst [vmem:[%s1498_s3 + $0xb0] sm:$0xff] %v1345_v63 }
 0x114   :  { %v1356_v5 = vadd.f32 %v993_v1, %v1275_v50 }
 0x115   :  { %v780_v6 = vadd.f32 %v779_v52, %v749_v3  ;;  %v711_v7 = vadd.f32 %v710_v2, %v680_v4  ;;  %v750_v8 = vmul.f32 %v680_v4, %v680_v4  ;;  %820 = vst [vmem:[%s1498_s3 + $0x38] sm:$0xff] %v680_v4  ;;  %v946_v9 = vpop.f32.mrb[16].mxu0  ;;  %v994_v11 = vpop.f32.mrb[16].mxu1 }
 0x116   :  { %v947_v10 = vpop.f32.mrb[17].mxu0  ;;  %836 = vst [vmem:[%s1498_s3 + $0xb8] sm:$0xff] %v1356_v5  ;;  %v995_v15 = vpop.f32.mrb[17].mxu1 }
 0x117   :  { %v781_v12 = vadd.f32 %v780_v6, %v750_v8  ;;  %v948_v13 = vadd.f32 %v947_v10, %v946_v9  ;;  %v949_v14 = vpop.f32.mrb[18].mxu0  ;;  %v996_v18 = vadd.f32 %v995_v15, %v994_v11  ;;  %v997_v19 = vpop.f32.mrb[18].mxu1 }
 0x118   :  { %v950_v16 = vpop.f32.mrb[19].mxu0  ;;  %v998_v23 = vpop.f32.mrb[19].mxu1 }
 0x119   :  { %v681_v20 = vadd.f32 %v948_v13, %v1275_v50  ;;  %v951_v21 = vadd.f32 %v950_v16, %v949_v14  ;;  %v1367_v24 = vadd.f32 %v996_v18, %v1275_v50  ;;  %v999_v25 = vadd.f32 %v998_v23, %v997_v19 }
 0x11b   :  { %v712_v26 = vadd.f32 %v711_v7, %v681_v20  ;;  %v751_v27 = vmul.f32 %v681_v20, %v681_v20  ;;  %821 = vst [vmem:[%s1498_s3 + $0x40] sm:$0xff] %v681_v20  ;;  %v682_v28 = vadd.f32 %v951_v21, %v1275_v50  ;;  %837 = vst [vmem:[%s1498_s3 + $0xc0] sm:$0xff] %v1367_v24 }
 0x11c   :  { %v1378_v29 = vadd.f32 %v999_v25, %v1275_v50 }
 0x11d   :  { %v782_v30 = vadd.f32 %v781_v12, %v751_v27  ;;  %v713_v31 = vadd.f32 %v712_v26, %v682_v28  ;;  %v752_v32 = vmul.f32 %v682_v28, %v682_v28  ;;  %822 = vst [vmem:[%s1498_s3 + $0x48] sm:$0xff] %v682_v28  ;;  %v952_v33 = vpop.f32.mrb[20].mxu0  ;;  %v1000_v35 = vpop.f32.mrb[20].mxu1 }
 0x11e   :  { %v953_v34 = vpop.f32.mrb[21].mxu0  ;;  %838 = vst [vmem:[%s1498_s3 + $0xc8] sm:$0xff] %v1378_v29  ;;  %v1001_v40 = vpop.f32.mrb[21].mxu1 }
 0x11f   :  { %v783_v36 = vadd.f32 %v782_v30, %v752_v32  ;;  %v954_v37 = vadd.f32 %v953_v34, %v952_v33  ;;  %v955_v38 = vpop.f32.mrb[22].mxu0  ;;  %v1002_v42 = vadd.f32 %v1001_v40, %v1000_v35  ;;  %v1003_v43 = vpop.f32.mrb[22].mxu1 }
 0x120   :  { %v956_v41 = vpop.f32.mrb[23].mxu0  ;;  %v1004_v47 = vpop.f32.mrb[23].mxu1 }
 0x121   :  { %v683_v45 = vadd.f32 %v954_v37, %v1275_v50  ;;  %v957_v46 = vadd.f32 %v956_v41, %v955_v38  ;;  %v1389_v48 = vadd.f32 %v1002_v42, %v1275_v50  ;;  %v1005_v49 = vadd.f32 %v1004_v47, %v1003_v43 }
 0x123   :  { %v714_v51 = vadd.f32 %v713_v31, %v683_v45  ;;  %v753_v52 = vmul.f32 %v683_v45, %v683_v45  ;;  %823 = vst [vmem:[%s1498_s3 + $0x50] sm:$0xff] %v683_v45  ;;  %v684_v53 = vadd.f32 %v957_v46, %v1275_v50  ;;  %839 = vst [vmem:[%s1498_s3 + $0xd0] sm:$0xff] %v1389_v48 }
 0x124   :  { %v1400_v54 = vadd.f32 %v1005_v49, %v1275_v50  ;;  %v759_v49 = vmul.f32 %v1279_v61, %v1279_v61 }
 0x125   :  { %v784_v55 = vadd.f32 %v783_v36, %v753_v52  ;;  %v715_v56 = vadd.f32 %v714_v51, %v684_v53  ;;  %v754_v57 = vmul.f32 %v684_v53, %v684_v53  ;;  %824 = vst [vmem:[%s1498_s3 + $0x58] sm:$0xff] %v684_v53  ;;  %v958_v58 = vpop.f32.mrb[24].mxu0  ;;  %v1006_v60 = vpop.f32.mrb[24].mxu1 }
 0x126   :  { %v959_v59 = vpop.f32.mrb[25].mxu0  ;;  %840 = vst [vmem:[%s1498_s3 + $0xd8] sm:$0xff] %v1400_v54  ;;  %v1007_v3 = vpop.f32.mrb[25].mxu1 }
 0x127   :  { %v785_v62 = vadd.f32 %v784_v55, %v754_v57  ;;  %v960_v1 = vadd.f32 %v959_v59, %v958_v58  ;;  %v961_v2 = vpop.f32.mrb[26].mxu0  ;;  %v1008_v6 = vadd.f32 %v1007_v3, %v1006_v60  ;;  %v1009_v7 = vpop.f32.mrb[26].mxu1  ;;  %v762_v59 = vmul.f32 %v1312_v22, %v1312_v22 }
 0x128   :  { %v962_v4 = vpop.f32.mrb[27].mxu0  ;;  %v1010_v10 = vpop.f32.mrb[27].mxu1 }
 0x129   :  { %v685_v8 = vadd.f32 %v960_v1, %v1275_v50  ;;  %v963_v9 = vadd.f32 %v962_v4, %v961_v2  ;;  %v1411_v11 = vadd.f32 %v1008_v6, %v1275_v50  ;;  %v1011_v12 = vadd.f32 %v1010_v10, %v1009_v7 }
 0x12a   :  { %v767_v10 = vmul.f32 %v1367_v24, %v1367_v24 }
 0x12b   :  { %v716_v13 = vadd.f32 %v715_v56, %v685_v8  ;;  %v755_v14 = vmul.f32 %v685_v8, %v685_v8  ;;  %825 = vst [vmem:[%s1498_s3 + $0x60] sm:$0xff] %v685_v8  ;;  %v686_v15 = vadd.f32 %v963_v9, %v1275_v50  ;;  %841 = vst [vmem:[%s1498_s3 + $0xe0] sm:$0xff] %v1411_v11 }
 0x12c   :  { %v1422_v16 = vadd.f32 %v1011_v12, %v1275_v50  ;;  %v761_v56 = vmul.f32 %v1301_v17, %v1301_v17 }
 0x12d   :  { %v786_v18 = vadd.f32 %v785_v62, %v755_v14  ;;  %v717_v19 = vadd.f32 %v716_v13, %v686_v15  ;;  %v756_v20 = vmul.f32 %v686_v15, %v686_v15  ;;  %826 = vst [vmem:[%s1498_s3 + $0x68] sm:$0xff] %v686_v15  ;;  %v964_v21 = vpop.f32.mrb[28].mxu0  ;;  %v1012_v25 = vpop.f32.mrb[28].mxu1  ;;  %v768_v14 = vmul.f32 %v1378_v29, %v1378_v29 }
 0x12e   :  { %v965_v23 = vpop.f32.mrb[29].mxu0  ;;  %842 = vst [vmem:[%s1498_s3 + $0xe8] sm:$0xff] %v1422_v16  ;;  %v1013_v30 = vpop.f32.mrb[29].mxu1 }
 0x12f   :  { %v787_v26 = vadd.f32 %v786_v18, %v756_v20  ;;  %v966_v27 = vadd.f32 %v965_v23, %v964_v21  ;;  %v967_v28 = vpop.f32.mrb[30].mxu0  ;;  %v1014_v32 = vadd.f32 %v1013_v30, %v1012_v25  ;;  %v1015_v33 = vpop.f32.mrb[30].mxu1  ;;  %v769_v18 = vmul.f32 %v1389_v48, %v1389_v48 }
 0x130   :  { %v968_v31 = vpop.f32.mrb[31].mxu0  ;;  %v1016_v36 = vpop.f32.mrb[31].mxu1  ;;  %v770_v20 = vmul.f32 %v1400_v54, %v1400_v54  ;;  %v771_v23 = vmul.f32 %v1411_v11, %v1411_v11 }
 0x131   :  { %v687_v34 = vadd.f32 %v966_v27, %v1275_v50  ;;  %v969_v35 = vadd.f32 %v968_v31, %v967_v28  ;;  %v703_v37 = vadd.f32 %v1014_v32, %v1275_v50  ;;  %v1017_v38 = vadd.f32 %v1016_v36, %v1015_v33 }
 0x133   :  { %v718_v40 = vadd.f32 %v717_v19, %v687_v34  ;;  %v757_v41 = vmul.f32 %v687_v34, %v687_v34  ;;  %827 = vst [vmem:[%s1498_s3 + $0x70] sm:$0xff] %v687_v34  ;;  %v688_v42 = vadd.f32 %v969_v35, %v1275_v50  ;;  %843 = vst [vmem:[%s1498_s3 + $0xf0] sm:$0xff] %v703_v37 }
 0x134   :  { %v704_v43 = vadd.f32 %v1017_v38, %v1275_v50  ;;  %v760_v50 = vmul.f32 %v1290_v0, %v1290_v0  ;;  %v773_v27 = vmul.f32 %v703_v37, %v703_v37 }
 0x135   :  { %v788_v45 = vadd.f32 %v787_v26, %v757_v41  ;;  %v719_v46 = vadd.f32 %v718_v40, %v688_v42  ;;  %v758_v47 = vmul.f32 %v688_v42, %v688_v42  ;;  %828 = vst [vmem:[%s1498_s3 + $0x78] sm:$0xff] %v688_v42  ;;  %v772_v26 = vmul.f32 %v1422_v16, %v1422_v16 }
 0x136   :  { %844 = vst [vmem:[%s1498_s3 + $0xf8] sm:$0xff] %v704_v43  ;;  %v774_v32 = vmul.f32 %v704_v43, %v704_v43 }
 0x137   :  { %v720_v51 = vadd.f32 %v719_v46, %v1279_v61  ;;  %v789_v52 = vadd.f32 %v788_v45, %v758_v47  ;;  %v763_v61 = vmul.f32 %v1323_v39, %v1323_v39 }
 0x139   :  { %v721_v53 = vadd.f32 %v720_v51, %v1290_v0  ;;  %v790_v55 = vadd.f32 %v789_v52, %v759_v49  ;;  %v764_v0 = vmul.f32 %v1334_v44, %v1334_v44 }
 0x13b   :  { %v722_v57 = vadd.f32 %v721_v53, %v1301_v17  ;;  %v791_v58 = vadd.f32 %v790_v55, %v760_v50  ;;  %v765_v17 = vmul.f32 %v1345_v63, %v1345_v63 }
 0x13d   :  { %v723_v60 = vadd.f32 %v722_v57, %v1312_v22  ;;  %v792_v62 = vadd.f32 %v791_v58, %v761_v56  ;;  %v766_v22 = vmul.f32 %v1356_v5, %v1356_v5 }
 0x13f   :  { %v793_v1 = vadd.f32 %v792_v62, %v762_v59  ;;  %v724_v2 = vadd.f32 %v723_v60, %v1323_v39 }
 0x141   :  { %v725_v3 = vadd.f32 %v724_v2, %v1334_v44  ;;  %v794_v4 = vadd.f32 %v793_v1, %v763_v61 }
 0x143   :  { %v726_v6 = vadd.f32 %v725_v3, %v1345_v63  ;;  %v795_v7 = vadd.f32 %v794_v4, %v764_v0 }
 0x145   :  { %v727_v8 = vadd.f32 %v726_v6, %v1356_v5  ;;  %v796_v9 = vadd.f32 %v795_v7, %v765_v17 }
 0x147   :  { %v728_v39 = vadd.f32 %v727_v8, %v1367_v24  ;;  %v797_v12 = vadd.f32 %v796_v9, %v766_v22 }
 0x149   :  { %v798_v44 = vadd.f32 %v797_v12, %v767_v10  ;;  %v729_v13 = vadd.f32 %v728_v39, %v1378_v29 }
 0x14b   :  { %v799_v63 = vadd.f32 %v798_v44, %v768_v14  ;;  %v730_v15 = vadd.f32 %v729_v13, %v1389_v48 }
 0x14d   :  { %v800_v5 = vadd.f32 %v799_v63, %v769_v18  ;;  %v731_v19 = vadd.f32 %v730_v15, %v1400_v54 }
 0x14f   :  { %v801_v24 = vadd.f32 %v800_v5, %v770_v20  ;;  %v732_v21 = vadd.f32 %v731_v19, %v1411_v11 }
 0x151   :  { %v802_v25 = vadd.f32 %v801_v24, %v771_v23  ;;  %v733_v29 = vadd.f32 %v732_v21, %v1422_v16 }
 0x153   :  { %v803_v48 = vadd.f32 %v802_v25, %v772_v26  ;;  %v734_v28 = vadd.f32 %v733_v29, %v703_v37 }
 0x155   :  { %v804_v30 = vadd.f32 %v803_v48, %v773_v27  ;;  %v735_v31 = vadd.f32 %v734_v28, %v704_v43 }
 0x157   :  { %v736_v33 = vrot.slane %v735_v31, 4  ;;  %v805_v54 = vadd.f32 %v804_v30, %v774_v32 }
 0x159   :  { %v737_v34 = vadd.f32 %v736_v33, %v735_v31  ;;  %v806_v35 = vrot.slane %v805_v54, 4 }
 0x15b   :  { %v738_v36 = vrot.slane %v737_v34, 2  ;;  %v807_v38 = vadd.f32 %v806_v35, %v805_v54 }
 0x15d   :  { %v739_v40 = vadd.f32 %v738_v36, %v737_v34  ;;  %v808_v11 = vrot.slane %v807_v38, 2 }
 0x15f   :  { %v740_v41 = vrot.slane %v739_v40, 1  ;;  %v809_v42 = vadd.f32 %v808_v11, %v807_v38 }
 0x161   :  { %v741_v45 = vadd.f32 %v740_v41, %v739_v40  ;;  %v810_v46 = vrot.slane %v809_v42, 1 }
 0x163   :  { %742 = vst [vmem:[%s1499_s4] sm:$0x1] %v741_v45  ;;  %v811_v16 = vadd.f32 %v810_v46, %v809_v42 }
 0x165   :  { %812 = vst [vmem:[%s1500_s5] sm:$0x1] %v811_v16 }

// kernel: _lambda_.13
= control target key start
LH: loop header
LB: loop body
LE: loop exit
PB: predicated region body
PF: predicated region fallthrough
CT: control target
= control target key end

     0   :  { %s2244_s1 = inlined_call_operand.vmem [shape: bf16[512,128], index: 1, kind: input, shape index: {}]   ;;  %s2245_s0 = inlined_call_operand.vmem [shape: bf16[256,512], index: 0, kind: input, shape index: {}]   ;;  %s2246_s2 = inlined_call_operand.vmem [shape: f32[1,128], index: 2, kind: input, shape index: {}]   ;;  %s2247_s3 = inlined_call_operand.vmem [shape: f32[256,128], index: 3, kind: output, shape index: {0}]   ;;  %s2248_s4 = inlined_call_operand.vmem [shape: f32[1,1,128], index: 4, kind: output, shape index: {1}]   ;;  %s2249_s5 = inlined_call_operand.vmem [shape: f32[1,1,128], index: 5, kind: output, shape index: {2}]  }
   0x1   :  { %v1659_v0 = vld [vmem:[%s2244_s1 + $0x40] sm:$0xff]   ;;  %v1663_v4 = vld [vmem:[%s2244_s1 + $0x48] sm:$0xff]   ;;  %v1667_v8 = vld [vmem:[%s2244_s1 + $0x50] sm:$0xff]  }
   0x2   :  { %v1660_v1 = vld [vmem:[%s2244_s1 + $0xc0] sm:$0xff]   ;;  %1435 = vmatprep.subr.bf16.mxu0 %v1659_v0  ;;  %v1664_v5 = vld [vmem:[%s2244_s1 + $0xc8] sm:$0xff]   ;;  %v1668_v9 = vld [vmem:[%s2244_s1 + $0xd0] sm:$0xff]  }
   0x3   :  { %v1661_v2 = vld [vmem:[%s2244_s1] sm:$0xff]   ;;  %1547 = vmatprep.subr.bf16.mxu1 %v1660_v1  ;;  %v1665_v6 = vld [vmem:[%s2244_s1 + $0x8] sm:$0xff]   ;;  %v1669_v10 = vld [vmem:[%s2244_s1 + $0x10] sm:$0xff]  }
   0x4   :  { %v1662_v3 = vld [vmem:[%s2244_s1 + $0x80] sm:$0xff]   ;;  %1436 = vmatpush3.bf16.msra.mxu0 %v1661_v2  ;;  %v1666_v7 = vld [vmem:[%s2244_s1 + $0x88] sm:$0xff]   ;;  %v1670_v11 = vld [vmem:[%s2244_s1 + $0x90] sm:$0xff]  }
   0x5   :  { %1548 = vmatpush3.bf16.msra.mxu1 %v1662_v3  ;;  %1437 = vmatprep.subr.bf16.mxu0 %v1663_v4  ;;  %v1671_v12 = vld [vmem:[%s2244_s1 + $0x58] sm:$0xff]   ;;  %v1675_v16 = vld [vmem:[%s2244_s1 + $0x60] sm:$0xff]   ;;  %v1679_v20 = vld [vmem:[%s2244_s1 + $0x68] sm:$0xff]  }
   0x6   :  { %1549 = vmatprep.subr.bf16.mxu1 %v1664_v5  ;;  %v1672_v13 = vld [vmem:[%s2244_s1 + $0xd8] sm:$0xff]   ;;  %v1676_v17 = vld [vmem:[%s2244_s1 + $0xe0] sm:$0xff]   ;;  %v1680_v21 = vld [vmem:[%s2244_s1 + $0xe8] sm:$0xff]  }
   0x7   :  { %v1673_v14 = vld [vmem:[%s2244_s1 + $0x18] sm:$0xff]   ;;  %v1677_v18 = vld [vmem:[%s2244_s1 + $0x20] sm:$0xff]   ;;  %v1681_v22 = vld [vmem:[%s2244_s1 + $0x28] sm:$0xff]  }
   0x8   :  { %1438 = vmatpush3.bf16.msra.mxu0 %v1665_v6  ;;  %v1674_v15 = vld [vmem:[%s2244_s1 + $0x98] sm:$0xff]   ;;  %v1678_v19 = vld [vmem:[%s2244_s1 + $0xa0] sm:$0xff]   ;;  %v1682_v23 = vld [vmem:[%s2244_s1 + $0xa8] sm:$0xff]  }
   0x9   :  { %1550 = vmatpush3.bf16.msra.mxu1 %v1666_v7  ;;  %1439 = vmatprep.subr.bf16.mxu0 %v1667_v8  ;;  %v1683_v24 = vld [vmem:[%s2244_s1 + $0x70] sm:$0xff]   ;;  %v1687_v28 = vld [vmem:[%s2244_s1 + $0x78] sm:$0xff]  }
   0xa   :  { %1551 = vmatprep.subr.bf16.mxu1 %v1668_v9  ;;  %v1684_v25 = vld [vmem:[%s2244_s1 + $0xf0] sm:$0xff]   ;;  %v1688_v29 = vld [vmem:[%s2244_s1 + $0xf8] sm:$0xff]  }
   0xb   :  { %v1685_v26 = vld [vmem:[%s2244_s1 + $0x30] sm:$0xff]   ;;  %v1689_v30 = vld [vmem:[%s2244_s1 + $0x38] sm:$0xff]  }
   0xc   :  { %1440 = vmatpush3.bf16.msra.mxu0 %v1669_v10  ;;  %v1686_v27 = vld [vmem:[%s2244_s1 + $0xb0] sm:$0xff]   ;;  %v1690_v31 = vld [vmem:[%s2244_s1 + $0xb8] sm:$0xff]  }
   0xd   :  { %1552 = vmatpush3.bf16.msra.mxu1 %v1670_v11  ;;  %1441 = vmatprep.subr.bf16.mxu0 %v1671_v12  ;;  %v1691_v32 = vld [vmem:[%s2245_s0] ss:$16 sps:$4 sm:$0xff]   ;;  %v1693_v33 = vld [vmem:[%s2245_s0 + $0x4] ss:$16 sps:$4 sm:$0xff]   ;;  %v1694_v34 = vld [vmem:[%s2245_s0 + $0x8] ss:$16 sps:$4 sm:$0xff]  }
   0xe   :  { %1553 = vmatprep.subr.bf16.mxu1 %v1672_v13  ;;  %v1696_v35 = vld [vmem:[%s2245_s0 + $0xc] ss:$16 sps:$4 sm:$0xff]   ;;  %758 = vmatprep.mubr.bf16.mxu0 %v1693_v33  ;;  %v1697_v36 = vld [vmem:[%s2245_s0 + $0x24] ss:$16 sps:$4 sm:$0xff]   ;;  %v1701_v38 = vld [vmem:[%s2245_s0 + $0x20] ss:$16 sps:$4 sm:$0xff]  }
   0xf   :  { %919 = vmatprep.mubr.bf16.mxu1 %v1696_v35  ;;  %v1699_v37 = vld [vmem:[%s2245_s0 + $0x2c] ss:$16 sps:$4 sm:$0xff]   ;;  %v1702_v39 = vld [vmem:[%s2245_s0 + $0x28] ss:$16 sps:$4 sm:$0xff]   ;;  %v1703_v40 = vld [vmem:[%s2245_s0 + $0x44] ss:$16 sps:$4 sm:$0xff]  }
  0x10   :  { %1442 = vmatpush3.bf16.msra.mxu0 %v1673_v14  ;;  %v1705_v41 = vld [vmem:[%s2245_s0 + $0x4c] ss:$16 sps:$4 sm:$0xff]   ;;  %v1707_v42 = vld [vmem:[%s2245_s0 + $0x40] ss:$16 sps:$4 sm:$0xff]   ;;  %v1708_v43 = vld [vmem:[%s2245_s0 + $0x48] ss:$16 sps:$4 sm:$0xff]  }
  0x11   :  { %1554 = vmatpush3.bf16.msra.mxu1 %v1674_v15  ;;  %1443 = vmatprep.subr.bf16.mxu0 %v1675_v16  ;;  %v1709_v44 = vld [vmem:[%s2245_s0 + $0x64] ss:$16 sps:$4 sm:$0xff]   ;;  %v1711_v45 = vld [vmem:[%s2245_s0 + $0x6c] ss:$16 sps:$4 sm:$0xff]   ;;  %v1713_v46 = vld [vmem:[%s2245_s0 + $0x60] ss:$16 sps:$4 sm:$0xff]  }
  0x12   :  { %1555 = vmatprep.subr.bf16.mxu1 %v1676_v17  ;;  %v1714_v47 = vld [vmem:[%s2245_s0 + $0x68] ss:$16 sps:$4 sm:$0xff]   ;;  %v1715_v48 = vld [vmem:[%s2245_s0 + $0x84] ss:$16 sps:$4 sm:$0xff]   ;;  %v1717_v49 = vld [vmem:[%s2245_s0 + $0x8c] ss:$16 sps:$4 sm:$0xff]  }
  0x13   :  { %v1719_v50 = vld [vmem:[%s2245_s0 + $0x80] ss:$16 sps:$4 sm:$0xff]   ;;  %v1720_v51 = vld [vmem:[%s2245_s0 + $0x88] ss:$16 sps:$4 sm:$0xff]   ;;  %v1721_v52 = vld [vmem:[%s2245_s0 + $0xa4] ss:$16 sps:$4 sm:$0xff]  }
  0x14   :  { %1444 = vmatpush3.bf16.msra.mxu0 %v1677_v18  ;;  %v1723_v53 = vld [vmem:[%s2245_s0 + $0xac] ss:$16 sps:$4 sm:$0xff]   ;;  %v1725_v54 = vld [vmem:[%s2245_s0 + $0xa0] ss:$16 sps:$4 sm:$0xff]   ;;  %v1726_v55 = vld [vmem:[%s2245_s0 + $0xa8] ss:$16 sps:$4 sm:$0xff]  }
  0x15   :  { %1556 = vmatpush3.bf16.msra.mxu1 %v1678_v19  ;;  %1445 = vmatprep.subr.bf16.mxu0 %v1679_v20  ;;  %v1727_v56 = vld [vmem:[%s2245_s0 + $0xc4] ss:$16 sps:$4 sm:$0xff]   ;;  %v1729_v57 = vld [vmem:[%s2245_s0 + $0xcc] ss:$16 sps:$4 sm:$0xff]   ;;  %v1731_v58 = vld [vmem:[%s2245_s0 + $0xc0] ss:$16 sps:$4 sm:$0xff]  }
  0x16   :  { %1557 = vmatprep.subr.bf16.mxu1 %v1680_v21  ;;  %v1732_v59 = vld [vmem:[%s2245_s0 + $0xc8] ss:$16 sps:$4 sm:$0xff]   ;;  %v1733_v60 = vld [vmem:[%s2245_s0 + $0xe4] ss:$16 sps:$4 sm:$0xff]   ;;  %v1735_v61 = vld [vmem:[%s2245_s0 + $0xec] ss:$16 sps:$4 sm:$0xff]  }
  0x17   :  { %v1737_v62 = vld [vmem:[%s2245_s0 + $0xe0] ss:$16 sps:$4 sm:$0xff]   ;;  %v1738_v63 = vld [vmem:[%s2245_s0 + $0xe8] ss:$16 sps:$4 sm:$0xff]   ;;  %v1739_v0 = vld [vmem:[%s2245_s0 + $0x104] ss:$16 sps:$4 sm:$0xff]  }
  0x18   :  { %1446 = vmatpush3.bf16.msra.mxu0 %v1681_v22  ;;  %v1741_v1 = vld [vmem:[%s2245_s0 + $0x10c] ss:$16 sps:$4 sm:$0xff]   ;;  %v1743_v2 = vld [vmem:[%s2245_s0 + $0x100] ss:$16 sps:$4 sm:$0xff]   ;;  %v1744_v3 = vld [vmem:[%s2245_s0 + $0x108] ss:$16 sps:$4 sm:$0xff]  }
  0x19   :  { %1558 = vmatpush3.bf16.msra.mxu1 %v1682_v23  ;;  %1447 = vmatprep.subr.bf16.mxu0 %v1683_v24  ;;  %v1745_v4 = vld [vmem:[%s2245_s0 + $0x124] ss:$16 sps:$4 sm:$0xff]   ;;  %v1747_v5 = vld [vmem:[%s2245_s0 + $0x12c] ss:$16 sps:$4 sm:$0xff]   ;;  %v1749_v6 = vld [vmem:[%s2245_s0 + $0x120] ss:$16 sps:$4 sm:$0xff]  }
  0x1a   :  { %1559 = vmatprep.subr.bf16.mxu1 %v1684_v25  ;;  %v1750_v7 = vld [vmem:[%s2245_s0 + $0x128] ss:$16 sps:$4 sm:$0xff]   ;;  %v1751_v8 = vld [vmem:[%s2245_s0 + $0x144] ss:$16 sps:$4 sm:$0xff]   ;;  %v1753_v9 = vld [vmem:[%s2245_s0 + $0x14c] ss:$16 sps:$4 sm:$0xff]  }
  0x1b   :  { %v1755_v10 = vld [vmem:[%s2245_s0 + $0x140] ss:$16 sps:$4 sm:$0xff]   ;;  %v1756_v11 = vld [vmem:[%s2245_s0 + $0x148] ss:$16 sps:$4 sm:$0xff]   ;;  %v1757_v12 = vld [vmem:[%s2245_s0 + $0x164] ss:$16 sps:$4 sm:$0xff]  }
  0x1c   :  { %1448 = vmatpush3.bf16.msra.mxu0 %v1685_v26  ;;  %v1759_v13 = vld [vmem:[%s2245_s0 + $0x16c] ss:$16 sps:$4 sm:$0xff]   ;;  %v1761_v14 = vld [vmem:[%s2245_s0 + $0x160] ss:$16 sps:$4 sm:$0xff]   ;;  %v1762_v15 = vld [vmem:[%s2245_s0 + $0x168] ss:$16 sps:$4 sm:$0xff]  }
  0x1d   :  { %1560 = vmatpush3.bf16.msra.mxu1 %v1686_v27  ;;  %1449 = vmatprep.subr.bf16.mxu0 %v1687_v28  ;;  %v1763_v16 = vld [vmem:[%s2245_s0 + $0x184] ss:$16 sps:$4 sm:$0xff]   ;;  %v1765_v17 = vld [vmem:[%s2245_s0 + $0x18c] ss:$16 sps:$4 sm:$0xff]   ;;  %v1767_v18 = vld [vmem:[%s2245_s0 + $0x180] ss:$16 sps:$4 sm:$0xff]  }
  0x1e   :  { %1561 = vmatprep.subr.bf16.mxu1 %v1688_v29  ;;  %v1768_v19 = vld [vmem:[%s2245_s0 + $0x188] ss:$16 sps:$4 sm:$0xff]   ;;  %v1769_v20 = vld [vmem:[%s2245_s0 + $0x1a4] ss:$16 sps:$4 sm:$0xff]   ;;  %v1771_v21 = vld [vmem:[%s2245_s0 + $0x1ac] ss:$16 sps:$4 sm:$0xff]  }
  0x1f   :  { %v1773_v22 = vld [vmem:[%s2245_s0 + $0x1a0] ss:$16 sps:$4 sm:$0xff]   ;;  %v1774_v23 = vld [vmem:[%s2245_s0 + $0x1a8] ss:$16 sps:$4 sm:$0xff]   ;;  %v1775_v24 = vld [vmem:[%s2245_s0 + $0x1c4] ss:$16 sps:$4 sm:$0xff]  }
  0x20   :  { %1450 = vmatpush3.bf16.msra.mxu0 %v1689_v30  ;;  %v1777_v25 = vld [vmem:[%s2245_s0 + $0x1cc] ss:$16 sps:$4 sm:$0xff]   ;;  %v1779_v26 = vld [vmem:[%s2245_s0 + $0x1c0] ss:$16 sps:$4 sm:$0xff]   ;;  %v1780_v27 = vld [vmem:[%s2245_s0 + $0x1c8] ss:$16 sps:$4 sm:$0xff]  }
  0x21   :  { %1562 = vmatpush3.bf16.msra.mxu1 %v1690_v31  ;;  %v1781_v28 = vld [vmem:[%s2245_s0 + $0x1e4] ss:$16 sps:$4 sm:$0xff]   ;;  %v1783_v29 = vld [vmem:[%s2245_s0 + $0x1ec] ss:$16 sps:$4 sm:$0xff]   ;;  %v1785_v30 = vld [vmem:[%s2245_s0 + $0x1e0] ss:$16 sps:$4 sm:$0xff]  }
  0x22   :  { %v1786_v31 = vld [vmem:[%s2245_s0 + $0x1e8] ss:$16 sps:$4 sm:$0xff]  }
  0x23   :  { %759 = vmatmul.mubr.bf16.vlgmr.msra.gmra.mrb[0].mxu0 %v1691_v32 }
  0x24   :  { %920 = vmatmul.mubr.bf16.vlgmr.msra.gmra.mrb[0].mxu1 %v1694_v34  ;;  %766 = vmatprep.mubr.bf16.mxu0 %v1697_v36 }
  0x25   :  { %927 = vmatprep.mubr.bf16.mxu1 %v1699_v37 }
  0x2b   :  { %767 = vmatmul.mubr.bf16.gmra.mrb[4].mxu0 %v1701_v38 }
  0x2c   :  { %928 = vmatmul.mubr.bf16.gmra.mrb[4].mxu1 %v1702_v39  ;;  %774 = vmatprep.mubr.bf16.mxu0 %v1703_v40 }
  0x2d   :  { %935 = vmatprep.mubr.bf16.mxu1 %v1705_v41  ;;  %v2108_v41 = vld [vmem:[%s2246_s2] ss:$0 sm:$0xff] }
  0x33   :  { %775 = vmatmul.mubr.bf16.gmra.mrb[8].mxu0 %v1707_v42 }
  0x34   :  { %936 = vmatmul.mubr.bf16.gmra.mrb[8].mxu1 %v1708_v43  ;;  %782 = vmatprep.mubr.bf16.mxu0 %v1709_v44 }
  0x35   :  { %943 = vmatprep.mubr.bf16.mxu1 %v1711_v45 }
  0x3b   :  { %783 = vmatmul.mubr.bf16.gmra.mrb[12].mxu0 %v1713_v46 }
  0x3c   :  { %944 = vmatmul.mubr.bf16.gmra.mrb[12].mxu1 %v1714_v47  ;;  %790 = vmatprep.mubr.bf16.mxu0 %v1715_v48 }
  0x3d   :  { %951 = vmatprep.mubr.bf16.mxu1 %v1717_v49 }
  0x43   :  { %791 = vmatmul.mubr.bf16.gmra.mrb[16].mxu0 %v1719_v50 }
  0x44   :  { %952 = vmatmul.mubr.bf16.gmra.mrb[16].mxu1 %v1720_v51  ;;  %798 = vmatprep.mubr.bf16.mxu0 %v1721_v52 }
  0x45   :  { %959 = vmatprep.mubr.bf16.mxu1 %v1723_v53 }
  0x4b   :  { %799 = vmatmul.mubr.bf16.gmra.mrb[20].mxu0 %v1725_v54 }
  0x4c   :  { %960 = vmatmul.mubr.bf16.gmra.mrb[20].mxu1 %v1726_v55  ;;  %806 = vmatprep.mubr.bf16.mxu0 %v1727_v56 }
  0x4d   :  { %967 = vmatprep.mubr.bf16.mxu1 %v1729_v57 }
  0x53   :  { %807 = vmatmul.mubr.bf16.gmra.mrb[24].mxu0 %v1731_v58 }
  0x54   :  { %968 = vmatmul.mubr.bf16.gmra.mrb[24].mxu1 %v1732_v59  ;;  %814 = vmatprep.mubr.bf16.mxu0 %v1733_v60 }
  0x55   :  { %975 = vmatprep.mubr.bf16.mxu1 %v1735_v61 }
  0x5b   :  { %815 = vmatmul.mubr.bf16.gmra.mrb[28].mxu0 %v1737_v62 }
  0x5c   :  { %976 = vmatmul.mubr.bf16.gmra.mrb[28].mxu1 %v1738_v63  ;;  %822 = vmatprep.mubr.bf16.mxu0 %v1739_v0 }
  0x5d   :  { %983 = vmatprep.mubr.bf16.mxu1 %v1741_v1 }
  0x63   :  { %823 = vmatmul.mubr.bf16.gmra.mrb[32].mxu0 %v1743_v2 }
  0x64   :  { %984 = vmatmul.mubr.bf16.gmra.mrb[32].mxu1 %v1744_v3  ;;  %830 = vmatprep.mubr.bf16.mxu0 %v1745_v4 }
  0x65   :  { %991 = vmatprep.mubr.bf16.mxu1 %v1747_v5 }
  0x6b   :  { %831 = vmatmul.mubr.bf16.gmra.mrb[36].mxu0 %v1749_v6 }
  0x6c   :  { %992 = vmatmul.mubr.bf16.gmra.mrb[36].mxu1 %v1750_v7  ;;  %838 = vmatprep.mubr.bf16.mxu0 %v1751_v8 }
  0x6d   :  { %999 = vmatprep.mubr.bf16.mxu1 %v1753_v9 }
  0x73   :  { %839 = vmatmul.mubr.bf16.gmra.mrb[40].mxu0 %v1755_v10 }
  0x74   :  { %1000 = vmatmul.mubr.bf16.gmra.mrb[40].mxu1 %v1756_v11  ;;  %846 = vmatprep.mubr.bf16.mxu0 %v1757_v12 }
  0x75   :  { %1007 = vmatprep.mubr.bf16.mxu1 %v1759_v13 }
  0x7b   :  { %847 = vmatmul.mubr.bf16.gmra.mrb[44].mxu0 %v1761_v14 }
  0x7c   :  { %1008 = vmatmul.mubr.bf16.gmra.mrb[44].mxu1 %v1762_v15  ;;  %854 = vmatprep.mubr.bf16.mxu0 %v1763_v16 }
  0x7d   :  { %1015 = vmatprep.mubr.bf16.mxu1 %v1765_v17 }
  0x83   :  { %855 = vmatmul.mubr.bf16.gmra.mrb[48].mxu0 %v1767_v18 }
  0x84   :  { %1016 = vmatmul.mubr.bf16.gmra.mrb[48].mxu1 %v1768_v19  ;;  %862 = vmatprep.mubr.bf16.mxu0 %v1769_v20 }
  0x85   :  { %1023 = vmatprep.mubr.bf16.mxu1 %v1771_v21 }
  0x8b   :  { %863 = vmatmul.mubr.bf16.gmra.mrb[52].mxu0 %v1773_v22 }
  0x8c   :  { %1024 = vmatmul.mubr.bf16.gmra.mrb[52].mxu1 %v1774_v23  ;;  %870 = vmatprep.mubr.bf16.mxu0 %v1775_v24 }
  0x8d   :  { %1031 = vmatprep.mubr.bf16.mxu1 %v1777_v25 }
  0x93   :  { %871 = vmatmul.mubr.bf16.gmra.mrb[56].mxu0 %v1779_v26 }
  0x94   :  { %1032 = vmatmul.mubr.bf16.gmra.mrb[56].mxu1 %v1780_v27  ;;  %878 = vmatprep.mubr.bf16.mxu0 %v1781_v28 }
  0x95   :  { %1039 = vmatprep.mubr.bf16.mxu1 %v1783_v29 }
  0x9b   :  { %879 = vmatmul.mubr.bf16.gmra.mrb[60].mxu0 %v1785_v30 }
  0x9c   :  { %1040 = vmatmul.mubr.bf16.gmra.mrb[60].mxu1 %v1786_v31 }
  0xf6   :  { %v1451_v32 = vpop.f32.mrb[0].mxu0 }
  0xf7   :  { %v1563_v33 = vpop.f32.mrb[0].mxu1  ;;  %v1452_v34 = vpop.f32.mrb[1].mxu0 }
  0xf8   :  { %v1453_v35 = vadd.f32 %v1452_v34, %v1451_v32  ;;  %v1564_v36 = vpop.f32.mrb[1].mxu1  ;;  %v1454_v37 = vpop.f32.mrb[2].mxu0 }
  0xf9   :  { %v1565_v38 = vadd.f32 %v1564_v36, %v1563_v33  ;;  %v1566_v39 = vpop.f32.mrb[2].mxu1  ;;  %v1455_v40 = vpop.f32.mrb[3].mxu0 }
  0xfa   :  { %v1456_v42 = vadd.f32 %v1455_v40, %v1454_v37  ;;  %v1567_v43 = vpop.f32.mrb[3].mxu1 }
  0xfb   :  { %v922_v44 = vadd.f32 %v1565_v38, %v1453_v35  ;;  %v1568_v45 = vadd.f32 %v1567_v43, %v1566_v39 }
  0xfd   :  { %v1154_v46 = vadd.f32 %v2108_v41, %v922_v44  ;;  %v925_v47 = vadd.f32 %v1568_v45, %v1456_v42 }
  0xfe   :  { %v1457_v48 = vpop.f32.mrb[4].mxu0 }
  0xff   :  { %1294 = vst [vmem:[%s2247_s3] sm:$0xff] %v1154_v46  ;;  %v1155_v49 = vadd.f32 %v2108_v41, %v925_v47  ;;  %v1569_v50 = vpop.f32.mrb[4].mxu1  ;;  %v1458_v51 = vpop.f32.mrb[5].mxu0  ;;  %v1224_v55 = vmul.f32 %v1154_v46, %v1154_v46 }
 0x100   :  { %v1459_v52 = vadd.f32 %v1458_v51, %v1457_v48  ;;  %v1570_v53 = vpop.f32.mrb[5].mxu1  ;;  %v1460_v54 = vpop.f32.mrb[6].mxu0 }
 0x101   :  { %v1186_v56 = vadd.f32 %v1155_v49, %v1154_v46  ;;  %v1225_v57 = vmul.f32 %v1155_v49, %v1155_v49  ;;  %1295 = vst [vmem:[%s2247_s3 + $0x8] sm:$0xff] %v1155_v49  ;;  %v1571_v58 = vadd.f32 %v1570_v53, %v1569_v50  ;;  %v1572_v59 = vpop.f32.mrb[6].mxu1  ;;  %v1461_v60 = vpop.f32.mrb[7].mxu0 }
 0x102   :  { %v1462_v61 = vadd.f32 %v1461_v60, %v1460_v54  ;;  %v1573_v62 = vpop.f32.mrb[7].mxu1 }
 0x103   :  { %v1256_v63 = vadd.f32 %v1225_v57, %v1224_v55  ;;  %v930_v0 = vadd.f32 %v1571_v58, %v1459_v52  ;;  %v1574_v1 = vadd.f32 %v1573_v62, %v1572_v59 }
 0x105   :  { %v1156_v2 = vadd.f32 %v2108_v41, %v930_v0  ;;  %v933_v3 = vadd.f32 %v1574_v1, %v1462_v61 }
 0x106   :  { %v1463_v4 = vpop.f32.mrb[8].mxu0 }
 0x107   :  { %v1187_v5 = vadd.f32 %v1186_v56, %v1156_v2  ;;  %v1226_v6 = vmul.f32 %v1156_v2, %v1156_v2  ;;  %1296 = vst [vmem:[%s2247_s3 + $0x10] sm:$0xff] %v1156_v2  ;;  %v1157_v7 = vadd.f32 %v2108_v41, %v933_v3  ;;  %v1575_v8 = vpop.f32.mrb[8].mxu1  ;;  %v1464_v9 = vpop.f32.mrb[9].mxu0 }
 0x108   :  { %v1465_v10 = vadd.f32 %v1464_v9, %v1463_v4  ;;  %v1576_v11 = vpop.f32.mrb[9].mxu1  ;;  %v1466_v12 = vpop.f32.mrb[10].mxu0 }
 0x109   :  { %v1257_v13 = vadd.f32 %v1256_v63, %v1226_v6  ;;  %v1188_v14 = vadd.f32 %v1187_v5, %v1157_v7  ;;  %v1227_v15 = vmul.f32 %v1157_v7, %v1157_v7  ;;  %1297 = vst [vmem:[%s2247_s3 + $0x18] sm:$0xff] %v1157_v7  ;;  %v1577_v16 = vadd.f32 %v1576_v11, %v1575_v8  ;;  %v1578_v17 = vpop.f32.mrb[10].mxu1  ;;  %v1467_v18 = vpop.f32.mrb[11].mxu0 }
 0x10a   :  { %v1468_v19 = vadd.f32 %v1467_v18, %v1466_v12  ;;  %v1579_v20 = vpop.f32.mrb[11].mxu1 }
 0x10b   :  { %v1258_v21 = vadd.f32 %v1257_v13, %v1227_v15  ;;  %v938_v22 = vadd.f32 %v1577_v16, %v1465_v10  ;;  %v1580_v23 = vadd.f32 %v1579_v20, %v1578_v17 }
 0x10d   :  { %v1158_v24 = vadd.f32 %v2108_v41, %v938_v22  ;;  %v941_v25 = vadd.f32 %v1580_v23, %v1468_v19 }
 0x10e   :  { %v1469_v26 = vpop.f32.mrb[12].mxu0 }
 0x10f   :  { %v1189_v27 = vadd.f32 %v1188_v14, %v1158_v24  ;;  %v1228_v28 = vmul.f32 %v1158_v24, %v1158_v24  ;;  %1298 = vst [vmem:[%s2247_s3 + $0x20] sm:$0xff] %v1158_v24  ;;  %v1159_v29 = vadd.f32 %v2108_v41, %v941_v25  ;;  %v1581_v30 = vpop.f32.mrb[12].mxu1  ;;  %v1470_v31 = vpop.f32.mrb[13].mxu0 }
 0x110   :  { %v1471_v32 = vadd.f32 %v1470_v31, %v1469_v26  ;;  %v1582_v33 = vpop.f32.mrb[13].mxu1  ;;  %v1472_v34 = vpop.f32.mrb[14].mxu0 }
 0x111   :  { %v1259_v35 = vadd.f32 %v1258_v21, %v1228_v28  ;;  %v1190_v36 = vadd.f32 %v1189_v27, %v1159_v29  ;;  %v1229_v37 = vmul.f32 %v1159_v29, %v1159_v29  ;;  %1299 = vst [vmem:[%s2247_s3 + $0x28] sm:$0xff] %v1159_v29  ;;  %v1583_v38 = vadd.f32 %v1582_v33, %v1581_v30  ;;  %v1584_v39 = vpop.f32.mrb[14].mxu1  ;;  %v1473_v40 = vpop.f32.mrb[15].mxu0 }
 0x112   :  { %v1474_v42 = vadd.f32 %v1473_v40, %v1472_v34  ;;  %v1585_v43 = vpop.f32.mrb[15].mxu1 }
 0x113   :  { %v1260_v44 = vadd.f32 %v1259_v35, %v1229_v37  ;;  %v946_v45 = vadd.f32 %v1583_v38, %v1471_v32  ;;  %v1586_v46 = vadd.f32 %v1585_v43, %v1584_v39 }
 0x115   :  { %v1160_v47 = vadd.f32 %v2108_v41, %v946_v45  ;;  %v949_v48 = vadd.f32 %v1586_v46, %v1474_v42 }
 0x116   :  { %v1475_v49 = vpop.f32.mrb[16].mxu0 }
 0x117   :  { %v1191_v50 = vadd.f32 %v1190_v36, %v1160_v47  ;;  %v1230_v51 = vmul.f32 %v1160_v47, %v1160_v47  ;;  %1300 = vst [vmem:[%s2247_s3 + $0x30] sm:$0xff] %v1160_v47  ;;  %v1161_v52 = vadd.f32 %v2108_v41, %v949_v48  ;;  %v1587_v53 = vpop.f32.mrb[16].mxu1  ;;  %v1476_v54 = vpop.f32.mrb[17].mxu0 }
 0x118   :  { %v1477_v55 = vadd.f32 %v1476_v54, %v1475_v49  ;;  %v1588_v56 = vpop.f32.mrb[17].mxu1  ;;  %v1478_v57 = vpop.f32.mrb[18].mxu0 }
 0x119   :  { %v1261_v58 = vadd.f32 %v1260_v44, %v1230_v51  ;;  %v1192_v59 = vadd.f32 %v1191_v50, %v1161_v52  ;;  %v1231_v60 = vmul.f32 %v1161_v52, %v1161_v52  ;;  %1301 = vst [vmem:[%s2247_s3 + $0x38] sm:$0xff] %v1161_v52  ;;  %v1589_v61 = vadd.f32 %v1588_v56, %v1587_v53  ;;  %v1590_v62 = vpop.f32.mrb[18].mxu1  ;;  %v1479_v63 = vpop.f32.mrb[19].mxu0 }
 0x11a   :  { %v1480_v0 = vadd.f32 %v1479_v63, %v1478_v57  ;;  %v1591_v1 = vpop.f32.mrb[19].mxu1 }
 0x11b   :  { %v1262_v2 = vadd.f32 %v1261_v58, %v1231_v60  ;;  %v954_v3 = vadd.f32 %v1589_v61, %v1477_v55  ;;  %v1592_v4 = vadd.f32 %v1591_v1, %v1590_v62 }
 0x11d   :  { %v1162_v5 = vadd.f32 %v2108_v41, %v954_v3  ;;  %v957_v6 = vadd.f32 %v1592_v4, %v1480_v0 }
 0x11e   :  { %v1481_v7 = vpop.f32.mrb[20].mxu0 }
 0x11f   :  { %v1193_v8 = vadd.f32 %v1192_v59, %v1162_v5  ;;  %v1232_v9 = vmul.f32 %v1162_v5, %v1162_v5  ;;  %1302 = vst [vmem:[%s2247_s3 + $0x40] sm:$0xff] %v1162_v5  ;;  %v1163_v10 = vadd.f32 %v2108_v41, %v957_v6  ;;  %v1593_v11 = vpop.f32.mrb[20].mxu1  ;;  %v1482_v12 = vpop.f32.mrb[21].mxu0 }
 0x120   :  { %v1483_v13 = vadd.f32 %v1482_v12, %v1481_v7  ;;  %v1594_v14 = vpop.f32.mrb[21].mxu1  ;;  %v1484_v15 = vpop.f32.mrb[22].mxu0 }
 0x121   :  { %v1263_v16 = vadd.f32 %v1262_v2, %v1232_v9  ;;  %v1194_v17 = vadd.f32 %v1193_v8, %v1163_v10  ;;  %v1233_v18 = vmul.f32 %v1163_v10, %v1163_v10  ;;  %1303 = vst [vmem:[%s2247_s3 + $0x48] sm:$0xff] %v1163_v10  ;;  %v1595_v19 = vadd.f32 %v1594_v14, %v1593_v11  ;;  %v1596_v20 = vpop.f32.mrb[22].mxu1  ;;  %v1485_v21 = vpop.f32.mrb[23].mxu0 }
 0x122   :  { %v1486_v22 = vadd.f32 %v1485_v21, %v1484_v15  ;;  %v1597_v23 = vpop.f32.mrb[23].mxu1 }
 0x123   :  { %v1264_v24 = vadd.f32 %v1263_v16, %v1233_v18  ;;  %v962_v25 = vadd.f32 %v1595_v19, %v1483_v13  ;;  %v1598_v26 = vadd.f32 %v1597_v23, %v1596_v20 }
 0x125   :  { %v1164_v27 = vadd.f32 %v2108_v41, %v962_v25  ;;  %v965_v28 = vadd.f32 %v1598_v26, %v1486_v22 }
 0x126   :  { %v1487_v29 = vpop.f32.mrb[24].mxu0 }
 0x127   :  { %v1195_v30 = vadd.f32 %v1194_v17, %v1164_v27  ;;  %v1234_v31 = vmul.f32 %v1164_v27, %v1164_v27  ;;  %1304 = vst [vmem:[%s2247_s3 + $0x50] sm:$0xff] %v1164_v27  ;;  %v1165_v32 = vadd.f32 %v2108_v41, %v965_v28  ;;  %v1599_v33 = vpop.f32.mrb[24].mxu1  ;;  %v1488_v34 = vpop.f32.mrb[25].mxu0 }
 0x128   :  { %v1489_v35 = vadd.f32 %v1488_v34, %v1487_v29  ;;  %v1600_v36 = vpop.f32.mrb[25].mxu1  ;;  %v1490_v37 = vpop.f32.mrb[26].mxu0 }
 0x129   :  { %v1265_v38 = vadd.f32 %v1264_v24, %v1234_v31  ;;  %v1196_v39 = vadd.f32 %v1195_v30, %v1165_v32  ;;  %v1235_v40 = vmul.f32 %v1165_v32, %v1165_v32  ;;  %1305 = vst [vmem:[%s2247_s3 + $0x58] sm:$0xff] %v1165_v32  ;;  %v1601_v42 = vadd.f32 %v1600_v36, %v1599_v33  ;;  %v1602_v43 = vpop.f32.mrb[26].mxu1  ;;  %v1491_v44 = vpop.f32.mrb[27].mxu0 }
 0x12a   :  { %v1492_v45 = vadd.f32 %v1491_v44, %v1490_v37  ;;  %v1603_v46 = vpop.f32.mrb[27].mxu1 }
 0x12b   :  { %v1266_v47 = vadd.f32 %v1265_v38, %v1235_v40  ;;  %v970_v48 = vadd.f32 %v1601_v42, %v1489_v35  ;;  %v1604_v49 = vadd.f32 %v1603_v46, %v1602_v43 }
 0x12d   :  { %v1166_v50 = vadd.f32 %v2108_v41, %v970_v48  ;;  %v973_v51 = vadd.f32 %v1604_v49, %v1492_v45 }
 0x12e   :  { %v1493_v52 = vpop.f32.mrb[28].mxu0 }
 0x12f   :  { %v1197_v53 = vadd.f32 %v1196_v39, %v1166_v50  ;;  %v1236_v54 = vmul.f32 %v1166_v50, %v1166_v50  ;;  %1306 = vst [vmem:[%s2247_s3 + $0x60] sm:$0xff] %v1166_v50  ;;  %v1167_v55 = vadd.f32 %v2108_v41, %v973_v51  ;;  %v1605_v56 = vpop.f32.mrb[28].mxu1  ;;  %v1494_v57 = vpop.f32.mrb[29].mxu0 }
 0x130   :  { %v1495_v58 = vadd.f32 %v1494_v57, %v1493_v52  ;;  %v1606_v59 = vpop.f32.mrb[29].mxu1  ;;  %v1496_v60 = vpop.f32.mrb[30].mxu0 }
 0x131   :  { %v1267_v61 = vadd.f32 %v1266_v47, %v1236_v54  ;;  %v1198_v62 = vadd.f32 %v1197_v53, %v1167_v55  ;;  %v1237_v63 = vmul.f32 %v1167_v55, %v1167_v55  ;;  %1307 = vst [vmem:[%s2247_s3 + $0x68] sm:$0xff] %v1167_v55  ;;  %v1607_v0 = vadd.f32 %v1606_v59, %v1605_v56  ;;  %v1608_v1 = vpop.f32.mrb[30].mxu1  ;;  %v1497_v2 = vpop.f32.mrb[31].mxu0 }
 0x132   :  { %v1498_v3 = vadd.f32 %v1497_v2, %v1496_v60  ;;  %v1609_v4 = vpop.f32.mrb[31].mxu1 }
 0x133   :  { %v1268_v5 = vadd.f32 %v1267_v61, %v1237_v63  ;;  %v978_v6 = vadd.f32 %v1607_v0, %v1495_v58  ;;  %v1610_v7 = vadd.f32 %v1609_v4, %v1608_v1 }
 0x135   :  { %v1168_v8 = vadd.f32 %v2108_v41, %v978_v6  ;;  %v981_v9 = vadd.f32 %v1610_v7, %v1498_v3 }
 0x136   :  { %v1499_v10 = vpop.f32.mrb[32].mxu0 }
 0x137   :  { %v1199_v11 = vadd.f32 %v1198_v62, %v1168_v8  ;;  %v1238_v12 = vmul.f32 %v1168_v8, %v1168_v8  ;;  %1308 = vst [vmem:[%s2247_s3 + $0x70] sm:$0xff] %v1168_v8  ;;  %v1169_v13 = vadd.f32 %v2108_v41, %v981_v9  ;;  %v1611_v14 = vpop.f32.mrb[32].mxu1  ;;  %v1500_v15 = vpop.f32.mrb[33].mxu0 }
 0x138   :  { %v1501_v16 = vadd.f32 %v1500_v15, %v1499_v10  ;;  %v1612_v17 = vpop.f32.mrb[33].mxu1  ;;  %v1502_v18 = vpop.f32.mrb[34].mxu0 }
 0x139   :  { %v1269_v19 = vadd.f32 %v1268_v5, %v1238_v12  ;;  %v1200_v20 = vadd.f32 %v1199_v11, %v1169_v13  ;;  %v1239_v21 = vmul.f32 %v1169_v13, %v1169_v13  ;;  %1309 = vst [vmem:[%s2247_s3 + $0x78] sm:$0xff] %v1169_v13  ;;  %v1613_v22 = vadd.f32 %v1612_v17, %v1611_v14  ;;  %v1614_v23 = vpop.f32.mrb[34].mxu1  ;;  %v1503_v24 = vpop.f32.mrb[35].mxu0 }
 0x13a   :  { %v1504_v25 = vadd.f32 %v1503_v24, %v1502_v18  ;;  %v1615_v26 = vpop.f32.mrb[35].mxu1 }
 0x13b   :  { %v1270_v27 = vadd.f32 %v1269_v19, %v1239_v21  ;;  %v986_v28 = vadd.f32 %v1613_v22, %v1501_v16  ;;  %v1616_v29 = vadd.f32 %v1615_v26, %v1614_v23 }
 0x13d   :  { %v1170_v30 = vadd.f32 %v2108_v41, %v986_v28  ;;  %v989_v31 = vadd.f32 %v1616_v29, %v1504_v25 }
 0x13e   :  { %v1505_v32 = vpop.f32.mrb[36].mxu0 }
 0x13f   :  { %v1201_v33 = vadd.f32 %v1200_v20, %v1170_v30  ;;  %v1240_v34 = vmul.f32 %v1170_v30, %v1170_v30  ;;  %1310 = vst [vmem:[%s2247_s3 + $0x80] sm:$0xff] %v1170_v30  ;;  %v1171_v35 = vadd.f32 %v2108_v41, %v989_v31  ;;  %v1617_v36 = vpop.f32.mrb[36].mxu1  ;;  %v1506_v37 = vpop.f32.mrb[37].mxu0 }
 0x140   :  { %v1507_v38 = vadd.f32 %v1506_v37, %v1505_v32  ;;  %v1618_v39 = vpop.f32.mrb[37].mxu1  ;;  %v1508_v40 = vpop.f32.mrb[38].mxu0 }
 0x141   :  { %v1271_v42 = vadd.f32 %v1270_v27, %v1240_v34  ;;  %v1202_v43 = vadd.f32 %v1201_v33, %v1171_v35  ;;  %v1241_v44 = vmul.f32 %v1171_v35, %v1171_v35  ;;  %1311 = vst [vmem:[%s2247_s3 + $0x88] sm:$0xff] %v1171_v35  ;;  %v1619_v45 = vadd.f32 %v1618_v39, %v1617_v36  ;;  %v1620_v46 = vpop.f32.mrb[38].mxu1  ;;  %v1509_v47 = vpop.f32.mrb[39].mxu0 }
 0x142   :  { %v1510_v48 = vadd.f32 %v1509_v47, %v1508_v40  ;;  %v1621_v49 = vpop.f32.mrb[39].mxu1 }
 0x143   :  { %v1272_v50 = vadd.f32 %v1271_v42, %v1241_v44  ;;  %v994_v51 = vadd.f32 %v1619_v45, %v1507_v38  ;;  %v1622_v52 = vadd.f32 %v1621_v49, %v1620_v46 }
 0x145   :  { %v1172_v53 = vadd.f32 %v2108_v41, %v994_v51  ;;  %v997_v54 = vadd.f32 %v1622_v52, %v1510_v48 }
 0x146   :  { %v1511_v55 = vpop.f32.mrb[40].mxu0 }
 0x147   :  { %v1203_v56 = vadd.f32 %v1202_v43, %v1172_v53  ;;  %v1242_v57 = vmul.f32 %v1172_v53, %v1172_v53  ;;  %1312 = vst [vmem:[%s2247_s3 + $0x90] sm:$0xff] %v1172_v53  ;;  %v1173_v58 = vadd.f32 %v2108_v41, %v997_v54  ;;  %v1623_v59 = vpop.f32.mrb[40].mxu1  ;;  %v1512_v60 = vpop.f32.mrb[41].mxu0 }
 0x148   :  { %v1513_v61 = vadd.f32 %v1512_v60, %v1511_v55  ;;  %v1624_v62 = vpop.f32.mrb[41].mxu1  ;;  %v1514_v63 = vpop.f32.mrb[42].mxu0 }
 0x149   :  { %v1273_v0 = vadd.f32 %v1272_v50, %v1242_v57  ;;  %v1204_v1 = vadd.f32 %v1203_v56, %v1173_v58  ;;  %v1243_v2 = vmul.f32 %v1173_v58, %v1173_v58  ;;  %1313 = vst [vmem:[%s2247_s3 + $0x98] sm:$0xff] %v1173_v58  ;;  %v1625_v3 = vadd.f32 %v1624_v62, %v1623_v59  ;;  %v1626_v4 = vpop.f32.mrb[42].mxu1  ;;  %v1515_v5 = vpop.f32.mrb[43].mxu0 }
 0x14a   :  { %v1516_v6 = vadd.f32 %v1515_v5, %v1514_v63  ;;  %v1627_v7 = vpop.f32.mrb[43].mxu1 }
 0x14b   :  { %v1274_v8 = vadd.f32 %v1273_v0, %v1243_v2  ;;  %v1002_v9 = vadd.f32 %v1625_v3, %v1513_v61  ;;  %v1628_v10 = vadd.f32 %v1627_v7, %v1626_v4 }
 0x14d   :  { %v1174_v11 = vadd.f32 %v2108_v41, %v1002_v9  ;;  %v1005_v12 = vadd.f32 %v1628_v10, %v1516_v6 }
 0x14e   :  { %v1517_v13 = vpop.f32.mrb[44].mxu0 }
 0x14f   :  { %v1205_v14 = vadd.f32 %v1204_v1, %v1174_v11  ;;  %v1244_v15 = vmul.f32 %v1174_v11, %v1174_v11  ;;  %1314 = vst [vmem:[%s2247_s3 + $0xa0] sm:$0xff] %v1174_v11  ;;  %v1175_v16 = vadd.f32 %v2108_v41, %v1005_v12  ;;  %v1629_v17 = vpop.f32.mrb[44].mxu1  ;;  %v1518_v18 = vpop.f32.mrb[45].mxu0 }
 0x150   :  { %v1519_v19 = vadd.f32 %v1518_v18, %v1517_v13  ;;  %v1630_v20 = vpop.f32.mrb[45].mxu1  ;;  %v1520_v21 = vpop.f32.mrb[46].mxu0 }
 0x151   :  { %v1275_v22 = vadd.f32 %v1274_v8, %v1244_v15  ;;  %v1206_v23 = vadd.f32 %v1205_v14, %v1175_v16  ;;  %v1245_v24 = vmul.f32 %v1175_v16, %v1175_v16  ;;  %1315 = vst [vmem:[%s2247_s3 + $0xa8] sm:$0xff] %v1175_v16  ;;  %v1631_v25 = vadd.f32 %v1630_v20, %v1629_v17  ;;  %v1632_v26 = vpop.f32.mrb[46].mxu1  ;;  %v1521_v27 = vpop.f32.mrb[47].mxu0 }
 0x152   :  { %v1522_v28 = vadd.f32 %v1521_v27, %v1520_v21  ;;  %v1633_v29 = vpop.f32.mrb[47].mxu1 }
 0x153   :  { %v1276_v30 = vadd.f32 %v1275_v22, %v1245_v24  ;;  %v1010_v31 = vadd.f32 %v1631_v25, %v1519_v19  ;;  %v1634_v32 = vadd.f32 %v1633_v29, %v1632_v26 }
 0x155   :  { %v1176_v33 = vadd.f32 %v2108_v41, %v1010_v31  ;;  %v1013_v34 = vadd.f32 %v1634_v32, %v1522_v28 }
 0x156   :  { %v1523_v35 = vpop.f32.mrb[48].mxu0 }
 0x157   :  { %v1207_v36 = vadd.f32 %v1206_v23, %v1176_v33  ;;  %v1246_v37 = vmul.f32 %v1176_v33, %v1176_v33  ;;  %1316 = vst [vmem:[%s2247_s3 + $0xb0] sm:$0xff] %v1176_v33  ;;  %v1177_v38 = vadd.f32 %v2108_v41, %v1013_v34  ;;  %v1635_v39 = vpop.f32.mrb[48].mxu1  ;;  %v1524_v40 = vpop.f32.mrb[49].mxu0 }
 0x158   :  { %v1525_v42 = vadd.f32 %v1524_v40, %v1523_v35  ;;  %v1636_v43 = vpop.f32.mrb[49].mxu1  ;;  %v1526_v44 = vpop.f32.mrb[50].mxu0 }
 0x159   :  { %v1277_v45 = vadd.f32 %v1276_v30, %v1246_v37  ;;  %v1208_v46 = vadd.f32 %v1207_v36, %v1177_v38  ;;  %v1247_v47 = vmul.f32 %v1177_v38, %v1177_v38  ;;  %1317 = vst [vmem:[%s2247_s3 + $0xb8] sm:$0xff] %v1177_v38  ;;  %v1637_v48 = vadd.f32 %v1636_v43, %v1635_v39  ;;  %v1638_v49 = vpop.f32.mrb[50].mxu1  ;;  %v1527_v50 = vpop.f32.mrb[51].mxu0 }
 0x15a   :  { %v1528_v51 = vadd.f32 %v1527_v50, %v1526_v44  ;;  %v1639_v52 = vpop.f32.mrb[51].mxu1 }
 0x15b   :  { %v1278_v53 = vadd.f32 %v1277_v45, %v1247_v47  ;;  %v1018_v54 = vadd.f32 %v1637_v48, %v1525_v42  ;;  %v1640_v55 = vadd.f32 %v1639_v52, %v1638_v49 }
 0x15d   :  { %v1178_v56 = vadd.f32 %v2108_v41, %v1018_v54  ;;  %v1021_v57 = vadd.f32 %v1640_v55, %v1528_v51 }
 0x15e   :  { %v1529_v58 = vpop.f32.mrb[52].mxu0 }
 0x15f   :  { %v1209_v59 = vadd.f32 %v1208_v46, %v1178_v56  ;;  %v1248_v60 = vmul.f32 %v1178_v56, %v1178_v56  ;;  %1318 = vst [vmem:[%s2247_s3 + $0xc0] sm:$0xff] %v1178_v56  ;;  %v1179_v61 = vadd.f32 %v2108_v41, %v1021_v57  ;;  %v1641_v62 = vpop.f32.mrb[52].mxu1  ;;  %v1530_v63 = vpop.f32.mrb[53].mxu0 }
 0x160   :  { %v1531_v0 = vadd.f32 %v1530_v63, %v1529_v58  ;;  %v1642_v1 = vpop.f32.mrb[53].mxu1  ;;  %v1532_v2 = vpop.f32.mrb[54].mxu0 }
 0x161   :  { %v1279_v3 = vadd.f32 %v1278_v53, %v1248_v60  ;;  %v1210_v4 = vadd.f32 %v1209_v59, %v1179_v61  ;;  %v1249_v5 = vmul.f32 %v1179_v61, %v1179_v61  ;;  %1319 = vst [vmem:[%s2247_s3 + $0xc8] sm:$0xff] %v1179_v61  ;;  %v1643_v6 = vadd.f32 %v1642_v1, %v1641_v62  ;;  %v1644_v7 = vpop.f32.mrb[54].mxu1  ;;  %v1533_v8 = vpop.f32.mrb[55].mxu0 }
 0x162   :  { %v1534_v9 = vadd.f32 %v1533_v8, %v1532_v2  ;;  %v1645_v10 = vpop.f32.mrb[55].mxu1 }
 0x163   :  { %v1280_v11 = vadd.f32 %v1279_v3, %v1249_v5  ;;  %v1026_v12 = vadd.f32 %v1643_v6, %v1531_v0  ;;  %v1646_v13 = vadd.f32 %v1645_v10, %v1644_v7 }
 0x165   :  { %v1180_v14 = vadd.f32 %v2108_v41, %v1026_v12  ;;  %v1029_v15 = vadd.f32 %v1646_v13, %v1534_v9 }
 0x166   :  { %v1535_v16 = vpop.f32.mrb[56].mxu0 }
 0x167   :  { %v1211_v17 = vadd.f32 %v1210_v4, %v1180_v14  ;;  %v1250_v18 = vmul.f32 %v1180_v14, %v1180_v14  ;;  %1320 = vst [vmem:[%s2247_s3 + $0xd0] sm:$0xff] %v1180_v14  ;;  %v1181_v19 = vadd.f32 %v2108_v41, %v1029_v15  ;;  %v1647_v20 = vpop.f32.mrb[56].mxu1  ;;  %v1536_v21 = vpop.f32.mrb[57].mxu0 }
 0x168   :  { %v1537_v22 = vadd.f32 %v1536_v21, %v1535_v16  ;;  %v1648_v23 = vpop.f32.mrb[57].mxu1  ;;  %v1538_v24 = vpop.f32.mrb[58].mxu0 }
 0x169   :  { %v1281_v25 = vadd.f32 %v1280_v11, %v1250_v18  ;;  %v1212_v26 = vadd.f32 %v1211_v17, %v1181_v19  ;;  %v1251_v27 = vmul.f32 %v1181_v19, %v1181_v19  ;;  %1321 = vst [vmem:[%s2247_s3 + $0xd8] sm:$0xff] %v1181_v19  ;;  %v1649_v28 = vadd.f32 %v1648_v23, %v1647_v20  ;;  %v1650_v29 = vpop.f32.mrb[58].mxu1  ;;  %v1539_v30 = vpop.f32.mrb[59].mxu0 }
 0x16a   :  { %v1540_v31 = vadd.f32 %v1539_v30, %v1538_v24  ;;  %v1651_v32 = vpop.f32.mrb[59].mxu1 }
 0x16b   :  { %v1282_v33 = vadd.f32 %v1281_v25, %v1251_v27  ;;  %v1034_v34 = vadd.f32 %v1649_v28, %v1537_v22  ;;  %v1652_v35 = vadd.f32 %v1651_v32, %v1650_v29 }
 0x16d   :  { %v1182_v36 = vadd.f32 %v2108_v41, %v1034_v34  ;;  %v1037_v37 = vadd.f32 %v1652_v35, %v1540_v31 }
 0x16e   :  { %v1541_v38 = vpop.f32.mrb[60].mxu0 }
 0x16f   :  { %v1213_v39 = vadd.f32 %v1212_v26, %v1182_v36  ;;  %v1252_v40 = vmul.f32 %v1182_v36, %v1182_v36  ;;  %1322 = vst [vmem:[%s2247_s3 + $0xe0] sm:$0xff] %v1182_v36  ;;  %v1183_v42 = vadd.f32 %v2108_v41, %v1037_v37  ;;  %v1653_v43 = vpop.f32.mrb[60].mxu1  ;;  %v1542_v44 = vpop.f32.mrb[61].mxu0 }
 0x170   :  { %v1543_v45 = vadd.f32 %v1542_v44, %v1541_v38  ;;  %v1654_v46 = vpop.f32.mrb[61].mxu1  ;;  %v1544_v47 = vpop.f32.mrb[62].mxu0 }
 0x171   :  { %v1283_v48 = vadd.f32 %v1282_v33, %v1252_v40  ;;  %v1214_v49 = vadd.f32 %v1213_v39, %v1183_v42  ;;  %v1253_v50 = vmul.f32 %v1183_v42, %v1183_v42  ;;  %1323 = vst [vmem:[%s2247_s3 + $0xe8] sm:$0xff] %v1183_v42  ;;  %v1655_v51 = vadd.f32 %v1654_v46, %v1653_v43  ;;  %v1656_v52 = vpop.f32.mrb[62].mxu1  ;;  %v1545_v53 = vpop.f32.mrb[63].mxu0 }
 0x172   :  { %v1546_v54 = vadd.f32 %v1545_v53, %v1544_v47  ;;  %v1657_v55 = vpop.f32.mrb[63].mxu1 }
 0x173   :  { %v1284_v56 = vadd.f32 %v1283_v48, %v1253_v50  ;;  %v1042_v57 = vadd.f32 %v1655_v51, %v1543_v45  ;;  %v1658_v58 = vadd.f32 %v1657_v55, %v1656_v52 }
 0x175   :  { %v1184_v59 = vadd.f32 %v2108_v41, %v1042_v57  ;;  %v1045_v60 = vadd.f32 %v1658_v58, %v1546_v54 }
 0x177   :  { %v1215_v61 = vadd.f32 %v1214_v49, %v1184_v59  ;;  %v1254_v62 = vmul.f32 %v1184_v59, %v1184_v59  ;;  %1324 = vst [vmem:[%s2247_s3 + $0xf0] sm:$0xff] %v1184_v59  ;;  %v1185_v63 = vadd.f32 %v2108_v41, %v1045_v60 }
 0x179   :  { %v1285_v0 = vadd.f32 %v1284_v56, %v1254_v62  ;;  %v1216_v1 = vadd.f32 %v1215_v61, %v1185_v63  ;;  %v1255_v2 = vmul.f32 %v1185_v63, %v1185_v63  ;;  %1325 = vst [vmem:[%s2247_s3 + $0xf8] sm:$0xff] %v1185_v63 }
 0x17b   :  { %v1217_v3 = vrot.slane %v1216_v1, 4  ;;  %v1286_v4 = vadd.f32 %v1285_v0, %v1255_v2 }
 0x17d   :  { %v1218_v5 = vadd.f32 %v1217_v3, %v1216_v1  ;;  %v1287_v6 = vrot.slane %v1286_v4, 4 }
 0x17f   :  { %v1219_v7 = vrot.slane %v1218_v5, 2  ;;  %v1288_v8 = vadd.f32 %v1287_v6, %v1286_v4 }
 0x181   :  { %v1220_v9 = vadd.f32 %v1219_v7, %v1218_v5  ;;  %v1289_v10 = vrot.slane %v1288_v8, 2 }
 0x183   :  { %v1221_v11 = vrot.slane %v1220_v9, 1  ;;  %v1290_v12 = vadd.f32 %v1289_v10, %v1288_v8 }
 0x185   :  { %v1222_v13 = vadd.f32 %v1221_v11, %v1220_v9  ;;  %v1291_v14 = vrot.slane %v1290_v12, 1 }
 0x187   :  { %1223 = vst [vmem:[%s2248_s4] sm:$0x1] %v1222_v13  ;;  %v1292_v41 = vadd.f32 %v1291_v14, %v1290_v12 }
 0x189   :  { %1293 = vst [vmem:[%s2249_s5] sm:$0x1] %v1292_v41 }

// kernel: _lambda_.15
= control target key start
LH: loop header
LB: loop body
LE: loop exit
PB: predicated region body
PF: predicated region fallthrough
CT: control target
= control target key end

     0   :  { %s2212_s12 = smov 0   ;;  %s2214_s13 = smov 0   ;;  %s2644_s0 = inlined_call_operand.vmem [shape: bf16[256,1024], index: 0, kind: input, shape index: {}]   ;;  %s2645_s1 = inlined_call_operand.vmem [shape: bf16[1024,128], index: 1, kind: input, shape index: {}]   ;;  %s2646_s2 = inlined_call_operand.vmem [shape: f32[1,128], index: 2, kind: input, shape index: {}]   ;;  %s2647_s3 = inlined_call_operand.vmem [shape: f32[256,128], index: 3, kind: output, shape index: {}]  }
   0x1   :  { %s2216_s14 = smov 0   ;;  %s2218_s15 = smov 0  }
   0x2   :  { %s2220_s16 = smov 0  }
   0x3 LB: > { %s22_s17 = sadd.s32 1, %s2185_s15  ;;  %p41_p1 = scmp.ne.s32.totalorder %s2177_s13, %s2173_s12  ;;  %s2189_s16 = sphi %s2220_s16, %s13_s16   ;;  %s2185_s15 = sphi %s2218_s15, %s2651_s15   ;;  %s2181_s14 = sphi %s2216_s14, %s2650_s14   ;;  %s2177_s13 = sphi %s2214_s13, %s2649_s13   ;;  %s2173_s12 = sphi %s2212_s12, %s2648_s12  }
   0x4   : > { %p23_p0 = scmp.ge.s32.totalorder %s22_s17, 2  ;;  %p42_p2 = scmp.eq.s32.totalorder %s2189_s16, 0 }
   0x5   : > { %s34_s19 = sadd.s32 1, %s2177_s13  ;;  %p1646_p5 = scmp.ge.s32.totalorder %s2189_s16, 2 }
   0x6   : > { %s2653_s17 = smov (%p23_p0, %s22_s17), 0  ;;  %p43_p3 = por %p42_p2, %p41_p1 }
   0x7   : > { %s30_s18 = ssub.s32 %s2185_s15, %s2653_s17  ;;  %143 = sbr.rel (%p1646_p5) target bundleno = 50 (0x32), region = 20 }
   0x8   : > { %p32_p4 = scmp.eq.s32.totalorder %s30_s18, 0 }
   0xa   : > { %s2247_s20 = scalar_select %p32_p4, %s2177_s13, %s34_s19  }
   0xe   : > { %146 = sbr.rel (!%p43_p3) target bundleno = 50 (0x32), region = 24  ;;  %s148_s21 = sand.u32 (%p43_p3), 1, %s2177_s13  }
   0xf   : > { %s1757_s22 = sshll.u32 (%p43_p3), %s2185_s15, 4  ;;  %s1647_s23 = sshll.u32 (%p43_p3), %s148_s21, 9 }
  0x10   : > { %s2255_s26 = scalar_lea.vmem (%p43_p3), %s2644_s0, %s1757_s22  ;;  %s2260_s27 = scalar_lea.vmem (%p43_p3), [#allocation3], %s1647_s23 }
  0x11   : > { %v169_v0 = vld [vmem:[%s2255_s26] sm:$0xff] (%p43_p3)  ;;  %v171_v1 = vld [vmem:[%s2255_s26 + $0x8] sm:$0xff] (%p43_p3) }
  0x12   : > { %v173_v2 = vld [vmem:[%s2255_s26 + $0x20] sm:$0xff] (%p43_p3)  ;;  %170 = vst [vmem:[%s2260_s27] sm:$0xff] (%p43_p3), %v169_v0  ;;  %172 = vst [vmem:[%s2260_s27 + $0x8] sm:$0xff] (%p43_p3), %v171_v1  ;;  %v175_v3 = vld [vmem:[%s2255_s26 + $0x28] sm:$0xff] (%p43_p3) }
  0x13   : > { %174 = vst [vmem:[%s2260_s27 + $0x10] sm:$0xff] (%p43_p3), %v173_v2  ;;  %v177_v4 = vld [vmem:[%s2255_s26 + $0x40] sm:$0xff] (%p43_p3)  ;;  %v179_v5 = vld [vmem:[%s2255_s26 + $0x48] sm:$0xff] (%p43_p3)  ;;  %176 = vst [vmem:[%s2260_s27 + $0x18] sm:$0xff] (%p43_p3), %v175_v3 }
  0x14   : > { %178 = vst [vmem:[%s2260_s27 + $0x20] sm:$0xff] (%p43_p3), %v177_v4  ;;  %180 = vst [vmem:[%s2260_s27 + $0x28] sm:$0xff] (%p43_p3), %v179_v5  ;;  %v181_v6 = vld [vmem:[%s2255_s26 + $0x60] sm:$0xff] (%p43_p3)  ;;  %v183_v7 = vld [vmem:[%s2255_s26 + $0x68] sm:$0xff] (%p43_p3) }
  0x15   : > { %v185_v8 = vld [vmem:[%s2255_s26 + $0x80] sm:$0xff]  ;;  %182 = vst [vmem:[%s2260_s27 + $0x30] sm:$0xff] %v181_v6  ;;  %184 = vst [vmem:[%s2260_s27 + $0x38] sm:$0xff] %v183_v7  ;;  %v187_v9 = vld [vmem:[%s2255_s26 + $0x88] sm:$0xff] }
  0x16   : > { %186 = vst [vmem:[%s2260_s27 + $0x40] sm:$0xff] %v185_v8  ;;  %v189_v10 = vld [vmem:[%s2255_s26 + $0xa0] sm:$0xff]  ;;  %v191_v11 = vld [vmem:[%s2255_s26 + $0xa8] sm:$0xff]  ;;  %188 = vst [vmem:[%s2260_s27 + $0x48] sm:$0xff] %v187_v9 }
  0x17   : > { %190 = vst [vmem:[%s2260_s27 + $0x50] sm:$0xff] %v189_v10  ;;  %192 = vst [vmem:[%s2260_s27 + $0x58] sm:$0xff] %v191_v11  ;;  %v193_v12 = vld [vmem:[%s2255_s26 + $0xc0] sm:$0xff]  ;;  %v195_v13 = vld [vmem:[%s2255_s26 + $0xc8] sm:$0xff] }
  0x18   : > { %v197_v14 = vld [vmem:[%s2255_s26 + $0xe0] sm:$0xff]  ;;  %194 = vst [vmem:[%s2260_s27 + $0x60] sm:$0xff] %v193_v12  ;;  %196 = vst [vmem:[%s2260_s27 + $0x68] sm:$0xff] %v195_v13  ;;  %v199_v15 = vld [vmem:[%s2255_s26 + $0xe8] sm:$0xff] }
  0x19   : > { %198 = vst [vmem:[%s2260_s27 + $0x70] sm:$0xff] %v197_v14  ;;  %v201_v16 = vld [vmem:[%s2255_s26 + $0x100] sm:$0xff]  ;;  %v203_v17 = vld [vmem:[%s2255_s26 + $0x108] sm:$0xff]  ;;  %200 = vst [vmem:[%s2260_s27 + $0x78] sm:$0xff] %v199_v15 }
  0x1a   : > { %202 = vst [vmem:[%s2260_s27 + $0x80] sm:$0xff] %v201_v16  ;;  %204 = vst [vmem:[%s2260_s27 + $0x88] sm:$0xff] %v203_v17  ;;  %v205_v18 = vld [vmem:[%s2255_s26 + $0x120] sm:$0xff]  ;;  %v207_v19 = vld [vmem:[%s2255_s26 + $0x128] sm:$0xff] }
  0x1b   : > { %v209_v20 = vld [vmem:[%s2255_s26 + $0x140] sm:$0xff]  ;;  %206 = vst [vmem:[%s2260_s27 + $0x90] sm:$0xff] %v205_v18  ;;  %208 = vst [vmem:[%s2260_s27 + $0x98] sm:$0xff] %v207_v19  ;;  %v211_v21 = vld [vmem:[%s2255_s26 + $0x148] sm:$0xff] }
  0x1c   : > { %210 = vst [vmem:[%s2260_s27 + $0xa0] sm:$0xff] %v209_v20  ;;  %v213_v22 = vld [vmem:[%s2255_s26 + $0x160] sm:$0xff]  ;;  %v215_v23 = vld [vmem:[%s2255_s26 + $0x168] sm:$0xff]  ;;  %212 = vst [vmem:[%s2260_s27 + $0xa8] sm:$0xff] %v211_v21 }
  0x1d   : > { %214 = vst [vmem:[%s2260_s27 + $0xb0] sm:$0xff] %v213_v22  ;;  %216 = vst [vmem:[%s2260_s27 + $0xb8] sm:$0xff] %v215_v23  ;;  %v217_v24 = vld [vmem:[%s2255_s26 + $0x180] sm:$0xff]  ;;  %v219_v25 = vld [vmem:[%s2255_s26 + $0x188] sm:$0xff] }
  0x1e   : > { %v221_v26 = vld [vmem:[%s2255_s26 + $0x1a0] sm:$0xff]  ;;  %218 = vst [vmem:[%s2260_s27 + $0xc0] sm:$0xff] %v217_v24  ;;  %220 = vst [vmem:[%s2260_s27 + $0xc8] sm:$0xff] %v219_v25  ;;  %v223_v27 = vld [vmem:[%s2255_s26 + $0x1a8] sm:$0xff] }
  0x1f   : > { %222 = vst [vmem:[%s2260_s27 + $0xd0] sm:$0xff] %v221_v26  ;;  %v225_v28 = vld [vmem:[%s2255_s26 + $0x1c0] sm:$0xff]  ;;  %v227_v29 = vld [vmem:[%s2255_s26 + $0x1c8] sm:$0xff]  ;;  %224 = vst [vmem:[%s2260_s27 + $0xd8] sm:$0xff] %v223_v27 }
  0x20   : > { %226 = vst [vmem:[%s2260_s27 + $0xe0] sm:$0xff] %v225_v28  ;;  %228 = vst [vmem:[%s2260_s27 + $0xe8] sm:$0xff] %v227_v29  ;;  %v229_v30 = vld [vmem:[%s2255_s26 + $0x1e0] sm:$0xff]  ;;  %v231_v31 = vld [vmem:[%s2255_s26 + $0x1e8] sm:$0xff] }
  0x21   : > { %v233_v32 = vld [vmem:[%s2255_s26 + $0x200] sm:$0xff]  ;;  %230 = vst [vmem:[%s2260_s27 + $0xf0] sm:$0xff] %v229_v30  ;;  %232 = vst [vmem:[%s2260_s27 + $0xf8] sm:$0xff] %v231_v31  ;;  %v235_v33 = vld [vmem:[%s2255_s26 + $0x208] sm:$0xff] }
  0x22   : > { %234 = vst [vmem:[%s2260_s27 + $0x100] sm:$0xff] %v233_v32  ;;  %v237_v34 = vld [vmem:[%s2255_s26 + $0x220] sm:$0xff]  ;;  %v239_v35 = vld [vmem:[%s2255_s26 + $0x228] sm:$0xff]  ;;  %236 = vst [vmem:[%s2260_s27 + $0x108] sm:$0xff] %v235_v33 }
  0x23   : > { %238 = vst [vmem:[%s2260_s27 + $0x110] sm:$0xff] %v237_v34  ;;  %240 = vst [vmem:[%s2260_s27 + $0x118] sm:$0xff] %v239_v35  ;;  %v241_v36 = vld [vmem:[%s2255_s26 + $0x240] sm:$0xff]  ;;  %v243_v37 = vld [vmem:[%s2255_s26 + $0x248] sm:$0xff] }
  0x24   : > { %v245_v38 = vld [vmem:[%s2255_s26 + $0x260] sm:$0xff]  ;;  %242 = vst [vmem:[%s2260_s27 + $0x120] sm:$0xff] %v241_v36  ;;  %244 = vst [vmem:[%s2260_s27 + $0x128] sm:$0xff] %v243_v37  ;;  %v247_v39 = vld [vmem:[%s2255_s26 + $0x268] sm:$0xff] }
  0x25   : > { %246 = vst [vmem:[%s2260_s27 + $0x130] sm:$0xff] %v245_v38  ;;  %v249_v40 = vld [vmem:[%s2255_s26 + $0x280] sm:$0xff]  ;;  %v251_v41 = vld [vmem:[%s2255_s26 + $0x288] sm:$0xff]  ;;  %248 = vst [vmem:[%s2260_s27 + $0x138] sm:$0xff] %v247_v39 }
  0x26   : > { %250 = vst [vmem:[%s2260_s27 + $0x140] sm:$0xff] %v249_v40  ;;  %252 = vst [vmem:[%s2260_s27 + $0x148] sm:$0xff] %v251_v41  ;;  %v253_v42 = vld [vmem:[%s2255_s26 + $0x2a0] sm:$0xff]  ;;  %v255_v43 = vld [vmem:[%s2255_s26 + $0x2a8] sm:$0xff] }
  0x27   : > { %v257_v44 = vld [vmem:[%s2255_s26 + $0x2c0] sm:$0xff]  ;;  %254 = vst [vmem:[%s2260_s27 + $0x150] sm:$0xff] %v253_v42  ;;  %256 = vst [vmem:[%s2260_s27 + $0x158] sm:$0xff] %v255_v43  ;;  %v259_v45 = vld [vmem:[%s2255_s26 + $0x2c8] sm:$0xff] }
  0x28   : > { %258 = vst [vmem:[%s2260_s27 + $0x160] sm:$0xff] %v257_v44  ;;  %v261_v46 = vld [vmem:[%s2255_s26 + $0x2e0] sm:$0xff]  ;;  %v263_v47 = vld [vmem:[%s2255_s26 + $0x2e8] sm:$0xff]  ;;  %260 = vst [vmem:[%s2260_s27 + $0x168] sm:$0xff] %v259_v45 }
  0x29   : > { %262 = vst [vmem:[%s2260_s27 + $0x170] sm:$0xff] %v261_v46  ;;  %264 = vst [vmem:[%s2260_s27 + $0x178] sm:$0xff] %v263_v47  ;;  %v265_v48 = vld [vmem:[%s2255_s26 + $0x300] sm:$0xff]  ;;  %v267_v49 = vld [vmem:[%s2255_s26 + $0x308] sm:$0xff] }
  0x2a   : > { %v269_v50 = vld [vmem:[%s2255_s26 + $0x320] sm:$0xff]  ;;  %266 = vst [vmem:[%s2260_s27 + $0x180] sm:$0xff] %v265_v48  ;;  %268 = vst [vmem:[%s2260_s27 + $0x188] sm:$0xff] %v267_v49  ;;  %v271_v51 = vld [vmem:[%s2255_s26 + $0x328] sm:$0xff] }
  0x2b   : > { %270 = vst [vmem:[%s2260_s27 + $0x190] sm:$0xff] %v269_v50  ;;  %v273_v52 = vld [vmem:[%s2255_s26 + $0x340] sm:$0xff]  ;;  %v275_v53 = vld [vmem:[%s2255_s26 + $0x348] sm:$0xff]  ;;  %272 = vst [vmem:[%s2260_s27 + $0x198] sm:$0xff] %v271_v51 }
  0x2c   : > { %274 = vst [vmem:[%s2260_s27 + $0x1a0] sm:$0xff] %v273_v52  ;;  %276 = vst [vmem:[%s2260_s27 + $0x1a8] sm:$0xff] %v275_v53  ;;  %v277_v54 = vld [vmem:[%s2255_s26 + $0x360] sm:$0xff]  ;;  %v279_v55 = vld [vmem:[%s2255_s26 + $0x368] sm:$0xff] }
  0x2d   : > { %v281_v56 = vld [vmem:[%s2255_s26 + $0x380] sm:$0xff]  ;;  %278 = vst [vmem:[%s2260_s27 + $0x1b0] sm:$0xff] %v277_v54  ;;  %280 = vst [vmem:[%s2260_s27 + $0x1b8] sm:$0xff] %v279_v55  ;;  %v283_v57 = vld [vmem:[%s2255_s26 + $0x388] sm:$0xff] }
  0x2e   : > { %282 = vst [vmem:[%s2260_s27 + $0x1c0] sm:$0xff] %v281_v56  ;;  %v285_v58 = vld [vmem:[%s2255_s26 + $0x3a0] sm:$0xff]  ;;  %v287_v59 = vld [vmem:[%s2255_s26 + $0x3a8] sm:$0xff]  ;;  %284 = vst [vmem:[%s2260_s27 + $0x1c8] sm:$0xff] %v283_v57 }
  0x2f   : > { %286 = vst [vmem:[%s2260_s27 + $0x1d0] sm:$0xff] %v285_v58  ;;  %288 = vst [vmem:[%s2260_s27 + $0x1d8] sm:$0xff] %v287_v59  ;;  %v289_v60 = vld [vmem:[%s2255_s26 + $0x3c0] sm:$0xff]  ;;  %v291_v61 = vld [vmem:[%s2255_s26 + $0x3c8] sm:$0xff] }
  0x30   : > { %v293_v62 = vld [vmem:[%s2255_s26 + $0x3e0] sm:$0xff]  ;;  %290 = vst [vmem:[%s2260_s27 + $0x1e0] sm:$0xff] %v289_v60  ;;  %292 = vst [vmem:[%s2260_s27 + $0x1e8] sm:$0xff] %v291_v61  ;;  %v295_v63 = vld [vmem:[%s2255_s26 + $0x3e8] sm:$0xff] }
  0x31   : > { %294 = vst [vmem:[%s2260_s27 + $0x1f0] sm:$0xff] %v293_v62  ;;  %296 = vst [vmem:[%s2260_s27 + $0x1f8] sm:$0xff] %v295_v63 }
  0x32 PF: > { %p1650_p6 = scmp.ge.s32.totalorder %s2189_s16, 1  ;;  %p310_p7 = scmp.lt.s32.totalorder %s2189_s16, 3 }
  0x34   : > { %p311_p8 = pnand %p1650_p6, %p310_p7 }
  0x35   : > { %s317_s28 = sand.u32 (!%p311_p8), 1, %s2173_s12   ;;  %s1652_s29 = sshll.u32 (!%p311_p8), %s2181_s14, 6 }
  0x36   : > { %314 = sbr.rel (%p311_p8) target bundleno = 466 (0x1d2), region = 51  ;;  %s1651_s30 = sshll.u32 (!%p311_p8), %s317_s28, 9 }
  0x37   : > { %p348_p9 = scmp.lt.s32.totalorder (!%p311_p8), %s1652_s29, 127  ;;  %s2396_s8 = scalar_lea.vmem (!%p311_p8), [#allocation3], %s1651_s30 }
  0x38   : > { %p1654_p10 = scmp.ne.s32.totalorder (!%p311_p8), %s2181_s14, 0 }
  0x3d   : > { %s2655_s29 = smov (!%p348_p9, %s1652_s29), 127  ;;  %363 = sbr.rel (%p1654_p10) target bundleno = 79 (0x4f), region = 59 }
  0x3e   : > { %s1653_s4 = sshll.u32 %s2655_s29, 2  ;;  %v2191_v0 = vmov (!%p1654_p10), 0.0  }
  0x3f   : > { %s2394_s7 = scalar_lea.vmem %s2645_s1, %s1653_s4  ;;  %364 = vst [vmem:[#allocation2] sm:$0xff] (!%p1654_p10), %v2191_v0  ;;  %365 = vst [vmem:[#allocation2 + $0x8] sm:$0xff] (!%p1654_p10), %v2191_v0 }
  0x40   : > { %366 = vst [vmem:[#allocation2 + $0x10] sm:$0xff] (!%p1654_p10), %v2191_v0  ;;  %367 = vst [vmem:[#allocation2 + $0x18] sm:$0xff] (!%p1654_p10), %v2191_v0 }
  0x41   : > { %368 = vst [vmem:[#allocation2 + $0x20] sm:$0xff] (!%p1654_p10), %v2191_v0  ;;  %369 = vst [vmem:[#allocation2 + $0x28] sm:$0xff] (!%p1654_p10), %v2191_v0 }
  0x42   : > { %370 = vst [vmem:[#allocation2 + $0x30] sm:$0xff] (!%p1654_p10), %v2191_v0  ;;  %371 = vst [vmem:[#allocation2 + $0x38] sm:$0xff] (!%p1654_p10), %v2191_v0 }
  0x43   : > { %372 = vst [vmem:[#allocation2 + $0x40] sm:$0xff] (!%p1654_p10), %v2191_v0  ;;  %373 = vst [vmem:[#allocation2 + $0x48] sm:$0xff] (!%p1654_p10), %v2191_v0 }
  0x44   : > { %374 = vst [vmem:[#allocation2 + $0x50] sm:$0xff] %v2191_v0  ;;  %375 = vst [vmem:[#allocation2 + $0x58] sm:$0xff] %v2191_v0 }
  0x45   : > { %376 = vst [vmem:[#allocation2 + $0x60] sm:$0xff] %v2191_v0  ;;  %377 = vst [vmem:[#allocation2 + $0x68] sm:$0xff] %v2191_v0 }
  0x46   : > { %378 = vst [vmem:[#allocation2 + $0x70] sm:$0xff] %v2191_v0  ;;  %379 = vst [vmem:[#allocation2 + $0x78] sm:$0xff] %v2191_v0 }
  0x47   : > { %380 = vst [vmem:[#allocation2 + $0x80] sm:$0xff] %v2191_v0  ;;  %381 = vst [vmem:[#allocation2 + $0x88] sm:$0xff] %v2191_v0 }
  0x48   : > { %382 = vst [vmem:[#allocation2 + $0x90] sm:$0xff] %v2191_v0  ;;  %383 = vst [vmem:[#allocation2 + $0x98] sm:$0xff] %v2191_v0 }
  0x49   : > { %384 = vst [vmem:[#allocation2 + $0xa0] sm:$0xff] %v2191_v0  ;;  %385 = vst [vmem:[#allocation2 + $0xa8] sm:$0xff] %v2191_v0 }
  0x4a   : > { %386 = vst [vmem:[#allocation2 + $0xb0] sm:$0xff] %v2191_v0  ;;  %387 = vst [vmem:[#allocation2 + $0xb8] sm:$0xff] %v2191_v0 }
  0x4b   : > { %388 = vst [vmem:[#allocation2 + $0xc0] sm:$0xff] %v2191_v0  ;;  %389 = vst [vmem:[#allocation2 + $0xc8] sm:$0xff] %v2191_v0 }
  0x4c   : > { %390 = vst [vmem:[#allocation2 + $0xd0] sm:$0xff] %v2191_v0  ;;  %391 = vst [vmem:[#allocation2 + $0xd8] sm:$0xff] %v2191_v0 }
  0x4d   : > { %392 = vst [vmem:[#allocation2 + $0xe0] sm:$0xff] %v2191_v0  ;;  %393 = vst [vmem:[#allocation2 + $0xe8] sm:$0xff] %v2191_v0 }
  0x4e   : > { %394 = vst [vmem:[#allocation2 + $0xf0] sm:$0xff] %v2191_v0  ;;  %395 = vst [vmem:[#allocation2 + $0xf8] sm:$0xff] %v2191_v0 }
  0x4f PF: > { %v2023_v1 = vld [vmem:[%s2394_s7 + $0x40] sm:$0xff]   ;;  %v2027_v5 = vld [vmem:[%s2394_s7 + $0x48] sm:$0xff]   ;;  %v2031_v9 = vld [vmem:[%s2394_s7 + $0x50] sm:$0xff]   ;;  %p1751_p11 = scmp.ne.s32.totalorder %s2181_s14, 1 }
  0x50   : > { %v2024_v2 = vld [vmem:[%s2394_s7 + $0xc0] sm:$0xff]   ;;  %1758 = vmatprep.subr.bf16.mxu0 %v2023_v1  ;;  %v2028_v6 = vld [vmem:[%s2394_s7 + $0xc8] sm:$0xff]   ;;  %v2032_v10 = vld [vmem:[%s2394_s7 + $0xd0] sm:$0xff]  }
  0x51   : > { %v2025_v3 = vld [vmem:[%s2394_s7] sm:$0xff]   ;;  %1870 = vmatprep.subr.bf16.mxu1 %v2024_v2  ;;  %v2029_v7 = vld [vmem:[%s2394_s7 + $0x8] sm:$0xff]   ;;  %v2033_v11 = vld [vmem:[%s2394_s7 + $0x10] sm:$0xff]  }
  0x52   : > { %v2026_v4 = vld [vmem:[%s2394_s7 + $0x80] sm:$0xff]   ;;  %1759 = vmatpush3.bf16.msra.mxu0 %v2025_v3  ;;  %v2030_v8 = vld [vmem:[%s2394_s7 + $0x88] sm:$0xff]   ;;  %v2034_v12 = vld [vmem:[%s2394_s7 + $0x90] sm:$0xff]  }
  0x53   : > { %1871 = vmatpush3.bf16.msra.mxu1 %v2026_v4  ;;  %1760 = vmatprep.subr.bf16.mxu0 %v2027_v5  ;;  %v2035_v13 = vld [vmem:[%s2394_s7 + $0x58] sm:$0xff]   ;;  %v2039_v17 = vld [vmem:[%s2394_s7 + $0x60] sm:$0xff]   ;;  %v2043_v21 = vld [vmem:[%s2394_s7 + $0x68] sm:$0xff]  }
  0x54   : > { %1872 = vmatprep.subr.bf16.mxu1 %v2028_v6  ;;  %v2036_v14 = vld [vmem:[%s2394_s7 + $0xd8] sm:$0xff]   ;;  %v2040_v18 = vld [vmem:[%s2394_s7 + $0xe0] sm:$0xff]   ;;  %v2044_v22 = vld [vmem:[%s2394_s7 + $0xe8] sm:$0xff]  }
  0x55   : > { %v2037_v15 = vld [vmem:[%s2394_s7 + $0x18] sm:$0xff]   ;;  %v2041_v19 = vld [vmem:[%s2394_s7 + $0x20] sm:$0xff]   ;;  %v2045_v23 = vld [vmem:[%s2394_s7 + $0x28] sm:$0xff]  }
  0x56   : > { %1761 = vmatpush3.bf16.msra.mxu0 %v2029_v7  ;;  %v2038_v16 = vld [vmem:[%s2394_s7 + $0x98] sm:$0xff]   ;;  %v2042_v20 = vld [vmem:[%s2394_s7 + $0xa0] sm:$0xff]   ;;  %v2046_v24 = vld [vmem:[%s2394_s7 + $0xa8] sm:$0xff]  }
  0x57   : > { %1873 = vmatpush3.bf16.msra.mxu1 %v2030_v8  ;;  %1762 = vmatprep.subr.bf16.mxu0 %v2031_v9  ;;  %v2047_v25 = vld [vmem:[%s2394_s7 + $0x70] sm:$0xff]   ;;  %v2051_v29 = vld [vmem:[%s2394_s7 + $0x78] sm:$0xff]  }
  0x58   : > { %1874 = vmatprep.subr.bf16.mxu1 %v2032_v10  ;;  %v2048_v26 = vld [vmem:[%s2394_s7 + $0xf0] sm:$0xff]   ;;  %v2052_v30 = vld [vmem:[%s2394_s7 + $0xf8] sm:$0xff]  }
  0x59   : > { %v2049_v27 = vld [vmem:[%s2394_s7 + $0x30] sm:$0xff]   ;;  %v2053_v31 = vld [vmem:[%s2394_s7 + $0x38] sm:$0xff]  }
  0x5a   : > { %1763 = vmatpush3.bf16.msra.mxu0 %v2033_v11  ;;  %v2050_v28 = vld [vmem:[%s2394_s7 + $0xb0] sm:$0xff]   ;;  %v2054_v32 = vld [vmem:[%s2394_s7 + $0xb8] sm:$0xff]  }
  0x5b   : > { %1875 = vmatpush3.bf16.msra.mxu1 %v2034_v12  ;;  %1764 = vmatprep.subr.bf16.mxu0 %v2035_v13  ;;  %v2055_v33 = vld [vmem:[%s2396_s8] ss:$16 sps:$4 sm:$0xff]   ;;  %v2057_v34 = vld [vmem:[%s2396_s8 + $0x4] ss:$16 sps:$4 sm:$0xff]   ;;  %v2058_v35 = vld [vmem:[%s2396_s8 + $0x8] ss:$16 sps:$4 sm:$0xff]  }
  0x5c   : > { %1876 = vmatprep.subr.bf16.mxu1 %v2036_v14  ;;  %v2060_v36 = vld [vmem:[%s2396_s8 + $0xc] ss:$16 sps:$4 sm:$0xff]   ;;  %1100 = vmatprep.mubr.bf16.mxu0 %v2057_v34  ;;  %v2061_v37 = vld [vmem:[%s2396_s8 + $0x24] ss:$16 sps:$4 sm:$0xff]   ;;  %v2065_v39 = vld [vmem:[%s2396_s8 + $0x20] ss:$16 sps:$4 sm:$0xff]  }
  0x5d   : > { %1261 = vmatprep.mubr.bf16.mxu1 %v2060_v36  ;;  %v2063_v38 = vld [vmem:[%s2396_s8 + $0x2c] ss:$16 sps:$4 sm:$0xff]   ;;  %v2066_v40 = vld [vmem:[%s2396_s8 + $0x28] ss:$16 sps:$4 sm:$0xff]   ;;  %v2067_v41 = vld [vmem:[%s2396_s8 + $0x44] ss:$16 sps:$4 sm:$0xff]  }
  0x5e   : > { %1765 = vmatpush3.bf16.msra.mxu0 %v2037_v15  ;;  %v2069_v42 = vld [vmem:[%s2396_s8 + $0x4c] ss:$16 sps:$4 sm:$0xff]   ;;  %v2071_v43 = vld [vmem:[%s2396_s8 + $0x40] ss:$16 sps:$4 sm:$0xff]   ;;  %v2072_v44 = vld [vmem:[%s2396_s8 + $0x48] ss:$16 sps:$4 sm:$0xff]  }
  0x5f   : > { %1877 = vmatpush3.bf16.msra.mxu1 %v2038_v16  ;;  %1766 = vmatprep.subr.bf16.mxu0 %v2039_v17  ;;  %v2073_v45 = vld [vmem:[%s2396_s8 + $0x64] ss:$16 sps:$4 sm:$0xff]   ;;  %v2075_v46 = vld [vmem:[%s2396_s8 + $0x6c] ss:$16 sps:$4 sm:$0xff]   ;;  %v2077_v47 = vld [vmem:[%s2396_s8 + $0x60] ss:$16 sps:$4 sm:$0xff]  }
  0x60   : > { %1878 = vmatprep.subr.bf16.mxu1 %v2040_v18  ;;  %v2078_v48 = vld [vmem:[%s2396_s8 + $0x68] ss:$16 sps:$4 sm:$0xff]   ;;  %v2079_v49 = vld [vmem:[%s2396_s8 + $0x84] ss:$16 sps:$4 sm:$0xff]   ;;  %v2081_v50 = vld [vmem:[%s2396_s8 + $0x8c] ss:$16 sps:$4 sm:$0xff]  }
  0x61   : > { %v2083_v51 = vld [vmem:[%s2396_s8 + $0x80] ss:$16 sps:$4 sm:$0xff]   ;;  %v2084_v52 = vld [vmem:[%s2396_s8 + $0x88] ss:$16 sps:$4 sm:$0xff]   ;;  %v2085_v53 = vld [vmem:[%s2396_s8 + $0xa4] ss:$16 sps:$4 sm:$0xff]  }
  0x62   : > { %1767 = vmatpush3.bf16.msra.mxu0 %v2041_v19  ;;  %v2087_v54 = vld [vmem:[%s2396_s8 + $0xac] ss:$16 sps:$4 sm:$0xff]   ;;  %v2089_v55 = vld [vmem:[%s2396_s8 + $0xa0] ss:$16 sps:$4 sm:$0xff]   ;;  %v2090_v56 = vld [vmem:[%s2396_s8 + $0xa8] ss:$16 sps:$4 sm:$0xff]  }
  0x63   : > { %1879 = vmatpush3.bf16.msra.mxu1 %v2042_v20  ;;  %1768 = vmatprep.subr.bf16.mxu0 %v2043_v21  ;;  %v2091_v57 = vld [vmem:[%s2396_s8 + $0xc4] ss:$16 sps:$4 sm:$0xff]   ;;  %v2093_v58 = vld [vmem:[%s2396_s8 + $0xcc] ss:$16 sps:$4 sm:$0xff]   ;;  %v2095_v59 = vld [vmem:[%s2396_s8 + $0xc0] ss:$16 sps:$4 sm:$0xff]  }
  0x64   : > { %1880 = vmatprep.subr.bf16.mxu1 %v2044_v22  ;;  %v2096_v60 = vld [vmem:[%s2396_s8 + $0xc8] ss:$16 sps:$4 sm:$0xff]   ;;  %v2097_v61 = vld [vmem:[%s2396_s8 + $0xe4] ss:$16 sps:$4 sm:$0xff]   ;;  %v2099_v62 = vld [vmem:[%s2396_s8 + $0xec] ss:$16 sps:$4 sm:$0xff]  }
  0x65   : > { %v2101_v63 = vld [vmem:[%s2396_s8 + $0xe0] ss:$16 sps:$4 sm:$0xff]   ;;  %v2102_v0 = vld [vmem:[%s2396_s8 + $0xe8] ss:$16 sps:$4 sm:$0xff]   ;;  %v2103_v1 = vld [vmem:[%s2396_s8 + $0x104] ss:$16 sps:$4 sm:$0xff]  }
  0x66   : > { %1769 = vmatpush3.bf16.msra.mxu0 %v2045_v23  ;;  %v2105_v2 = vld [vmem:[%s2396_s8 + $0x10c] ss:$16 sps:$4 sm:$0xff]   ;;  %v2107_v3 = vld [vmem:[%s2396_s8 + $0x100] ss:$16 sps:$4 sm:$0xff]   ;;  %v2108_v4 = vld [vmem:[%s2396_s8 + $0x108] ss:$16 sps:$4 sm:$0xff]  }
  0x67   : > { %1881 = vmatpush3.bf16.msra.mxu1 %v2046_v24  ;;  %1770 = vmatprep.subr.bf16.mxu0 %v2047_v25  ;;  %v2109_v5 = vld [vmem:[%s2396_s8 + $0x124] ss:$16 sps:$4 sm:$0xff]   ;;  %v2111_v6 = vld [vmem:[%s2396_s8 + $0x12c] ss:$16 sps:$4 sm:$0xff]   ;;  %v2113_v7 = vld [vmem:[%s2396_s8 + $0x120] ss:$16 sps:$4 sm:$0xff]  }
  0x68   : > { %1882 = vmatprep.subr.bf16.mxu1 %v2048_v26  ;;  %v2114_v8 = vld [vmem:[%s2396_s8 + $0x128] ss:$16 sps:$4 sm:$0xff]   ;;  %v2115_v9 = vld [vmem:[%s2396_s8 + $0x144] ss:$16 sps:$4 sm:$0xff]   ;;  %v2117_v10 = vld [vmem:[%s2396_s8 + $0x14c] ss:$16 sps:$4 sm:$0xff]  }
  0x69   : > { %v2119_v11 = vld [vmem:[%s2396_s8 + $0x140] ss:$16 sps:$4 sm:$0xff]   ;;  %v2120_v12 = vld [vmem:[%s2396_s8 + $0x148] ss:$16 sps:$4 sm:$0xff]   ;;  %v2121_v13 = vld [vmem:[%s2396_s8 + $0x164] ss:$16 sps:$4 sm:$0xff]  }
  0x6a   : > { %1771 = vmatpush3.bf16.msra.mxu0 %v2049_v27  ;;  %v2123_v14 = vld [vmem:[%s2396_s8 + $0x16c] ss:$16 sps:$4 sm:$0xff]   ;;  %v2125_v15 = vld [vmem:[%s2396_s8 + $0x160] ss:$16 sps:$4 sm:$0xff]   ;;  %v2126_v16 = vld [vmem:[%s2396_s8 + $0x168] ss:$16 sps:$4 sm:$0xff]  }
  0x6b   : > { %1883 = vmatpush3.bf16.msra.mxu1 %v2050_v28  ;;  %1772 = vmatprep.subr.bf16.mxu0 %v2051_v29  ;;  %v2127_v17 = vld [vmem:[%s2396_s8 + $0x184] ss:$16 sps:$4 sm:$0xff]   ;;  %v2129_v18 = vld [vmem:[%s2396_s8 + $0x18c] ss:$16 sps:$4 sm:$0xff]   ;;  %v2131_v19 = vld [vmem:[%s2396_s8 + $0x180] ss:$16 sps:$4 sm:$0xff]  }
  0x6c   : > { %1884 = vmatprep.subr.bf16.mxu1 %v2052_v30  ;;  %v2132_v20 = vld [vmem:[%s2396_s8 + $0x188] ss:$16 sps:$4 sm:$0xff]   ;;  %v2133_v21 = vld [vmem:[%s2396_s8 + $0x1a4] ss:$16 sps:$4 sm:$0xff]   ;;  %v2135_v22 = vld [vmem:[%s2396_s8 + $0x1ac] ss:$16 sps:$4 sm:$0xff]  }
  0x6d   : > { %v2137_v23 = vld [vmem:[%s2396_s8 + $0x1a0] ss:$16 sps:$4 sm:$0xff]   ;;  %v2138_v24 = vld [vmem:[%s2396_s8 + $0x1a8] ss:$16 sps:$4 sm:$0xff]   ;;  %v2139_v25 = vld [vmem:[%s2396_s8 + $0x1c4] ss:$16 sps:$4 sm:$0xff]  }
  0x6e   : > { %1773 = vmatpush3.bf16.msra.mxu0 %v2053_v31  ;;  %v2141_v26 = vld [vmem:[%s2396_s8 + $0x1cc] ss:$16 sps:$4 sm:$0xff]   ;;  %v2143_v27 = vld [vmem:[%s2396_s8 + $0x1c0] ss:$16 sps:$4 sm:$0xff]   ;;  %v2144_v28 = vld [vmem:[%s2396_s8 + $0x1c8] ss:$16 sps:$4 sm:$0xff]  }
  0x6f   : > { %1885 = vmatpush3.bf16.msra.mxu1 %v2054_v32  ;;  %v2145_v29 = vld [vmem:[%s2396_s8 + $0x1e4] ss:$16 sps:$4 sm:$0xff]   ;;  %v2147_v30 = vld [vmem:[%s2396_s8 + $0x1ec] ss:$16 sps:$4 sm:$0xff]   ;;  %v2149_v31 = vld [vmem:[%s2396_s8 + $0x1e0] ss:$16 sps:$4 sm:$0xff]  }
  0x70   : > { %v2150_v32 = vld [vmem:[%s2396_s8 + $0x1e8] ss:$16 sps:$4 sm:$0xff]  }
  0x71   : > { %1101 = vmatmul.mubr.bf16.vlgmr.msra.gmra.mrb[0].mxu0 %v2055_v33 }
  0x72   : > { %1262 = vmatmul.mubr.bf16.vlgmr.msra.gmra.mrb[0].mxu1 %v2058_v35  ;;  %1108 = vmatprep.mubr.bf16.mxu0 %v2061_v37 }
  0x73   : > { %1269 = vmatprep.mubr.bf16.mxu1 %v2063_v38 }
  0x79   : > { %1109 = vmatmul.mubr.bf16.gmra.mrb[4].mxu0 %v2065_v39 }
  0x7a   : > { %1270 = vmatmul.mubr.bf16.gmra.mrb[4].mxu1 %v2066_v40  ;;  %1116 = vmatprep.mubr.bf16.mxu0 %v2067_v41 }
  0x7b   : > { %1277 = vmatprep.mubr.bf16.mxu1 %v2069_v42  ;;  %v396_v42 = vld [vmem:[#allocation2] sm:$0xff] }
  0x81   : > { %1117 = vmatmul.mubr.bf16.gmra.mrb[8].mxu0 %v2071_v43 }
  0x82   : > { %1278 = vmatmul.mubr.bf16.gmra.mrb[8].mxu1 %v2072_v44  ;;  %1124 = vmatprep.mubr.bf16.mxu0 %v2073_v45 }
  0x83   : > { %1285 = vmatprep.mubr.bf16.mxu1 %v2075_v46 }
  0x89   : > { %1125 = vmatmul.mubr.bf16.gmra.mrb[12].mxu0 %v2077_v47  ;;  %v397_v47 = vld [vmem:[#allocation2 + $0x8] sm:$0xff] }
  0x8a   : > { %1286 = vmatmul.mubr.bf16.gmra.mrb[12].mxu1 %v2078_v48  ;;  %1132 = vmatprep.mubr.bf16.mxu0 %v2079_v49 }
  0x8b   : > { %1293 = vmatprep.mubr.bf16.mxu1 %v2081_v50 }
  0x91   : > { %1133 = vmatmul.mubr.bf16.gmra.mrb[16].mxu0 %v2083_v51 }
  0x92   : > { %1294 = vmatmul.mubr.bf16.gmra.mrb[16].mxu1 %v2084_v52  ;;  %1140 = vmatprep.mubr.bf16.mxu0 %v2085_v53 }
  0x93   : > { %1301 = vmatprep.mubr.bf16.mxu1 %v2087_v54 }
  0x99   : > { %1141 = vmatmul.mubr.bf16.gmra.mrb[20].mxu0 %v2089_v55 }
  0x9a   : > { %1302 = vmatmul.mubr.bf16.gmra.mrb[20].mxu1 %v2090_v56  ;;  %1148 = vmatprep.mubr.bf16.mxu0 %v2091_v57 }
  0x9b   : > { %1309 = vmatprep.mubr.bf16.mxu1 %v2093_v58 }
  0xa1   : > { %1149 = vmatmul.mubr.bf16.gmra.mrb[24].mxu0 %v2095_v59 }
  0xa2   : > { %1310 = vmatmul.mubr.bf16.gmra.mrb[24].mxu1 %v2096_v60  ;;  %1156 = vmatprep.mubr.bf16.mxu0 %v2097_v61  ;;  %v398_v60 = vld [vmem:[#allocation2 + $0x10] sm:$0xff] }
  0xa3   : > { %1317 = vmatprep.mubr.bf16.mxu1 %v2099_v62 }
  0xa9   : > { %1157 = vmatmul.mubr.bf16.gmra.mrb[28].mxu0 %v2101_v63 }
  0xaa   : > { %1318 = vmatmul.mubr.bf16.gmra.mrb[28].mxu1 %v2102_v0  ;;  %1164 = vmatprep.mubr.bf16.mxu0 %v2103_v1  ;;  %v399_v1 = vld [vmem:[#allocation2 + $0x18] sm:$0xff] }
  0xab   : > { %1325 = vmatprep.mubr.bf16.mxu1 %v2105_v2 }
  0xb1   : > { %1165 = vmatmul.mubr.bf16.gmra.mrb[32].mxu0 %v2107_v3 }
  0xb2   : > { %1326 = vmatmul.mubr.bf16.gmra.mrb[32].mxu1 %v2108_v4  ;;  %1172 = vmatprep.mubr.bf16.mxu0 %v2109_v5 }
  0xb3   : > { %1333 = vmatprep.mubr.bf16.mxu1 %v2111_v6 }
  0xb9   : > { %1173 = vmatmul.mubr.bf16.gmra.mrb[36].mxu0 %v2113_v7 }
  0xba   : > { %1334 = vmatmul.mubr.bf16.gmra.mrb[36].mxu1 %v2114_v8  ;;  %1180 = vmatprep.mubr.bf16.mxu0 %v2115_v9 }
  0xbb   : > { %1341 = vmatprep.mubr.bf16.mxu1 %v2117_v10 }
  0xc1   : > { %1181 = vmatmul.mubr.bf16.gmra.mrb[40].mxu0 %v2119_v11 }
  0xc2   : > { %1342 = vmatmul.mubr.bf16.gmra.mrb[40].mxu1 %v2120_v12  ;;  %1188 = vmatprep.mubr.bf16.mxu0 %v2121_v13 }
  0xc3   : > { %1349 = vmatprep.mubr.bf16.mxu1 %v2123_v14  ;;  %v400_v14 = vld [vmem:[#allocation2 + $0x20] sm:$0xff] }
  0xc9   : > { %1189 = vmatmul.mubr.bf16.gmra.mrb[44].mxu0 %v2125_v15 }
  0xca   : > { %1350 = vmatmul.mubr.bf16.gmra.mrb[44].mxu1 %v2126_v16  ;;  %1196 = vmatprep.mubr.bf16.mxu0 %v2127_v17 }
  0xcb   : > { %1357 = vmatprep.mubr.bf16.mxu1 %v2129_v18 }
  0xd1   : > { %1197 = vmatmul.mubr.bf16.gmra.mrb[48].mxu0 %v2131_v19  ;;  %v401_v19 = vld [vmem:[#allocation2 + $0x28] sm:$0xff] }
  0xd2   : > { %1358 = vmatmul.mubr.bf16.gmra.mrb[48].mxu1 %v2132_v20  ;;  %1204 = vmatprep.mubr.bf16.mxu0 %v2133_v21 }
  0xd3   : > { %1365 = vmatprep.mubr.bf16.mxu1 %v2135_v22 }
  0xd9   : > { %1205 = vmatmul.mubr.bf16.gmra.mrb[52].mxu0 %v2137_v23 }
  0xda   : > { %1366 = vmatmul.mubr.bf16.gmra.mrb[52].mxu1 %v2138_v24  ;;  %1212 = vmatprep.mubr.bf16.mxu0 %v2139_v25 }
  0xdb   : > { %1373 = vmatprep.mubr.bf16.mxu1 %v2141_v26 }
  0xe1   : > { %1213 = vmatmul.mubr.bf16.gmra.mrb[56].mxu0 %v2143_v27 }
  0xe2   : > { %1374 = vmatmul.mubr.bf16.gmra.mrb[56].mxu1 %v2144_v28  ;;  %1220 = vmatprep.mubr.bf16.mxu0 %v2145_v29 }
  0xe3   : > { %1381 = vmatprep.mubr.bf16.mxu1 %v2147_v30 }
  0xe9   : > { %1221 = vmatmul.mubr.bf16.gmra.mrb[60].mxu0 %v2149_v31 }
  0xea   : > { %1382 = vmatmul.mubr.bf16.gmra.mrb[60].mxu1 %v2150_v32  ;;  %v402_v32 = vld [vmem:[#allocation2 + $0x30] sm:$0xff] }
 0x144   : > { %v1774_v33 = vpop.f32.mrb[0].mxu0 }
 0x145   : > { %v1886_v34 = vpop.f32.mrb[0].mxu1  ;;  %v1775_v35 = vpop.f32.mrb[1].mxu0 }
 0x146   : > { %v1776_v36 = vadd.f32 %v1775_v35, %v1774_v33  ;;  %v1887_v37 = vpop.f32.mrb[1].mxu1  ;;  %v1777_v38 = vpop.f32.mrb[2].mxu0 }
 0x147   : > { %v1888_v39 = vadd.f32 %v1887_v37, %v1886_v34  ;;  %v1889_v40 = vpop.f32.mrb[2].mxu1  ;;  %v1778_v41 = vpop.f32.mrb[3].mxu0  ;;  %v403_v37 = vld [vmem:[#allocation2 + $0x38] sm:$0xff] }
 0x148   : > { %v1779_v43 = vadd.f32 %v1778_v41, %v1777_v38  ;;  %v1890_v44 = vpop.f32.mrb[3].mxu1 }
 0x149   : > { %v1264_v45 = vadd.f32 %v1888_v39, %v1776_v36  ;;  %v1891_v46 = vadd.f32 %v1890_v44, %v1889_v40 }
 0x14b   : > { %v1390_v48 = vadd.f32 %v1264_v45, %v396_v42  ;;  %v1267_v49 = vadd.f32 %v1891_v46, %v1779_v43 }
 0x14c   : > { %v1780_v50 = vpop.f32.mrb[4].mxu0 }
 0x14d   : > { %1422 = vst [vmem:[#allocation2] sm:$0xff] %v1390_v48  ;;  %v1391_v51 = vadd.f32 %v1267_v49, %v397_v47  ;;  %v1892_v52 = vpop.f32.mrb[4].mxu1  ;;  %v1781_v53 = vpop.f32.mrb[5].mxu0 }
 0x14e   : > { %v1782_v54 = vadd.f32 %v1781_v53, %v1780_v50  ;;  %v1893_v55 = vpop.f32.mrb[5].mxu1  ;;  %v1783_v56 = vpop.f32.mrb[6].mxu0  ;;  %v404_v50 = vld [vmem:[#allocation2 + $0x40] sm:$0xff] }
 0x14f   : > { %1423 = vst [vmem:[#allocation2 + $0x8] sm:$0xff] %v1391_v51  ;;  %v1894_v57 = vadd.f32 %v1893_v55, %v1892_v52  ;;  %v1895_v58 = vpop.f32.mrb[6].mxu1  ;;  %v1784_v59 = vpop.f32.mrb[7].mxu0  ;;  %v405_v55 = vld [vmem:[#allocation2 + $0x48] sm:$0xff] }
 0x150   : > { %v1785_v61 = vadd.f32 %v1784_v59, %v1783_v56  ;;  %v1896_v62 = vpop.f32.mrb[7].mxu1 }
 0x151   : > { %v1272_v63 = vadd.f32 %v1894_v57, %v1782_v54  ;;  %v1897_v0 = vadd.f32 %v1896_v62, %v1895_v58 }
 0x153   : > { %v1392_v2 = vadd.f32 %v1272_v63, %v398_v60  ;;  %v1275_v3 = vadd.f32 %v1897_v0, %v1785_v61 }
 0x154   : > { %v1786_v4 = vpop.f32.mrb[8].mxu0 }
 0x155   : > { %1424 = vst [vmem:[#allocation2 + $0x10] sm:$0xff] %v1392_v2  ;;  %v1393_v5 = vadd.f32 %v1275_v3, %v399_v1  ;;  %v1898_v6 = vpop.f32.mrb[8].mxu1  ;;  %v1787_v7 = vpop.f32.mrb[9].mxu0 }
 0x156   : > { %v1788_v8 = vadd.f32 %v1787_v7, %v1786_v4  ;;  %v1899_v9 = vpop.f32.mrb[9].mxu1  ;;  %v1789_v10 = vpop.f32.mrb[10].mxu0  ;;  %v406_v4 = vld [vmem:[#allocation2 + $0x50] sm:$0xff] }
 0x157   : > { %1425 = vst [vmem:[#allocation2 + $0x18] sm:$0xff] %v1393_v5  ;;  %v1900_v11 = vadd.f32 %v1899_v9, %v1898_v6  ;;  %v1901_v12 = vpop.f32.mrb[10].mxu1  ;;  %v1790_v13 = vpop.f32.mrb[11].mxu0  ;;  %v407_v9 = vld [vmem:[#allocation2 + $0x58] sm:$0xff] }
 0x158   : > { %v1791_v15 = vadd.f32 %v1790_v13, %v1789_v10  ;;  %v1902_v16 = vpop.f32.mrb[11].mxu1 }
 0x159   : > { %v1280_v17 = vadd.f32 %v1900_v11, %v1788_v8  ;;  %v1903_v18 = vadd.f32 %v1902_v16, %v1901_v12 }
 0x15b   : > { %v1394_v20 = vadd.f32 %v1280_v17, %v400_v14  ;;  %v1283_v21 = vadd.f32 %v1903_v18, %v1791_v15 }
 0x15c   : > { %v1792_v22 = vpop.f32.mrb[12].mxu0 }
 0x15d   : > { %1426 = vst [vmem:[#allocation2 + $0x20] sm:$0xff] %v1394_v20  ;;  %v1395_v23 = vadd.f32 %v1283_v21, %v401_v19  ;;  %v1904_v24 = vpop.f32.mrb[12].mxu1  ;;  %v1793_v25 = vpop.f32.mrb[13].mxu0 }
 0x15e   : > { %v1794_v26 = vadd.f32 %v1793_v25, %v1792_v22  ;;  %v1905_v27 = vpop.f32.mrb[13].mxu1  ;;  %v1795_v28 = vpop.f32.mrb[14].mxu0  ;;  %v408_v22 = vld [vmem:[#allocation2 + $0x60] sm:$0xff] }
 0x15f   : > { %1427 = vst [vmem:[#allocation2 + $0x28] sm:$0xff] %v1395_v23  ;;  %v1906_v29 = vadd.f32 %v1905_v27, %v1904_v24  ;;  %v1907_v30 = vpop.f32.mrb[14].mxu1  ;;  %v1796_v31 = vpop.f32.mrb[15].mxu0  ;;  %v409_v27 = vld [vmem:[#allocation2 + $0x68] sm:$0xff] }
 0x160   : > { %v1797_v33 = vadd.f32 %v1796_v31, %v1795_v28  ;;  %v1908_v34 = vpop.f32.mrb[15].mxu1 }
 0x161   : > { %v1288_v35 = vadd.f32 %v1906_v29, %v1794_v26  ;;  %v1909_v36 = vadd.f32 %v1908_v34, %v1907_v30 }
 0x163   : > { %v1396_v38 = vadd.f32 %v1288_v35, %v402_v32  ;;  %v1291_v39 = vadd.f32 %v1909_v36, %v1797_v33 }
 0x164   : > { %v1798_v40 = vpop.f32.mrb[16].mxu0 }
 0x165   : > { %1428 = vst [vmem:[#allocation2 + $0x30] sm:$0xff] %v1396_v38  ;;  %v1397_v41 = vadd.f32 %v1291_v39, %v403_v37  ;;  %v1910_v42 = vpop.f32.mrb[16].mxu1  ;;  %v1799_v43 = vpop.f32.mrb[17].mxu0 }
 0x166   : > { %v1800_v44 = vadd.f32 %v1799_v43, %v1798_v40  ;;  %v1911_v45 = vpop.f32.mrb[17].mxu1  ;;  %v1801_v46 = vpop.f32.mrb[18].mxu0  ;;  %v410_v40 = vld [vmem:[#allocation2 + $0x70] sm:$0xff] }
 0x167   : > { %1429 = vst [vmem:[#allocation2 + $0x38] sm:$0xff] %v1397_v41  ;;  %v1912_v47 = vadd.f32 %v1911_v45, %v1910_v42  ;;  %v1913_v48 = vpop.f32.mrb[18].mxu1  ;;  %v1802_v49 = vpop.f32.mrb[19].mxu0  ;;  %v411_v45 = vld [vmem:[#allocation2 + $0x78] sm:$0xff] }
 0x168   : > { %v1803_v51 = vadd.f32 %v1802_v49, %v1801_v46  ;;  %v1914_v52 = vpop.f32.mrb[19].mxu1 }
 0x169   : > { %v1296_v53 = vadd.f32 %v1912_v47, %v1800_v44  ;;  %v1915_v54 = vadd.f32 %v1914_v52, %v1913_v48 }
 0x16b   : > { %v1398_v56 = vadd.f32 %v1296_v53, %v404_v50  ;;  %v1299_v57 = vadd.f32 %v1915_v54, %v1803_v51 }
 0x16c   : > { %v1804_v58 = vpop.f32.mrb[20].mxu0 }
 0x16d   : > { %1430 = vst [vmem:[#allocation2 + $0x40] sm:$0xff] %v1398_v56  ;;  %v1399_v59 = vadd.f32 %v1299_v57, %v405_v55  ;;  %v1916_v60 = vpop.f32.mrb[20].mxu1  ;;  %v1805_v61 = vpop.f32.mrb[21].mxu0 }
 0x16e   : > { %v1806_v62 = vadd.f32 %v1805_v61, %v1804_v58  ;;  %v1917_v63 = vpop.f32.mrb[21].mxu1  ;;  %v1807_v0 = vpop.f32.mrb[22].mxu0  ;;  %v412_v58 = vld [vmem:[#allocation2 + $0x80] sm:$0xff] }
 0x16f   : > { %1431 = vst [vmem:[#allocation2 + $0x48] sm:$0xff] %v1399_v59  ;;  %v1918_v1 = vadd.f32 %v1917_v63, %v1916_v60  ;;  %v1919_v2 = vpop.f32.mrb[22].mxu1  ;;  %v1808_v3 = vpop.f32.mrb[23].mxu0  ;;  %v413_v63 = vld [vmem:[#allocation2 + $0x88] sm:$0xff] }
 0x170   : > { %v1809_v5 = vadd.f32 %v1808_v3, %v1807_v0  ;;  %v1920_v6 = vpop.f32.mrb[23].mxu1 }
 0x171   : > { %v1304_v7 = vadd.f32 %v1918_v1, %v1806_v62  ;;  %v1921_v8 = vadd.f32 %v1920_v6, %v1919_v2 }
 0x173   : > { %v1400_v10 = vadd.f32 %v1304_v7, %v406_v4  ;;  %v1307_v11 = vadd.f32 %v1921_v8, %v1809_v5 }
 0x174   : > { %v1810_v12 = vpop.f32.mrb[24].mxu0 }
 0x175   : > { %1432 = vst [vmem:[#allocation2 + $0x50] sm:$0xff] %v1400_v10  ;;  %v1401_v13 = vadd.f32 %v1307_v11, %v407_v9  ;;  %v1922_v14 = vpop.f32.mrb[24].mxu1  ;;  %v1811_v15 = vpop.f32.mrb[25].mxu0 }
 0x176   : > { %v1812_v16 = vadd.f32 %v1811_v15, %v1810_v12  ;;  %v1923_v17 = vpop.f32.mrb[25].mxu1  ;;  %v1813_v18 = vpop.f32.mrb[26].mxu0  ;;  %v414_v12 = vld [vmem:[#allocation2 + $0x90] sm:$0xff] }
 0x177   : > { %1433 = vst [vmem:[#allocation2 + $0x58] sm:$0xff] %v1401_v13  ;;  %v1924_v19 = vadd.f32 %v1923_v17, %v1922_v14  ;;  %v1925_v20 = vpop.f32.mrb[26].mxu1  ;;  %v1814_v21 = vpop.f32.mrb[27].mxu0  ;;  %v415_v17 = vld [vmem:[#allocation2 + $0x98] sm:$0xff] }
 0x178   : > { %v1815_v23 = vadd.f32 %v1814_v21, %v1813_v18  ;;  %v1926_v24 = vpop.f32.mrb[27].mxu1 }
 0x179   : > { %v1312_v25 = vadd.f32 %v1924_v19, %v1812_v16  ;;  %v1927_v26 = vadd.f32 %v1926_v24, %v1925_v20 }
 0x17b   : > { %v1402_v28 = vadd.f32 %v1312_v25, %v408_v22  ;;  %v1315_v29 = vadd.f32 %v1927_v26, %v1815_v23 }
 0x17c   : > { %v1816_v30 = vpop.f32.mrb[28].mxu0 }
 0x17d   : > { %1434 = vst [vmem:[#allocation2 + $0x60] sm:$0xff] %v1402_v28  ;;  %v1403_v31 = vadd.f32 %v1315_v29, %v409_v27  ;;  %v1928_v32 = vpop.f32.mrb[28].mxu1  ;;  %v1817_v33 = vpop.f32.mrb[29].mxu0 }
 0x17e   : > { %v1818_v34 = vadd.f32 %v1817_v33, %v1816_v30  ;;  %v1929_v35 = vpop.f32.mrb[29].mxu1  ;;  %v1819_v36 = vpop.f32.mrb[30].mxu0  ;;  %v416_v30 = vld [vmem:[#allocation2 + $0xa0] sm:$0xff] }
 0x17f   : > { %1435 = vst [vmem:[#allocation2 + $0x68] sm:$0xff] %v1403_v31  ;;  %v1930_v37 = vadd.f32 %v1929_v35, %v1928_v32  ;;  %v1931_v38 = vpop.f32.mrb[30].mxu1  ;;  %v1820_v39 = vpop.f32.mrb[31].mxu0  ;;  %v417_v35 = vld [vmem:[#allocation2 + $0xa8] sm:$0xff] }
 0x180   : > { %v1821_v41 = vadd.f32 %v1820_v39, %v1819_v36  ;;  %v1932_v42 = vpop.f32.mrb[31].mxu1 }
 0x181   : > { %v1320_v43 = vadd.f32 %v1930_v37, %v1818_v34  ;;  %v1933_v44 = vadd.f32 %v1932_v42, %v1931_v38 }
 0x183   : > { %v1404_v46 = vadd.f32 %v1320_v43, %v410_v40  ;;  %v1323_v47 = vadd.f32 %v1933_v44, %v1821_v41 }
 0x184   : > { %v1822_v48 = vpop.f32.mrb[32].mxu0 }
 0x185   : > { %1436 = vst [vmem:[#allocation2 + $0x70] sm:$0xff] %v1404_v46  ;;  %v1405_v49 = vadd.f32 %v1323_v47, %v411_v45  ;;  %v1934_v50 = vpop.f32.mrb[32].mxu1  ;;  %v1823_v51 = vpop.f32.mrb[33].mxu0 }
 0x186   : > { %v1824_v52 = vadd.f32 %v1823_v51, %v1822_v48  ;;  %v1935_v53 = vpop.f32.mrb[33].mxu1  ;;  %v1825_v54 = vpop.f32.mrb[34].mxu0  ;;  %v418_v48 = vld [vmem:[#allocation2 + $0xb0] sm:$0xff] }
 0x187   : > { %1437 = vst [vmem:[#allocation2 + $0x78] sm:$0xff] %v1405_v49  ;;  %v1936_v55 = vadd.f32 %v1935_v53, %v1934_v50  ;;  %v1937_v56 = vpop.f32.mrb[34].mxu1  ;;  %v1826_v57 = vpop.f32.mrb[35].mxu0  ;;  %v419_v53 = vld [vmem:[#allocation2 + $0xb8] sm:$0xff] }
 0x188   : > { %v1827_v59 = vadd.f32 %v1826_v57, %v1825_v54  ;;  %v1938_v60 = vpop.f32.mrb[35].mxu1 }
 0x189   : > { %v1328_v61 = vadd.f32 %v1936_v55, %v1824_v52  ;;  %v1939_v62 = vadd.f32 %v1938_v60, %v1937_v56 }
 0x18b   : > { %v1406_v0 = vadd.f32 %v1328_v61, %v412_v58  ;;  %v1331_v1 = vadd.f32 %v1939_v62, %v1827_v59 }
 0x18c   : > { %v1828_v2 = vpop.f32.mrb[36].mxu0 }
 0x18d   : > { %1438 = vst [vmem:[#allocation2 + $0x80] sm:$0xff] %v1406_v0  ;;  %v1407_v3 = vadd.f32 %v1331_v1, %v413_v63  ;;  %v1940_v4 = vpop.f32.mrb[36].mxu1  ;;  %v1829_v5 = vpop.f32.mrb[37].mxu0 }
 0x18e   : > { %v1830_v6 = vadd.f32 %v1829_v5, %v1828_v2  ;;  %v1941_v7 = vpop.f32.mrb[37].mxu1  ;;  %v1831_v8 = vpop.f32.mrb[38].mxu0  ;;  %v420_v2 = vld [vmem:[#allocation2 + $0xc0] sm:$0xff] }
 0x18f   : > { %1439 = vst [vmem:[#allocation2 + $0x88] sm:$0xff] %v1407_v3  ;;  %v1942_v9 = vadd.f32 %v1941_v7, %v1940_v4  ;;  %v1943_v10 = vpop.f32.mrb[38].mxu1  ;;  %v1832_v11 = vpop.f32.mrb[39].mxu0  ;;  %v421_v7 = vld [vmem:[#allocation2 + $0xc8] sm:$0xff] }
 0x190   : > { %v1833_v13 = vadd.f32 %v1832_v11, %v1831_v8  ;;  %v1944_v14 = vpop.f32.mrb[39].mxu1 }
 0x191   : > { %v1336_v15 = vadd.f32 %v1942_v9, %v1830_v6  ;;  %v1945_v16 = vadd.f32 %v1944_v14, %v1943_v10 }
 0x193   : > { %v1408_v18 = vadd.f32 %v1336_v15, %v414_v12  ;;  %v1339_v19 = vadd.f32 %v1945_v16, %v1833_v13 }
 0x194   : > { %v1834_v20 = vpop.f32.mrb[40].mxu0 }
 0x195   : > { %1440 = vst [vmem:[#allocation2 + $0x90] sm:$0xff] %v1408_v18  ;;  %v1409_v21 = vadd.f32 %v1339_v19, %v415_v17  ;;  %v1946_v22 = vpop.f32.mrb[40].mxu1  ;;  %v1835_v23 = vpop.f32.mrb[41].mxu0 }
 0x196   : > { %v1836_v24 = vadd.f32 %v1835_v23, %v1834_v20  ;;  %v1947_v25 = vpop.f32.mrb[41].mxu1  ;;  %v1837_v26 = vpop.f32.mrb[42].mxu0  ;;  %v422_v20 = vld [vmem:[#allocation2 + $0xd0] sm:$0xff] }
 0x197   : > { %1441 = vst [vmem:[#allocation2 + $0x98] sm:$0xff] %v1409_v21  ;;  %v1948_v27 = vadd.f32 %v1947_v25, %v1946_v22  ;;  %v1949_v28 = vpop.f32.mrb[42].mxu1  ;;  %v1838_v29 = vpop.f32.mrb[43].mxu0  ;;  %v423_v25 = vld [vmem:[#allocation2 + $0xd8] sm:$0xff] }
 0x198   : > { %v1839_v31 = vadd.f32 %v1838_v29, %v1837_v26  ;;  %v1950_v32 = vpop.f32.mrb[43].mxu1 }
 0x199   : > { %v1344_v33 = vadd.f32 %v1948_v27, %v1836_v24  ;;  %v1951_v34 = vadd.f32 %v1950_v32, %v1949_v28 }
 0x19b   : > { %v1410_v36 = vadd.f32 %v1344_v33, %v416_v30  ;;  %v1347_v37 = vadd.f32 %v1951_v34, %v1839_v31 }
 0x19c   : > { %v1840_v38 = vpop.f32.mrb[44].mxu0 }
 0x19d   : > { %1442 = vst [vmem:[#allocation2 + $0xa0] sm:$0xff] %v1410_v36  ;;  %v1411_v39 = vadd.f32 %v1347_v37, %v417_v35  ;;  %v1952_v40 = vpop.f32.mrb[44].mxu1  ;;  %v1841_v41 = vpop.f32.mrb[45].mxu0 }
 0x19e   : > { %v1842_v42 = vadd.f32 %v1841_v41, %v1840_v38  ;;  %v1953_v43 = vpop.f32.mrb[45].mxu1  ;;  %v1843_v44 = vpop.f32.mrb[46].mxu0  ;;  %v424_v38 = vld [vmem:[#allocation2 + $0xe0] sm:$0xff] }
 0x19f   : > { %1443 = vst [vmem:[#allocation2 + $0xa8] sm:$0xff] %v1411_v39  ;;  %v1954_v45 = vadd.f32 %v1953_v43, %v1952_v40  ;;  %v1955_v46 = vpop.f32.mrb[46].mxu1  ;;  %v1844_v47 = vpop.f32.mrb[47].mxu0  ;;  %v425_v43 = vld [vmem:[#allocation2 + $0xe8] sm:$0xff] }
 0x1a0   : > { %v1845_v49 = vadd.f32 %v1844_v47, %v1843_v44  ;;  %v1956_v50 = vpop.f32.mrb[47].mxu1 }
 0x1a1   : > { %v1352_v51 = vadd.f32 %v1954_v45, %v1842_v42  ;;  %v1957_v52 = vadd.f32 %v1956_v50, %v1955_v46 }
 0x1a3   : > { %v1412_v54 = vadd.f32 %v1352_v51, %v418_v48  ;;  %v1355_v55 = vadd.f32 %v1957_v52, %v1845_v49 }
 0x1a4   : > { %v1846_v56 = vpop.f32.mrb[48].mxu0 }
 0x1a5   : > { %1444 = vst [vmem:[#allocation2 + $0xb0] sm:$0xff] %v1412_v54  ;;  %v1413_v57 = vadd.f32 %v1355_v55, %v419_v53  ;;  %v1958_v58 = vpop.f32.mrb[48].mxu1  ;;  %v1847_v59 = vpop.f32.mrb[49].mxu0 }
 0x1a6   : > { %v1848_v60 = vadd.f32 %v1847_v59, %v1846_v56  ;;  %v1959_v61 = vpop.f32.mrb[49].mxu1  ;;  %v1849_v62 = vpop.f32.mrb[50].mxu0  ;;  %v426_v56 = vld [vmem:[#allocation2 + $0xf0] sm:$0xff] }
 0x1a7   : > { %1445 = vst [vmem:[#allocation2 + $0xb8] sm:$0xff] %v1413_v57  ;;  %v1960_v63 = vadd.f32 %v1959_v61, %v1958_v58  ;;  %v1961_v0 = vpop.f32.mrb[50].mxu1  ;;  %v1850_v1 = vpop.f32.mrb[51].mxu0  ;;  %v427_v61 = vld [vmem:[#allocation2 + $0xf8] sm:$0xff] }
 0x1a8   : > { %v1851_v3 = vadd.f32 %v1850_v1, %v1849_v62  ;;  %v1962_v4 = vpop.f32.mrb[51].mxu1  ;;  %v1458_v1 = vld [vmem:[#allocation2] sm:$0xff] (!%p1751_p11) }
 0x1a9   : > { %v1360_v5 = vadd.f32 %v1960_v63, %v1848_v60  ;;  %v1963_v6 = vadd.f32 %v1962_v4, %v1961_v0 }
 0x1ab   : > { %v1414_v8 = vadd.f32 %v1360_v5, %v420_v2  ;;  %v1363_v9 = vadd.f32 %v1963_v6, %v1851_v3  ;;  %v2499_v2 = vld [vmem:[%s2646_s2] ss:$0 sm:$0xff] (!%p1751_p11)  ;;  %v1459_v3 = vld [vmem:[#allocation2 + $0x8] sm:$0xff] (!%p1751_p11)  ;;  %v1460_v6 = vld [vmem:[#allocation2 + $0x10] sm:$0xff] (!%p1751_p11) }
 0x1ac   : > { %v1852_v10 = vpop.f32.mrb[52].mxu0  ;;  %v1497_v4 = vadd.f32 (!%p1751_p11), %v2499_v2, %v1458_v1  ;;  %v1498_v5 = vadd.f32 (!%p1751_p11), %v2499_v2, %v1459_v3 }
 0x1ad   : > { %1446 = vst [vmem:[#allocation2 + $0xc0] sm:$0xff] %v1414_v8  ;;  %v1415_v11 = vadd.f32 %v1363_v9, %v421_v7  ;;  %v1964_v12 = vpop.f32.mrb[52].mxu1  ;;  %v1853_v13 = vpop.f32.mrb[53].mxu0  ;;  %v1461_v7 = vld [vmem:[#allocation2 + $0x18] sm:$0xff] (!%p1751_p11)  ;;  %v1462_v8 = vld [vmem:[#allocation2 + $0x20] sm:$0xff] (!%p1751_p11)  ;;  %v1499_v9 = vadd.f32 (!%p1751_p11), %v2499_v2, %v1460_v6 }
 0x1ae   : > { %v1854_v14 = vadd.f32 %v1853_v13, %v1852_v10  ;;  %v1965_v15 = vpop.f32.mrb[53].mxu1  ;;  %v1855_v16 = vpop.f32.mrb[54].mxu0  ;;  %v1500_v10 = vadd.f32 (!%p1751_p11), %v2499_v2, %v1461_v7  ;;  %v1464_v13 = vld [vmem:[#allocation2 + $0x30] sm:$0xff] (!%p1751_p11)  ;;  %1529 = vst [vmem:[%s2647_s3] sm:$0xff] (!%p1751_p11), %v1497_v4  ;;  %1530 = vst [vmem:[%s2647_s3 + $0x8] sm:$0xff] (!%p1751_p11), %v1498_v5 }
 0x1af   : > { %1447 = vst [vmem:[#allocation2 + $0xc8] sm:$0xff] %v1415_v11  ;;  %v1966_v17 = vadd.f32 %v1965_v15, %v1964_v12  ;;  %v1967_v18 = vpop.f32.mrb[54].mxu1  ;;  %v1856_v19 = vpop.f32.mrb[55].mxu0  ;;  %v1501_v11 = vadd.f32 (!%p1751_p11), %v2499_v2, %v1462_v8  ;;  %v1463_v12 = vld [vmem:[#allocation2 + $0x28] sm:$0xff] (!%p1751_p11)  ;;  %1531 = vst [vmem:[%s2647_s3 + $0x10] sm:$0xff] (!%p1751_p11), %v1499_v9 }
 0x1b0   : > { %v1857_v21 = vadd.f32 %v1856_v19, %v1855_v16  ;;  %v1968_v22 = vpop.f32.mrb[55].mxu1  ;;  %v1502_v15 = vadd.f32 (!%p1751_p11), %v2499_v2, %v1463_v12  ;;  %v1503_v16 = vadd.f32 (!%p1751_p11), %v2499_v2, %v1464_v13  ;;  %v1467_v19 = vld [vmem:[#allocation2 + $0x48] sm:$0xff] (!%p1751_p11)  ;;  %1532 = vst [vmem:[%s2647_s3 + $0x18] sm:$0xff] (!%p1751_p11), %v1500_v10 }
 0x1b1   : > { %v1368_v23 = vadd.f32 %v1966_v17, %v1854_v14  ;;  %v1969_v24 = vadd.f32 %v1968_v22, %v1967_v18  ;;  %v1465_v14 = vld [vmem:[#allocation2 + $0x38] sm:$0xff] (!%p1751_p11)  ;;  %v1466_v18 = vld [vmem:[#allocation2 + $0x40] sm:$0xff] (!%p1751_p11)  ;;  %1533 = vst [vmem:[%s2647_s3 + $0x20] sm:$0xff] (!%p1751_p11), %v1501_v11  ;;  %v1506_v22 = vadd.f32 (!%p1751_p11), %v2499_v2, %v1467_v19 }
 0x1b2   : > { %v1504_v17 = vadd.f32 (!%p1751_p11), %v2499_v2, %v1465_v14  ;;  %1534 = vst [vmem:[%s2647_s3 + $0x28] sm:$0xff] (!%p1751_p11), %v1502_v15  ;;  %1535 = vst [vmem:[%s2647_s3 + $0x30] sm:$0xff] (!%p1751_p11), %v1503_v16 }
 0x1b3   : > { %v1416_v26 = vadd.f32 %v1368_v23, %v422_v20  ;;  %v1371_v27 = vadd.f32 %v1969_v24, %v1857_v21  ;;  %v1468_v20 = vld [vmem:[#allocation2 + $0x50] sm:$0xff] (!%p1751_p11)  ;;  %v1505_v21 = vadd.f32 (!%p1751_p11), %v2499_v2, %v1466_v18  ;;  %v1469_v24 = vld [vmem:[#allocation2 + $0x58] sm:$0xff] (!%p1751_p11)  ;;  %1538 = vst [vmem:[%s2647_s3 + $0x48] sm:$0xff] (!%p1751_p11), %v1506_v22 }
 0x1b4   : > { %v1858_v28 = vpop.f32.mrb[56].mxu0  ;;  %v1507_v23 = vadd.f32 (!%p1751_p11), %v2499_v2, %v1468_v20  ;;  %1536 = vst [vmem:[%s2647_s3 + $0x38] sm:$0xff] (!%p1751_p11), %v1504_v17 }
 0x1b5   : > { %1448 = vst [vmem:[#allocation2 + $0xd0] sm:$0xff] %v1416_v26  ;;  %v1417_v29 = vadd.f32 %v1371_v27, %v423_v25  ;;  %v1970_v30 = vpop.f32.mrb[56].mxu1  ;;  %v1859_v31 = vpop.f32.mrb[57].mxu0  ;;  %v1470_v25 = vld [vmem:[#allocation2 + $0x60] sm:$0xff] (!%p1751_p11)  ;;  %v1471_v26 = vld [vmem:[#allocation2 + $0x68] sm:$0xff] (!%p1751_p11)  ;;  %v1508_v27 = vadd.f32 (!%p1751_p11), %v2499_v2, %v1469_v24  ;;  %1537 = vst [vmem:[%s2647_s3 + $0x40] sm:$0xff] (!%p1751_p11), %v1505_v21 }
 0x1b6   : > { %v1860_v32 = vadd.f32 %v1859_v31, %v1858_v28  ;;  %v1971_v33 = vpop.f32.mrb[57].mxu1  ;;  %v1861_v34 = vpop.f32.mrb[58].mxu0  ;;  %v1509_v28 = vadd.f32 (!%p1751_p11), %v2499_v2, %v1470_v25  ;;  %v1473_v31 = vld [vmem:[#allocation2 + $0x78] sm:$0xff] (!%p1751_p11)  ;;  %1539 = vst [vmem:[%s2647_s3 + $0x50] sm:$0xff] (!%p1751_p11), %v1507_v23 }
 0x1b7   : > { %1449 = vst [vmem:[#allocation2 + $0xd8] sm:$0xff] %v1417_v29  ;;  %v1972_v35 = vadd.f32 %v1971_v33, %v1970_v30  ;;  %v1973_v36 = vpop.f32.mrb[58].mxu1  ;;  %v1862_v37 = vpop.f32.mrb[59].mxu0  ;;  %v1510_v29 = vadd.f32 (!%p1751_p11), %v2499_v2, %v1471_v26  ;;  %v1472_v30 = vld [vmem:[#allocation2 + $0x70] sm:$0xff] (!%p1751_p11)  ;;  %1540 = vst [vmem:[%s2647_s3 + $0x58] sm:$0xff] (!%p1751_p11), %v1508_v27 }
 0x1b8   : > { %v1863_v39 = vadd.f32 %v1862_v37, %v1861_v34  ;;  %v1974_v40 = vpop.f32.mrb[59].mxu1  ;;  %v1511_v33 = vadd.f32 (!%p1751_p11), %v2499_v2, %v1472_v30  ;;  %v1512_v34 = vadd.f32 (!%p1751_p11), %v2499_v2, %v1473_v31  ;;  %v1476_v37 = vld [vmem:[#allocation2 + $0x90] sm:$0xff] (!%p1751_p11)  ;;  %1541 = vst [vmem:[%s2647_s3 + $0x60] sm:$0xff] (!%p1751_p11), %v1509_v28 }
 0x1b9   : > { %v1376_v41 = vadd.f32 %v1972_v35, %v1860_v32  ;;  %v1975_v42 = vadd.f32 %v1974_v40, %v1973_v36  ;;  %v1474_v32 = vld [vmem:[#allocation2 + $0x80] sm:$0xff] (!%p1751_p11)  ;;  %v1475_v36 = vld [vmem:[#allocation2 + $0x88] sm:$0xff] (!%p1751_p11)  ;;  %1542 = vst [vmem:[%s2647_s3 + $0x68] sm:$0xff] (!%p1751_p11), %v1510_v29  ;;  %v1515_v40 = vadd.f32 (!%p1751_p11), %v2499_v2, %v1476_v37 }
 0x1ba   : > { %v1513_v35 = vadd.f32 (!%p1751_p11), %v2499_v2, %v1474_v32  ;;  %1543 = vst [vmem:[%s2647_s3 + $0x70] sm:$0xff] (!%p1751_p11), %v1511_v33  ;;  %1544 = vst [vmem:[%s2647_s3 + $0x78] sm:$0xff] (!%p1751_p11), %v1512_v34 }
 0x1bb   : > { %v1418_v44 = vadd.f32 %v1376_v41, %v424_v38  ;;  %v1379_v45 = vadd.f32 %v1975_v42, %v1863_v39  ;;  %v1477_v38 = vld [vmem:[#allocation2 + $0x98] sm:$0xff] (!%p1751_p11)  ;;  %v1514_v39 = vadd.f32 (!%p1751_p11), %v2499_v2, %v1475_v36  ;;  %v1478_v42 = vld [vmem:[#allocation2 + $0xa0] sm:$0xff] (!%p1751_p11)  ;;  %1547 = vst [vmem:[%s2647_s3 + $0x90] sm:$0xff] (!%p1751_p11), %v1515_v40 }
 0x1bc   : > { %v1864_v46 = vpop.f32.mrb[60].mxu0  ;;  %v1516_v41 = vadd.f32 (!%p1751_p11), %v2499_v2, %v1477_v38  ;;  %1545 = vst [vmem:[%s2647_s3 + $0x80] sm:$0xff] (!%p1751_p11), %v1513_v35 }
 0x1bd   : > { %1450 = vst [vmem:[#allocation2 + $0xe0] sm:$0xff] %v1418_v44  ;;  %v1419_v47 = vadd.f32 %v1379_v45, %v425_v43  ;;  %v1976_v48 = vpop.f32.mrb[60].mxu1  ;;  %v1865_v49 = vpop.f32.mrb[61].mxu0  ;;  %v1479_v43 = vld [vmem:[#allocation2 + $0xa8] sm:$0xff] (!%p1751_p11)  ;;  %v1480_v44 = vld [vmem:[#allocation2 + $0xb0] sm:$0xff] (!%p1751_p11)  ;;  %v1517_v45 = vadd.f32 (!%p1751_p11), %v2499_v2, %v1478_v42  ;;  %1546 = vst [vmem:[%s2647_s3 + $0x88] sm:$0xff] (!%p1751_p11), %v1514_v39 }
 0x1be   : > { %v1866_v50 = vadd.f32 %v1865_v49, %v1864_v46  ;;  %v1977_v51 = vpop.f32.mrb[61].mxu1  ;;  %v1867_v52 = vpop.f32.mrb[62].mxu0  ;;  %v1518_v46 = vadd.f32 (!%p1751_p11), %v2499_v2, %v1479_v43  ;;  %v1482_v49 = vld [vmem:[#allocation2 + $0xc0] sm:$0xff] (!%p1751_p11)  ;;  %1548 = vst [vmem:[%s2647_s3 + $0x98] sm:$0xff] (!%p1751_p11), %v1516_v41 }
 0x1bf   : > { %1451 = vst [vmem:[#allocation2 + $0xe8] sm:$0xff] %v1419_v47  ;;  %v1978_v53 = vadd.f32 %v1977_v51, %v1976_v48  ;;  %v1979_v54 = vpop.f32.mrb[62].mxu1  ;;  %v1868_v55 = vpop.f32.mrb[63].mxu0  ;;  %v1519_v47 = vadd.f32 (!%p1751_p11), %v2499_v2, %v1480_v44  ;;  %v1481_v48 = vld [vmem:[#allocation2 + $0xb8] sm:$0xff] (!%p1751_p11)  ;;  %1549 = vst [vmem:[%s2647_s3 + $0xa0] sm:$0xff] (!%p1751_p11), %v1517_v45 }
 0x1c0   : > { %v1869_v57 = vadd.f32 %v1868_v55, %v1867_v52  ;;  %v1980_v58 = vpop.f32.mrb[63].mxu1  ;;  %v1520_v51 = vadd.f32 (!%p1751_p11), %v2499_v2, %v1481_v48  ;;  %v1521_v52 = vadd.f32 (!%p1751_p11), %v2499_v2, %v1482_v49  ;;  %v1485_v55 = vld [vmem:[#allocation2 + $0xd8] sm:$0xff] (!%p1751_p11)  ;;  %1550 = vst [vmem:[%s2647_s3 + $0xa8] sm:$0xff] (!%p1751_p11), %v1518_v46 }
 0x1c1   : > { %v1384_v59 = vadd.f32 %v1978_v53, %v1866_v50  ;;  %v1981_v60 = vadd.f32 %v1980_v58, %v1979_v54  ;;  %1457 = sbr.rel (%p1751_p11) target bundleno = 466 (0x1d2), region = 63  ;;  %v1483_v50 = vld [vmem:[#allocation2 + $0xc8] sm:$0xff] (!%p1751_p11)  ;;  %v1484_v54 = vld [vmem:[#allocation2 + $0xd0] sm:$0xff] (!%p1751_p11)  ;;  %1551 = vst [vmem:[%s2647_s3 + $0xb0] sm:$0xff] (!%p1751_p11), %v1519_v47  ;;  %v1524_v58 = vadd.f32 (!%p1751_p11), %v2499_v2, %v1485_v55 }
 0x1c2   : > { %v1522_v53 = vadd.f32 (!%p1751_p11), %v2499_v2, %v1483_v50  ;;  %1552 = vst [vmem:[%s2647_s3 + $0xb8] sm:$0xff] (!%p1751_p11), %v1520_v51  ;;  %1553 = vst [vmem:[%s2647_s3 + $0xc0] sm:$0xff] (!%p1751_p11), %v1521_v52 }
 0x1c3   : > { %v1420_v62 = vadd.f32 %v1384_v59, %v426_v56  ;;  %v1387_v63 = vadd.f32 %v1981_v60, %v1869_v57  ;;  %v1523_v57 = vadd.f32 (!%p1751_p11), %v2499_v2, %v1484_v54  ;;  %1556 = vst [vmem:[%s2647_s3 + $0xd8] sm:$0xff] (!%p1751_p11), %v1524_v58 }
 0x1c4   : > { %v1486_v56 = vld [vmem:[#allocation2 + $0xe0] sm:$0xff] (!%p1751_p11)  ;;  %1554 = vst [vmem:[%s2647_s3 + $0xc8] sm:$0xff] (!%p1751_p11), %v1522_v53 }
 0x1c5   : > { %1452 = vst [vmem:[#allocation2 + $0xf0] sm:$0xff] %v1420_v62  ;;  %v1421_v0 = vadd.f32 %v1387_v63, %v427_v61  ;;  %v1525_v59 = vadd.f32 (!%p1751_p11), %v2499_v2, %v1486_v56  ;;  %1555 = vst [vmem:[%s2647_s3 + $0xd0] sm:$0xff] (!%p1751_p11), %v1523_v57 }
 0x1c6   : > { %v1487_v60 = vld [vmem:[#allocation2 + $0xe8] sm:$0xff] (!%p1751_p11) }
 0x1c7   : > { %1453 = vst [vmem:[#allocation2 + $0xf8] sm:$0xff] %v1421_v0  ;;  %v1526_v63 = vadd.f32 (!%p1751_p11), %v2499_v2, %v1487_v60  ;;  %1557 = vst [vmem:[%s2647_s3 + $0xe0] sm:$0xff] (!%p1751_p11), %v1525_v59 }
 0x1c9   : > { %1558 = vst [vmem:[%s2647_s3 + $0xe8] sm:$0xff] %v1526_v63 }
 0x1cc   : > { %v1488_v61 = vld [vmem:[#allocation2 + $0xf0] sm:$0xff] }
 0x1cd   : > { %v1527_v0 = vadd.f32 %v2499_v2, %v1488_v61 }
 0x1ce   : > { %v1489_v62 = vld [vmem:[#allocation2 + $0xf8] sm:$0xff] }
 0x1cf   : > { %v1528_v1 = vadd.f32 %v2499_v2, %v1489_v62  ;;  %1559 = vst [vmem:[%s2647_s3 + $0xf0] sm:$0xff] %v1527_v0 }
 0x1d1   : > { %1560 = vst [vmem:[%s2647_s3 + $0xf8] sm:$0xff] %v1528_v1 }
 0x1d2 PF: > { %s13_s16 = sadd.s32 1, %s2189_s16   ;;  %s2648_s12 = smov %s2177_s13 }
 0x1d3   : > { %p10_p12 = scmp.ge.s32.totalorder %s13_s16, 4   ;;  %s2649_s13 = smov %s2247_s20 }
 0x1d4   : > { %s2650_s14 = smov %s2185_s15  ;;  %s2651_s15 = smov %s2653_s17 }
 0x1d5   :  { %12 = sbr.rel (!%p10_p12) target bundleno = 3 (0x3), region = 101 }

</bundles_post_ra>
